<compile_context>
chip_gen: v6e
topology: v6e:2x2x1
jax: 0.10.0
libtpu: 0.0.40
codegen_flags: <defaults>
</compile_context>

<pallas_src>
import math
import functools

import numpy as np
import jax
import jax.numpy as jnp
from jax import lax
from jax.experimental import pallas as pl
from jax.experimental.pallas import tpu as pltpu

# ---------------- ModelArgs (small synthetic config) ----------------
DIM = 64
N_HEADS = 4
HEAD_DIM = DIM // N_HEADS
N_LAYERS = 2
VOCAB = 50
VOCAB_PAD = (VOCAB + 63) // 64 * 64          # vocab padded to multiple of 64 (as in __init__)
MULTIPLE_OF = 32
NORM_EPS = 1e-5
MAX_SEQ_LEN = 16
DROPOUT = 0.0                                # eval mode: dropout is identity
USE_BIAS = False


def _ffn_hidden(dim, multiple_of):
    h = 4 * dim
    h = int(2 * h / 3)
    return multiple_of * ((h + multiple_of - 1) // multiple_of)


HIDDEN = _ffn_hidden(DIM, MULTIPLE_OF)       # = 192 for DIM=64, multiple_of=32


# ---------------- in-kernel helpers ----------------
def _rms(x, w, eps):
    ms = jnp.mean(x * x, axis=-1, keepdims=True)
    return x * lax.rsqrt(ms + eps) * w


# ---------------- fully fused forward kernel ----------------
def fused_forward_kernel(x_ref, cos_ref, sin_ref, rot_ref,
                         anw_ref, wq_ref, wk_ref, wv_ref, wo_ref,
                         fnw_ref, w1_ref, w2_ref, w3_ref,
                         onw_ref, wout_ref,
                         logits_ref,
                         *, batch, seq, n_layers, n_heads, head_dim, eps):
    D = n_heads * head_dim
    x = x_ref[...]                       # (B*S, D) f32 running activation
    cosf = cos_ref[...]                  # (B*S, D) f32 (pre-tiled per head / per batch)
    sinf = sin_ref[...]
    rot = rot_ref[...]                   # (D, D) f32 block-diag rotate_half matrix

    ri = lax.broadcasted_iota(jnp.int32, (seq, seq), 0)
    ci = lax.broadcasted_iota(jnp.int32, (seq, seq), 1)
    causal = (ci <= ri)[None, :, :]      # (1, S, S)
    scale = 1.0 / math.sqrt(head_dim)

    for l in range(n_layers):            # static unroll (N_LAYERS = 2)
        anw = anw_ref[l]                 # (1, D) f32
        fnw = fnw_ref[l]
        wq, wk, wv, wo = wq_ref[l], wk_ref[l], wv_ref[l], wo_ref[l]    # (D,D) bf16
        w1, w2, w3 = w1_ref[l], w2_ref[l], w3_ref[l]                   # bf16

        # --- attention branch ---
        xn = _rms(x, anw, eps)
        xnb = xn.astype(jnp.bfloat16)
        q = jnp.dot(xnb, wq, preferred_element_type=jnp.float32)       # (B*S, D)
        k = jnp.dot(xnb, wk, preferred_element_type=jnp.float32)
        v = jnp.dot(xnb, wv, preferred_element_type=jnp.float32)

        # RoPE over all heads at once; rotate_half == x @ rot (goes to idle MXU)
        q = q * cosf + jnp.dot(q, rot, preferred_element_type=jnp.float32) * sinf
        k = k * cosf + jnp.dot(k, rot, preferred_element_type=jnp.float32) * sinf

        q3 = q.reshape(batch, seq, D).astype(jnp.bfloat16)
        k3 = k.reshape(batch, seq, D).astype(jnp.bfloat16)
        v3 = v.reshape(batch, seq, D).astype(jnp.bfloat16)

        acc = jnp.zeros((batch * seq, D), jnp.float32)
        for h in range(n_heads):         # static unroll, batched over B inside
            sl = slice(h * head_dim, (h + 1) * head_dim)
            qh, kh, vh = q3[:, :, sl], k3[:, :, sl], v3[:, :, sl]       # (B,S,hd)
            s = jnp.einsum('bqd,bkd->bqk', qh, kh,
                           preferred_element_type=jnp.float32) * scale  # (B,S,S)
            s = jnp.where(causal, s, -1e30)
            s = s - jnp.max(s, axis=-1, keepdims=True)
            p = jnp.exp(s)
            p = p * pl.reciprocal(jnp.sum(p, axis=-1, keepdims=True), approx=True)
            oh = jnp.einsum('bqk,bkd->bqd', p.astype(jnp.bfloat16), vh,
                            preferred_element_type=jnp.float32)         # (B,S,hd)
            # fold per-head slice of wo directly into the accumulator (no concat)
            acc = acc + jnp.dot(
                oh.reshape(batch * seq, head_dim).astype(jnp.bfloat16),
                wo[sl, :], preferred_element_type=jnp.float32)

        x = x + acc                                                     # residual

        # --- feed-forward branch (SwiGLU) ---
        hn = _rms(x, fnw, eps)
        hnb = hn.astype(jnp.bfloat16)
        a = jnp.dot(hnb, w1, preferred_element_type=jnp.float32)        # (B*S, H)
        b = jnp.dot(hnb, w3, preferred_element_type=jnp.float32)
        gate = a * jax.nn.sigmoid(a)                                    # silu (EUP)
        ff = jnp.dot((gate * b).astype(jnp.bfloat16), w2,
                     preferred_element_type=jnp.float32)
        x = x + ff                                                      # residual

    # --- final norm + output projection on last token only (targets=None path) ---
    x3 = x.reshape(batch, seq, D)
    xl = x3[:, seq - 1, :]                                              # (B, D)
    xn = _rms(xl, onw_ref[...], eps)
    logits = jnp.dot(xn.astype(jnp.bfloat16), wout_ref[...],
                     preferred_element_type=jnp.float32)                # (B, V)
    logits_ref[...] = logits[:, None, :]


def transformer_forward(params, tokens):
    B, S = tokens.shape
    # embedding lookup (glue) + dropout p=0.0 -> identity
    h = jnp.take(params['tok_emb'], tokens, axis=0).reshape(B * S, DIM).astype(jnp.float32)

    cos, sin = precompute_freqs(HEAD_DIM, MAX_SEQ_LEN)
    cos, sin = cos[:S], sin[:S]                                   # (S, hd//2)
    # pre-tile cos/sin to (B*S, D): per head block = [cos_half | cos_half]
    cos_full = jnp.tile(jnp.concatenate([cos, cos], axis=-1), (B, N_HEADS))
    sin_full = jnp.tile(jnp.concatenate([sin, sin], axis=-1), (B, N_HEADS))

    kern = functools.partial(fused_forward_kernel,
                             batch=B, seq=S, n_layers=N_LAYERS,
                             n_heads=N_HEADS, head_dim=HEAD_DIM, eps=NORM_EPS)

    # Single launch, single grid step; all operands fit comfortably in VMEM (~0.25 MB).
    return pl.pallas_call(
        kern,
        out_shape=jax.ShapeDtypeStruct((B, 1, VOCAB_PAD), jnp.float32),
    )(h, cos_full, sin_full, params['rot'],
      params['attn_norm'], params['wq'], params['wk'], params['wv'], params['wo'],
      params['ffn_norm'], params['w1'], params['w2'], params['w3'],
      params['norm'], params['w_out_t'])


# ---------------- parameters (deterministic synthetic init) ----------------
def _make_rot(n_heads, head_dim):
    """Block-diagonal matrix R so that (x @ R) == rotate_half(x) per head
    in the de-interleaved [real | imag] layout."""
    D = n_heads * head_dim
    half = head_dim // 2
    R = np.zeros((D, D), np.float32)
    for h in range(n_heads):
        o = h * head_dim
        for t in range(half):
            R[o + half + t, o + t] = -1.0     # out_real[t]  = -imag[t]*sin part
            R[o + t, o + half + t] = 1.0      # out_imag[t]  = +real[t]*sin part
    return jnp.asarray(R)


def init_params(key):
    keys = iter(jax.random.split(key, 8 * N_LAYERS + 4))
    std = 0.02
    std_proj = 0.02 / math.sqrt(2 * N_LAYERS)   # w3.weight / wo.weight re-init in __init__

    # tied embedding / output weight, torch shape (vocab_pad, dim)
    w_out = (std * jax.random.normal(next(keys), (VOCAB_PAD, DIM))).astype(jnp.float32)

    # per-head de-interleave permutation for the RoPE layout trick
    perm_head = np.concatenate([np.arange(0, HEAD_DIM, 2), np.arange(1, HEAD_DIM, 2)])
    perm = jnp.asarray(np.concatenate([h * HEAD_DIM + perm_head for h in range(N_HEADS)]))

    wq_l, wk_l, wv_l, wo_l, w1_l, w2_l, w3_l = [], [], [], [], [], [], []
    for _ in range(N_LAYERS):
        wq = std * jax.random.normal(next(keys), (DIM, DIM))          # torch (out, in)
        wk = std * jax.random.normal(next(keys), (DIM, DIM))
        wv = std * jax.random.normal(next(keys), (DIM, DIM))
        wo = std_proj * jax.random.normal(next(keys), (DIM, DIM))
        w1 = std * jax.random.normal(next(keys), (HIDDEN, DIM))
        w2 = std * jax.random.normal(next(keys), (DIM, HIDDEN))
        w3 = std_proj * jax.random.normal(next(keys), (HIDDEN, DIM))
        wq_l.append(wq.T[:, perm])            # (in, out), RoPE-permuted columns
        wk_l.append(wk.T[:, perm])
        wv_l.append(wv.T)
        wo_l.append(wo.T)
        w1_l.append(w1.T)
        w2_l.append(w2.T)
        w3_l.append(w3.T)

    def stk(lst):   # stacked per-layer weights, bf16 for MXU operands
        return jnp.stack(lst).astype(jnp.bfloat16)

    return dict(
        tok_emb=w_out,                                    # tied with output projection
        attn_norm=jnp.ones((N_LAYERS, 1, DIM), jnp.float32),
        ffn_norm=jnp.ones((N_LAYERS, 1, DIM), jnp.float32),
        wq=stk(wq_l), wk=stk(wk_l), wv=stk(wv_l), wo=stk(wo_l),
        w1=stk(w1_l), w2=stk(w2_l), w3=stk(w3_l),
        norm=jnp.ones((1, DIM), jnp.float32),
        w_out_t=jnp.asarray(w_out.T).astype(jnp.bfloat16),   # (D, V) tied
        rot=_make_rot(N_HEADS, HEAD_DIM),                    # f32 (+/-1, exact)
    )


def precompute_freqs(head_dim, end, theta=10000.0):
    freqs = 1.0 / (theta ** (jnp.arange(0, head_dim, 2)[: head_dim // 2]
                             .astype(jnp.float32) / head_dim))
    t = jnp.arange(end, dtype=jnp.float32)
    f = jnp.outer(t, freqs)
    return jnp.cos(f), jnp.sin(f)


# TODO(synk): training path (targets + cross_entropy), generate(), and dropout>0 are
# not implemented; this kernel covers the eval forward pass (logits of last token).

if __name__ == "__main__":
    key = jax.random.PRNGKey(0)
    pkey, tkey = jax.random.split(key)
    params = init_params(pkey)

    B, S = 2, 8
    tokens = jax.random.randint(tkey, (B, S), 0, VOCAB, dtype=jnp.int32)

    logits = jax.jit(transformer_forward)(params, tokens)
    logits = jax.block_until_ready(logits)

    assert logits.shape == (B, 1, VOCAB_PAD), logits.shape
    assert bool(jnp.all(jnp.isfinite(logits)))
    print("KERNEL_OK")
</pallas_src>

<mosaic_0001>
module attributes {stable_mosaic.version = 11 : i64} {
  func.func @fused_forward_kernel(%arg0: memref<16x64xf32, #tpu.memory_space<vmem>>, %arg1: memref<16x64xf32, #tpu.memory_space<vmem>>, %arg2: memref<16x64xf32, #tpu.memory_space<vmem>>, %arg3: memref<64x64xf32, #tpu.memory_space<vmem>>, %arg4: memref<2x1x64xf32, #tpu.memory_space<vmem>>, %arg5: memref<2x64x64xbf16, #tpu.memory_space<vmem>>, %arg6: memref<2x64x64xbf16, #tpu.memory_space<vmem>>, %arg7: memref<2x64x64xbf16, #tpu.memory_space<vmem>>, %arg8: memref<2x64x64xbf16, #tpu.memory_space<vmem>>, %arg9: memref<2x1x64xf32, #tpu.memory_space<vmem>>, %arg10: memref<2x64x192xbf16, #tpu.memory_space<vmem>>, %arg11: memref<2x192x64xbf16, #tpu.memory_space<vmem>>, %arg12: memref<2x64x192xbf16, #tpu.memory_space<vmem>>, %arg13: memref<1x64xf32, #tpu.memory_space<vmem>>, %arg14: memref<64x64xbf16, #tpu.memory_space<vmem>>, %arg15: memref<2x1x64xf32, #tpu.memory_space<vmem>>) attributes {dimension_semantics = [], scalar_prefetch = 0 : i64, scratch_operands = 0 : i64, tpu.core_type = #tpu.core_type<tc>} {
    %c0 = arith.constant 0 : index
    %c0_0 = arith.constant 0 : index
    %0 = vector.load %arg0[%c0, %c0_0] : memref<16x64xf32, #tpu.memory_space<vmem>>, vector<16x64xf32>
    %c0_1 = arith.constant 0 : index
    %c0_2 = arith.constant 0 : index
    %1 = vector.load %arg1[%c0_1, %c0_2] : memref<16x64xf32, #tpu.memory_space<vmem>>, vector<16x64xf32>
    %c0_3 = arith.constant 0 : index
    %c0_4 = arith.constant 0 : index
    %2 = vector.load %arg2[%c0_3, %c0_4] : memref<16x64xf32, #tpu.memory_space<vmem>>, vector<16x64xf32>
    %c0_5 = arith.constant 0 : index
    %c0_6 = arith.constant 0 : index
    %3 = vector.load %arg3[%c0_5, %c0_6] : memref<64x64xf32, #tpu.memory_space<vmem>>, vector<64x64xf32>
    %4 = tpu.iota {dimensions = array<i32: 0>} : vector<8x8xi32>
    %5 = tpu.iota {dimensions = array<i32: 1>} : vector<8x8xi32>
    %6 = arith.cmpi sle, %5, %4 : vector<8x8xi32>
    %7 = vector.shape_cast %6 : vector<8x8xi1> to vector<1x8x8xi1>
    %c0_7 = arith.constant 0 : index
    %c0_8 = arith.constant 0 : index
    %c0_9 = arith.constant 0 : index
    %8 = vector.load %arg4[%c0_7, %c0_8, %c0_9] : memref<2x1x64xf32, #tpu.memory_space<vmem>>, vector<1x1x64xf32>
    %9 = vector.shape_cast %8 : vector<1x1x64xf32> to vector<1x64xf32>
    %c0_10 = arith.constant 0 : index
    %c0_11 = arith.constant 0 : index
    %c0_12 = arith.constant 0 : index
    %10 = vector.load %arg9[%c0_10, %c0_11, %c0_12] : memref<2x1x64xf32, #tpu.memory_space<vmem>>, vector<1x1x64xf32>
    %11 = vector.shape_cast %10 : vector<1x1x64xf32> to vector<1x64xf32>
    %c0_13 = arith.constant 0 : index
    %c0_14 = arith.constant 0 : index
    %c0_15 = arith.constant 0 : index
    %12 = vector.load %arg5[%c0_13, %c0_14, %c0_15] : memref<2x64x64xbf16, #tpu.memory_space<vmem>>, vector<1x64x64xbf16>
    %13 = vector.shape_cast %12 : vector<1x64x64xbf16> to vector<64x64xbf16>
    %c0_16 = arith.constant 0 : index
    %c0_17 = arith.constant 0 : index
    %c0_18 = arith.constant 0 : index
    %14 = vector.load %arg6[%c0_16, %c0_17, %c0_18] : memref<2x64x64xbf16, #tpu.memory_space<vmem>>, vector<1x64x64xbf16>
    %15 = vector.shape_cast %14 : vector<1x64x64xbf16> to vector<64x64xbf16>
    %c0_19 = arith.constant 0 : index
    %c0_20 = arith.constant 0 : index
    %c0_21 = arith.constant 0 : index
    %16 = vector.load %arg7[%c0_19, %c0_20, %c0_21] : memref<2x64x64xbf16, #tpu.memory_space<vmem>>, vector<1x64x64xbf16>
    %17 = vector.shape_cast %16 : vector<1x64x64xbf16> to vector<64x64xbf16>
    %c0_22 = arith.constant 0 : index
    %c0_23 = arith.constant 0 : index
    %c0_24 = arith.constant 0 : index
    %18 = vector.load %arg8[%c0_22, %c0_23, %c0_24] : memref<2x64x64xbf16, #tpu.memory_space<vmem>>, vector<1x64x64xbf16>
    %19 = vector.shape_cast %18 : vector<1x64x64xbf16> to vector<64x64xbf16>
    %c0_25 = arith.constant 0 : index
    %c0_26 = arith.constant 0 : index
    %c0_27 = arith.constant 0 : index
    %20 = vector.load %arg10[%c0_25, %c0_26, %c0_27] : memref<2x64x192xbf16, #tpu.memory_space<vmem>>, vector<1x64x192xbf16>
    %21 = vector.shape_cast %20 : vector<1x64x192xbf16> to vector<64x192xbf16>
    %c0_28 = arith.constant 0 : index
    %c0_29 = arith.constant 0 : index
    %c0_30 = arith.constant 0 : index
    %22 = vector.load %arg11[%c0_28, %c0_29, %c0_30] : memref<2x192x64xbf16, #tpu.memory_space<vmem>>, vector<1x192x64xbf16>
    %23 = vector.shape_cast %22 : vector<1x192x64xbf16> to vector<192x64xbf16>
    %c0_31 = arith.constant 0 : index
    %c0_32 = arith.constant 0 : index
    %c0_33 = arith.constant 0 : index
    %24 = vector.load %arg12[%c0_31, %c0_32, %c0_33] : memref<2x64x192xbf16, #tpu.memory_space<vmem>>, vector<1x64x192xbf16>
    %25 = vector.shape_cast %24 : vector<1x64x192xbf16> to vector<64x192xbf16>
    %26 = arith.mulf %0, %0 : vector<16x64xf32>
    %cst = arith.constant dense<0.000000e+00> : vector<16xf32>
    %27 = vector.multi_reduction <add>, %26, %cst [1] : vector<16x64xf32> to vector<16xf32>
    %28 = vector.shape_cast %27 : vector<16xf32> to vector<16x1xf32>
    %cst_34 = arith.constant 6.400000e+01 : f32
    %29 = vector.broadcast %cst_34 : f32 to vector<16x1xf32>
    %30 = arith.divf %28, %29 : vector<16x1xf32>
    %cst_35 = arith.constant 9.99999974E-6 : f32
    %31 = vector.broadcast %cst_35 : f32 to vector<16x1xf32>
    %32 = arith.addf %30, %31 : vector<16x1xf32>
    %33 = math.rsqrt %32 : vector<16x1xf32>
    %34 = vector.broadcast %33 : vector<16x1xf32> to vector<16x64xf32>
    %35 = arith.mulf %0, %34 : vector<16x64xf32>
    %36 = vector.broadcast %9 : vector<1x64xf32> to vector<16x64xf32>
    %37 = arith.mulf %35, %36 : vector<16x64xf32>
    %38 = arith.truncf %37 : vector<16x64xf32> to vector<16x64xbf16>
    %cst_36 = arith.constant dense<0.000000e+00> : vector<16x64xf32>
    %39 = tpu.matmul %38, %13, %cst_36 {dimension_numbers = #tpu.dot_dimension_numbers<[1], [0], [0], [1], [0, 0, 1, 1], [], []>} : vector<16x64xbf16>, vector<64x64xbf16>, vector<16x64xf32> -> vector<16x64xf32>
    %cst_37 = arith.constant dense<0.000000e+00> : vector<16x64xf32>
    %40 = tpu.matmul %38, %15, %cst_37 {dimension_numbers = #tpu.dot_dimension_numbers<[1], [0], [0], [1], [0, 0, 1, 1], [], []>} : vector<16x64xbf16>, vector<64x64xbf16>, vector<16x64xf32> -> vector<16x64xf32>
    %cst_38 = arith.constant dense<0.000000e+00> : vector<16x64xf32>
    %41 = tpu.matmul %38, %17, %cst_38 {dimension_numbers = #tpu.dot_dimension_numbers<[1], [0], [0], [1], [0, 0, 1, 1], [], []>} : vector<16x64xbf16>, vector<64x64xbf16>, vector<16x64xf32> -> vector<16x64xf32>
    %42 = arith.mulf %39, %1 : vector<16x64xf32>
    %cst_39 = arith.constant dense<0.000000e+00> : vector<16x64xf32>
    %43 = tpu.matmul %39, %3, %cst_39 {dimension_numbers = #tpu.dot_dimension_numbers<[1], [0], [0], [1], [0, 0, 1, 1], [], []>} : vector<16x64xf32>, vector<64x64xf32>, vector<16x64xf32> -> vector<16x64xf32>
    %44 = arith.mulf %43, %2 : vector<16x64xf32>
    %45 = arith.addf %42, %44 : vector<16x64xf32>
    %46 = arith.mulf %40, %1 : vector<16x64xf32>
    %cst_40 = arith.constant dense<0.000000e+00> : vector<16x64xf32>
    %47 = tpu.matmul %40, %3, %cst_40 {dimension_numbers = #tpu.dot_dimension_numbers<[1], [0], [0], [1], [0, 0, 1, 1], [], []>} : vector<16x64xf32>, vector<64x64xf32>, vector<16x64xf32> -> vector<16x64xf32>
    %48 = arith.mulf %47, %2 : vector<16x64xf32>
    %49 = arith.addf %46, %48 : vector<16x64xf32>
    %50 = vector.shape_cast %45 : vector<16x64xf32> to vector<2x8x64xf32>
    %51 = arith.truncf %50 : vector<2x8x64xf32> to vector<2x8x64xbf16>
    %52 = vector.shape_cast %49 : vector<16x64xf32> to vector<2x8x64xf32>
    %53 = arith.truncf %52 : vector<2x8x64xf32> to vector<2x8x64xbf16>
    %54 = vector.shape_cast %41 : vector<16x64xf32> to vector<2x8x64xf32>
    %55 = arith.truncf %54 : vector<2x8x64xf32> to vector<2x8x64xbf16>
    %cst_41 = arith.constant 0.000000e+00 : f32
    %56 = vector.broadcast %cst_41 : f32 to vector<16x64xf32>
    %57 = vector.extract_strided_slice %51 {offsets = [0, 0, 0], sizes = [2, 8, 16], strides = [1, 1, 1]} : vector<2x8x64xbf16> to vector<2x8x16xbf16>
    %58 = vector.extract_strided_slice %53 {offsets = [0, 0, 0], sizes = [2, 8, 16], strides = [1, 1, 1]} : vector<2x8x64xbf16> to vector<2x8x16xbf16>
    %59 = vector.extract_strided_slice %55 {offsets = [0, 0, 0], sizes = [2, 8, 16], strides = [1, 1, 1]} : vector<2x8x64xbf16> to vector<2x8x16xbf16>
    "tpu.trace_start"() <{level = 10 : i32, message = "bqd,bkd->bqk"}> : () -> ()
    %cst_42 = arith.constant dense<0.000000e+00> : vector<2x8x8xf32>
    %60 = tpu.matmul %57, %58, %cst_42 {dimension_numbers = #tpu.dot_dimension_numbers<[2], [2], [1], [1], [0, 0, 0, 1, 1, 1], [0], [0]>} : vector<2x8x16xbf16>, vector<2x8x16xbf16>, vector<2x8x8xf32> -> vector<2x8x8xf32>
    "tpu.trace_stop"() : () -> ()
    %cst_43 = arith.constant 2.500000e-01 : f32
    %61 = vector.broadcast %cst_43 : f32 to vector<2x8x8xf32>
    %62 = arith.mulf %60, %61 : vector<2x8x8xf32>
    %cst_44 = arith.constant -1.000000e+30 : f32
    %63 = vector.shape_cast %7 : vector<1x8x8xi1> to vector<1x8x8xi1>
    %64 = vector.broadcast %63 : vector<1x8x8xi1> to vector<2x8x8xi1>
    %65 = vector.broadcast %cst_44 : f32 to vector<2x8x8xf32>
    %66 = arith.select %64, %62, %65 : vector<2x8x8xi1>, vector<2x8x8xf32>
    %cst_45 = arith.constant dense<0xFF800000> : vector<2x8xf32>
    %67 = vector.multi_reduction <maximumf>, %66, %cst_45 [2] : vector<2x8x8xf32> to vector<2x8xf32>
    %68 = vector.shape_cast %67 : vector<2x8xf32> to vector<2x8x1xf32>
    %69 = vector.broadcast %68 : vector<2x8x1xf32> to vector<2x8x8xf32>
    %70 = arith.subf %66, %69 : vector<2x8x8xf32>
    %71 = math.exp %70 : vector<2x8x8xf32>
    %cst_46 = arith.constant dense<0.000000e+00> : vector<2x8xf32>
    %72 = vector.multi_reduction <add>, %71, %cst_46 [2] : vector<2x8x8xf32> to vector<2x8xf32>
    %73 = vector.shape_cast %72 : vector<2x8xf32> to vector<2x8x1xf32>
    %74 = tpu.reciprocal %73 {approx = true} : vector<2x8x1xf32> -> vector<2x8x1xf32>
    %75 = vector.broadcast %74 : vector<2x8x1xf32> to vector<2x8x8xf32>
    %76 = arith.mulf %71, %75 : vector<2x8x8xf32>
    %77 = arith.truncf %76 : vector<2x8x8xf32> to vector<2x8x8xbf16>
    "tpu.trace_start"() <{level = 10 : i32, message = "bqk,bkd->bqd"}> : () -> ()
    %cst_47 = arith.constant dense<0.000000e+00> : vector<2x8x16xf32>
    %78 = tpu.matmul %77, %59, %cst_47 {dimension_numbers = #tpu.dot_dimension_numbers<[2], [1], [1], [2], [0, 0, 0, 1, 1, 2], [0], [0]>} : vector<2x8x8xbf16>, vector<2x8x16xbf16>, vector<2x8x16xf32> -> vector<2x8x16xf32>
    "tpu.trace_stop"() : () -> ()
    %79 = vector.shape_cast %78 : vector<2x8x16xf32> to vector<16x16xf32>
    %80 = arith.truncf %79 : vector<16x16xf32> to vector<16x16xbf16>
    %81 = vector.extract_strided_slice %19 {offsets = [0, 0], sizes = [16, 64], strides = [1, 1]} : vector<64x64xbf16> to vector<16x64xbf16>
    %cst_48 = arith.constant dense<0.000000e+00> : vector<16x64xf32>
    %82 = tpu.matmul %80, %81, %cst_48 {dimension_numbers = #tpu.dot_dimension_numbers<[1], [0], [0], [1], [0, 0, 1, 1], [], []>} : vector<16x16xbf16>, vector<16x64xbf16>, vector<16x64xf32> -> vector<16x64xf32>
    %83 = arith.addf %56, %82 : vector<16x64xf32>
    %84 = vector.extract_strided_slice %51 {offsets = [0, 0, 16], sizes = [2, 8, 16], strides = [1, 1, 1]} : vector<2x8x64xbf16> to vector<2x8x16xbf16>
    %85 = vector.extract_strided_slice %53 {offsets = [0, 0, 16], sizes = [2, 8, 16], strides = [1, 1, 1]} : vector<2x8x64xbf16> to vector<2x8x16xbf16>
    %86 = vector.extract_strided_slice %55 {offsets = [0, 0, 16], sizes = [2, 8, 16], strides = [1, 1, 1]} : vector<2x8x64xbf16> to vector<2x8x16xbf16>
    "tpu.trace_start"() <{level = 10 : i32, message = "bqd,bkd->bqk"}> : () -> ()
    %cst_49 = arith.constant dense<0.000000e+00> : vector<2x8x8xf32>
    %87 = tpu.matmul %84, %85, %cst_49 {dimension_numbers = #tpu.dot_dimension_numbers<[2], [2], [1], [1], [0, 0, 0, 1, 1, 1], [0], [0]>} : vector<2x8x16xbf16>, vector<2x8x16xbf16>, vector<2x8x8xf32> -> vector<2x8x8xf32>
    "tpu.trace_stop"() : () -> ()
    %cst_50 = arith.constant 2.500000e-01 : f32
    %88 = vector.broadcast %cst_50 : f32 to vector<2x8x8xf32>
    %89 = arith.mulf %87, %88 : vector<2x8x8xf32>
    %cst_51 = arith.constant -1.000000e+30 : f32
    %90 = vector.shape_cast %7 : vector<1x8x8xi1> to vector<1x8x8xi1>
    %91 = vector.broadcast %90 : vector<1x8x8xi1> to vector<2x8x8xi1>
    %92 = vector.broadcast %cst_51 : f32 to vector<2x8x8xf32>
    %93 = arith.select %91, %89, %92 : vector<2x8x8xi1>, vector<2x8x8xf32>
    %cst_52 = arith.constant dense<0xFF800000> : vector<2x8xf32>
    %94 = vector.multi_reduction <maximumf>, %93, %cst_52 [2] : vector<2x8x8xf32> to vector<2x8xf32>
    %95 = vector.shape_cast %94 : vector<2x8xf32> to vector<2x8x1xf32>
    %96 = vector.broadcast %95 : vector<2x8x1xf32> to vector<2x8x8xf32>
    %97 = arith.subf %93, %96 : vector<2x8x8xf32>
    %98 = math.exp %97 : vector<2x8x8xf32>
    %cst_53 = arith.constant dense<0.000000e+00> : vector<2x8xf32>
    %99 = vector.multi_reduction <add>, %98, %cst_53 [2] : vector<2x8x8xf32> to vector<2x8xf32>
    %100 = vector.shape_cast %99 : vector<2x8xf32> to vector<2x8x1xf32>
    %101 = tpu.reciprocal %100 {approx = true} : vector<2x8x1xf32> -> vector<2x8x1xf32>
    %102 = vector.broadcast %101 : vector<2x8x1xf32> to vector<2x8x8xf32>
    %103 = arith.mulf %98, %102 : vector<2x8x8xf32>
    %104 = arith.truncf %103 : vector<2x8x8xf32> to vector<2x8x8xbf16>
    "tpu.trace_start"() <{level = 10 : i32, message = "bqk,bkd->bqd"}> : () -> ()
    %cst_54 = arith.constant dense<0.000000e+00> : vector<2x8x16xf32>
    %105 = tpu.matmul %104, %86, %cst_54 {dimension_numbers = #tpu.dot_dimension_numbers<[2], [1], [1], [2], [0, 0, 0, 1, 1, 2], [0], [0]>} : vector<2x8x8xbf16>, vector<2x8x16xbf16>, vector<2x8x16xf32> -> vector<2x8x16xf32>
    "tpu.trace_stop"() : () -> ()
    %106 = vector.shape_cast %105 : vector<2x8x16xf32> to vector<16x16xf32>
    %107 = arith.truncf %106 : vector<16x16xf32> to vector<16x16xbf16>
    %108 = vector.extract_strided_slice %19 {offsets = [16, 0], sizes = [16, 64], strides = [1, 1]} : vector<64x64xbf16> to vector<16x64xbf16>
    %cst_55 = arith.constant dense<0.000000e+00> : vector<16x64xf32>
    %109 = tpu.matmul %107, %108, %cst_55 {dimension_numbers = #tpu.dot_dimension_numbers<[1], [0], [0], [1], [0, 0, 1, 1], [], []>} : vector<16x16xbf16>, vector<16x64xbf16>, vector<16x64xf32> -> vector<16x64xf32>
    %110 = arith.addf %83, %109 : vector<16x64xf32>
    %111 = vector.extract_strided_slice %51 {offsets = [0, 0, 32], sizes = [2, 8, 16], strides = [1, 1, 1]} : vector<2x8x64xbf16> to vector<2x8x16xbf16>
    %112 = vector.extract_strided_slice %53 {offsets = [0, 0, 32], sizes = [2, 8, 16], strides = [1, 1, 1]} : vector<2x8x64xbf16> to vector<2x8x16xbf16>
    %113 = vector.extract_strided_slice %55 {offsets = [0, 0, 32], sizes = [2, 8, 16], strides = [1, 1, 1]} : vector<2x8x64xbf16> to vector<2x8x16xbf16>
    "tpu.trace_start"() <{level = 10 : i32, message = "bqd,bkd->bqk"}> : () -> ()
    %cst_56 = arith.constant dense<0.000000e+00> : vector<2x8x8xf32>
    %114 = tpu.matmul %111, %112, %cst_56 {dimension_numbers = #tpu.dot_dimension_numbers<[2], [2], [1], [1], [0, 0, 0, 1, 1, 1], [0], [0]>} : vector<2x8x16xbf16>, vector<2x8x16xbf16>, vector<2x8x8xf32> -> vector<2x8x8xf32>
    "tpu.trace_stop"() : () -> ()
    %cst_57 = arith.constant 2.500000e-01 : f32
    %115 = vector.broadcast %cst_57 : f32 to vector<2x8x8xf32>
    %116 = arith.mulf %114, %115 : vector<2x8x8xf32>
    %cst_58 = arith.constant -1.000000e+30 : f32
    %117 = vector.shape_cast %7 : vector<1x8x8xi1> to vector<1x8x8xi1>
    %118 = vector.broadcast %117 : vector<1x8x8xi1> to vector<2x8x8xi1>
    %119 = vector.broadcast %cst_58 : f32 to vector<2x8x8xf32>
    %120 = arith.select %118, %116, %119 : vector<2x8x8xi1>, vector<2x8x8xf32>
    %cst_59 = arith.constant dense<0xFF800000> : vector<2x8xf32>
    %121 = vector.multi_reduction <maximumf>, %120, %cst_59 [2] : vector<2x8x8xf32> to vector<2x8xf32>
    %122 = vector.shape_cast %121 : vector<2x8xf32> to vector<2x8x1xf32>
    %123 = vector.broadcast %122 : vector<2x8x1xf32> to vector<2x8x8xf32>
    %124 = arith.subf %120, %123 : vector<2x8x8xf32>
    %125 = math.exp %124 : vector<2x8x8xf32>
    %cst_60 = arith.constant dense<0.000000e+00> : vector<2x8xf32>
    %126 = vector.multi_reduction <add>, %125, %cst_60 [2] : vector<2x8x8xf32> to vector<2x8xf32>
    %127 = vector.shape_cast %126 : vector<2x8xf32> to vector<2x8x1xf32>
    %128 = tpu.reciprocal %127 {approx = true} : vector<2x8x1xf32> -> vector<2x8x1xf32>
    %129 = vector.broadcast %128 : vector<2x8x1xf32> to vector<2x8x8xf32>
    %130 = arith.mulf %125, %129 : vector<2x8x8xf32>
    %131 = arith.truncf %130 : vector<2x8x8xf32> to vector<2x8x8xbf16>
    "tpu.trace_start"() <{level = 10 : i32, message = "bqk,bkd->bqd"}> : () -> ()
    %cst_61 = arith.constant dense<0.000000e+00> : vector<2x8x16xf32>
    %132 = tpu.matmul %131, %113, %cst_61 {dimension_numbers = #tpu.dot_dimension_numbers<[2], [1], [1], [2], [0, 0, 0, 1, 1, 2], [0], [0]>} : vector<2x8x8xbf16>, vector<2x8x16xbf16>, vector<2x8x16xf32> -> vector<2x8x16xf32>
    "tpu.trace_stop"() : () -> ()
    %133 = vector.shape_cast %132 : vector<2x8x16xf32> to vector<16x16xf32>
    %134 = arith.truncf %133 : vector<16x16xf32> to vector<16x16xbf16>
    %135 = vector.extract_strided_slice %19 {offsets = [32, 0], sizes = [16, 64], strides = [1, 1]} : vector<64x64xbf16> to vector<16x64xbf16>
    %cst_62 = arith.constant dense<0.000000e+00> : vector<16x64xf32>
    %136 = tpu.matmul %134, %135, %cst_62 {dimension_numbers = #tpu.dot_dimension_numbers<[1], [0], [0], [1], [0, 0, 1, 1], [], []>} : vector<16x16xbf16>, vector<16x64xbf16>, vector<16x64xf32> -> vector<16x64xf32>
    %137 = arith.addf %110, %136 : vector<16x64xf32>
    %138 = vector.extract_strided_slice %51 {offsets = [0, 0, 48], sizes = [2, 8, 16], strides = [1, 1, 1]} : vector<2x8x64xbf16> to vector<2x8x16xbf16>
    %139 = vector.extract_strided_slice %53 {offsets = [0, 0, 48], sizes = [2, 8, 16], strides = [1, 1, 1]} : vector<2x8x64xbf16> to vector<2x8x16xbf16>
    %140 = vector.extract_strided_slice %55 {offsets = [0, 0, 48], sizes = [2, 8, 16], strides = [1, 1, 1]} : vector<2x8x64xbf16> to vector<2x8x16xbf16>
    "tpu.trace_start"() <{level = 10 : i32, message = "bqd,bkd->bqk"}> : () -> ()
    %cst_63 = arith.constant dense<0.000000e+00> : vector<2x8x8xf32>
    %141 = tpu.matmul %138, %139, %cst_63 {dimension_numbers = #tpu.dot_dimension_numbers<[2], [2], [1], [1], [0, 0, 0, 1, 1, 1], [0], [0]>} : vector<2x8x16xbf16>, vector<2x8x16xbf16>, vector<2x8x8xf32> -> vector<2x8x8xf32>
    "tpu.trace_stop"() : () -> ()
    %cst_64 = arith.constant 2.500000e-01 : f32
    %142 = vector.broadcast %cst_64 : f32 to vector<2x8x8xf32>
    %143 = arith.mulf %141, %142 : vector<2x8x8xf32>
    %cst_65 = arith.constant -1.000000e+30 : f32
    %144 = vector.shape_cast %7 : vector<1x8x8xi1> to vector<1x8x8xi1>
    %145 = vector.broadcast %144 : vector<1x8x8xi1> to vector<2x8x8xi1>
    %146 = vector.broadcast %cst_65 : f32 to vector<2x8x8xf32>
    %147 = arith.select %145, %143, %146 : vector<2x8x8xi1>, vector<2x8x8xf32>
    %cst_66 = arith.constant dense<0xFF800000> : vector<2x8xf32>
    %148 = vector.multi_reduction <maximumf>, %147, %cst_66 [2] : vector<2x8x8xf32> to vector<2x8xf32>
    %149 = vector.shape_cast %148 : vector<2x8xf32> to vector<2x8x1xf32>
    %150 = vector.broadcast %149 : vector<2x8x1xf32> to vector<2x8x8xf32>
    %151 = arith.subf %147, %150 : vector<2x8x8xf32>
    %152 = math.exp %151 : vector<2x8x8xf32>
    %cst_67 = arith.constant dense<0.000000e+00> : vector<2x8xf32>
    %153 = vector.multi_reduction <add>, %152, %cst_67 [2] : vector<2x8x8xf32> to vector<2x8xf32>
    %154 = vector.shape_cast %153 : vector<2x8xf32> to vector<2x8x1xf32>
    %155 = tpu.reciprocal %154 {approx = true} : vector<2x8x1xf32> -> vector<2x8x1xf32>
    %156 = vector.broadcast %155 : vector<2x8x1xf32> to vector<2x8x8xf32>
    %157 = arith.mulf %152, %156 : vector<2x8x8xf32>
    %158 = arith.truncf %157 : vector<2x8x8xf32> to vector<2x8x8xbf16>
    "tpu.trace_start"() <{level = 10 : i32, message = "bqk,bkd->bqd"}> : () -> ()
    %cst_68 = arith.constant dense<0.000000e+00> : vector<2x8x16xf32>
    %159 = tpu.matmul %158, %140, %cst_68 {dimension_numbers = #tpu.dot_dimension_numbers<[2], [1], [1], [2], [0, 0, 0, 1, 1, 2], [0], [0]>} : vector<2x8x8xbf16>, vector<2x8x16xbf16>, vector<2x8x16xf32> -> vector<2x8x16xf32>
    "tpu.trace_stop"() : () -> ()
    %160 = vector.shape_cast %159 : vector<2x8x16xf32> to vector<16x16xf32>
    %161 = arith.truncf %160 : vector<16x16xf32> to vector<16x16xbf16>
    %162 = vector.extract_strided_slice %19 {offsets = [48, 0], sizes = [16, 64], strides = [1, 1]} : vector<64x64xbf16> to vector<16x64xbf16>
    %cst_69 = arith.constant dense<0.000000e+00> : vector<16x64xf32>
    %163 = tpu.matmul %161, %162, %cst_69 {dimension_numbers = #tpu.dot_dimension_numbers<[1], [0], [0], [1], [0, 0, 1, 1], [], []>} : vector<16x16xbf16>, vector<16x64xbf16>, vector<16x64xf32> -> vector<16x64xf32>
    %164 = arith.addf %137, %163 : vector<16x64xf32>
    %165 = arith.addf %0, %164 : vector<16x64xf32>
    %166 = arith.mulf %165, %165 : vector<16x64xf32>
    %cst_70 = arith.constant dense<0.000000e+00> : vector<16xf32>
    %167 = vector.multi_reduction <add>, %166, %cst_70 [1] : vector<16x64xf32> to vector<16xf32>
    %168 = vector.shape_cast %167 : vector<16xf32> to vector<16x1xf32>
    %cst_71 = arith.constant 6.400000e+01 : f32
    %169 = vector.broadcast %cst_71 : f32 to vector<16x1xf32>
    %170 = arith.divf %168, %169 : vector<16x1xf32>
    %cst_72 = arith.constant 9.99999974E-6 : f32
    %171 = vector.broadcast %cst_72 : f32 to vector<16x1xf32>
    %172 = arith.addf %170, %171 : vector<16x1xf32>
    %173 = math.rsqrt %172 : vector<16x1xf32>
    %174 = vector.broadcast %173 : vector<16x1xf32> to vector<16x64xf32>
    %175 = arith.mulf %165, %174 : vector<16x64xf32>
    %176 = vector.broadcast %11 : vector<1x64xf32> to vector<16x64xf32>
    %177 = arith.mulf %175, %176 : vector<16x64xf32>
    %178 = arith.truncf %177 : vector<16x64xf32> to vector<16x64xbf16>
    %cst_73 = arith.constant dense<0.000000e+00> : vector<16x192xf32>
    %179 = tpu.matmul %178, %21, %cst_73 {dimension_numbers = #tpu.dot_dimension_numbers<[1], [0], [0], [1], [0, 0, 1, 1], [], []>} : vector<16x64xbf16>, vector<64x192xbf16>, vector<16x192xf32> -> vector<16x192xf32>
    %cst_74 = arith.constant dense<0.000000e+00> : vector<16x192xf32>
    %180 = tpu.matmul %178, %25, %cst_74 {dimension_numbers = #tpu.dot_dimension_numbers<[1], [0], [0], [1], [0, 0, 1, 1], [], []>} : vector<16x64xbf16>, vector<64x192xbf16>, vector<16x192xf32> -> vector<16x192xf32>
    %181 = arith.negf %179 : vector<16x192xf32>
    %182 = math.exp %181 : vector<16x192xf32>
    %cst_75 = arith.constant 1.000000e+00 : f32
    %183 = vector.broadcast %cst_75 : f32 to vector<16x192xf32>
    %184 = arith.addf %183, %182 : vector<16x192xf32>
    %185 = arith.divf %183, %184 : vector<16x192xf32>
    %186 = arith.mulf %179, %185 : vector<16x192xf32>
    %187 = arith.mulf %186, %180 : vector<16x192xf32>
    %188 = arith.truncf %187 : vector<16x192xf32> to vector<16x192xbf16>
    %cst_76 = arith.constant dense<0.000000e+00> : vector<16x64xf32>
    %189 = tpu.matmul %188, %23, %cst_76 {dimension_numbers = #tpu.dot_dimension_numbers<[1], [0], [0], [1], [0, 0, 1, 1], [], []>} : vector<16x192xbf16>, vector<192x64xbf16>, vector<16x64xf32> -> vector<16x64xf32>
    %190 = arith.addf %165, %189 : vector<16x64xf32>
    %c1 = arith.constant 1 : index
    %c0_77 = arith.constant 0 : index
    %c0_78 = arith.constant 0 : index
    %191 = vector.load %arg4[%c1, %c0_77, %c0_78] : memref<2x1x64xf32, #tpu.memory_space<vmem>>, vector<1x1x64xf32>
    %192 = vector.shape_cast %191 : vector<1x1x64xf32> to vector<1x64xf32>
    %c1_79 = arith.constant 1 : index
    %c0_80 = arith.constant 0 : index
    %c0_81 = arith.constant 0 : index
    %193 = vector.load %arg9[%c1_79, %c0_80, %c0_81] : memref<2x1x64xf32, #tpu.memory_space<vmem>>, vector<1x1x64xf32>
    %194 = vector.shape_cast %193 : vector<1x1x64xf32> to vector<1x64xf32>
    %c1_82 = arith.constant 1 : index
    %c0_83 = arith.constant 0 : index
    %c0_84 = arith.constant 0 : index
    %195 = vector.load %arg5[%c1_82, %c0_83, %c0_84] : memref<2x64x64xbf16, #tpu.memory_space<vmem>>, vector<1x64x64xbf16>
    %196 = vector.shape_cast %195 : vector<1x64x64xbf16> to vector<64x64xbf16>
    %c1_85 = arith.constant 1 : index
    %c0_86 = arith.constant 0 : index
    %c0_87 = arith.constant 0 : index
    %197 = vector.load %arg6[%c1_85, %c0_86, %c0_87] : memref<2x64x64xbf16, #tpu.memory_space<vmem>>, vector<1x64x64xbf16>
    %198 = vector.shape_cast %197 : vector<1x64x64xbf16> to vector<64x64xbf16>
    %c1_88 = arith.constant 1 : index
    %c0_89 = arith.constant 0 : index
    %c0_90 = arith.constant 0 : index
    %199 = vector.load %arg7[%c1_88, %c0_89, %c0_90] : memref<2x64x64xbf16, #tpu.memory_space<vmem>>, vector<1x64x64xbf16>
    %200 = vector.shape_cast %199 : vector<1x64x64xbf16> to vector<64x64xbf16>
    %c1_91 = arith.constant 1 : index
    %c0_92 = arith.constant 0 : index
    %c0_93 = arith.constant 0 : index
    %201 = vector.load %arg8[%c1_91, %c0_92, %c0_93] : memref<2x64x64xbf16, #tpu.memory_space<vmem>>, vector<1x64x64xbf16>
    %202 = vector.shape_cast %201 : vector<1x64x64xbf16> to vector<64x64xbf16>
    %c1_94 = arith.constant 1 : index
    %c0_95 = arith.constant 0 : index
    %c0_96 = arith.constant 0 : index
    %203 = vector.load %arg10[%c1_94, %c0_95, %c0_96] : memref<2x64x192xbf16, #tpu.memory_space<vmem>>, vector<1x64x192xbf16>
    %204 = vector.shape_cast %203 : vector<1x64x192xbf16> to vector<64x192xbf16>
    %c1_97 = arith.constant 1 : index
    %c0_98 = arith.constant 0 : index
    %c0_99 = arith.constant 0 : index
    %205 = vector.load %arg11[%c1_97, %c0_98, %c0_99] : memref<2x192x64xbf16, #tpu.memory_space<vmem>>, vector<1x192x64xbf16>
    %206 = vector.shape_cast %205 : vector<1x192x64xbf16> to vector<192x64xbf16>
    %c1_100 = arith.constant 1 : index
    %c0_101 = arith.constant 0 : index
    %c0_102 = arith.constant 0 : index
    %207 = vector.load %arg12[%c1_100, %c0_101, %c0_102] : memref<2x64x192xbf16, #tpu.memory_space<vmem>>, vector<1x64x192xbf16>
    %208 = vector.shape_cast %207 : vector<1x64x192xbf16> to vector<64x192xbf16>
    %209 = arith.mulf %190, %190 : vector<16x64xf32>
    %cst_103 = arith.constant dense<0.000000e+00> : vector<16xf32>
    %210 = vector.multi_reduction <add>, %209, %cst_103 [1] : vector<16x64xf32> to vector<16xf32>
    %211 = vector.shape_cast %210 : vector<16xf32> to vector<16x1xf32>
    %cst_104 = arith.constant 6.400000e+01 : f32
    %212 = vector.broadcast %cst_104 : f32 to vector<16x1xf32>
    %213 = arith.divf %211, %212 : vector<16x1xf32>
    %cst_105 = arith.constant 9.99999974E-6 : f32
    %214 = vector.broadcast %cst_105 : f32 to vector<16x1xf32>
    %215 = arith.addf %213, %214 : vector<16x1xf32>
    %216 = math.rsqrt %215 : vector<16x1xf32>
    %217 = vector.broadcast %216 : vector<16x1xf32> to vector<16x64xf32>
    %218 = arith.mulf %190, %217 : vector<16x64xf32>
    %219 = vector.broadcast %192 : vector<1x64xf32> to vector<16x64xf32>
    %220 = arith.mulf %218, %219 : vector<16x64xf32>
    %221 = arith.truncf %220 : vector<16x64xf32> to vector<16x64xbf16>
    %cst_106 = arith.constant dense<0.000000e+00> : vector<16x64xf32>
    %222 = tpu.matmul %221, %196, %cst_106 {dimension_numbers = #tpu.dot_dimension_numbers<[1], [0], [0], [1], [0, 0, 1, 1], [], []>} : vector<16x64xbf16>, vector<64x64xbf16>, vector<16x64xf32> -> vector<16x64xf32>
    %cst_107 = arith.constant dense<0.000000e+00> : vector<16x64xf32>
    %223 = tpu.matmul %221, %198, %cst_107 {dimension_numbers = #tpu.dot_dimension_numbers<[1], [0], [0], [1], [0, 0, 1, 1], [], []>} : vector<16x64xbf16>, vector<64x64xbf16>, vector<16x64xf32> -> vector<16x64xf32>
    %cst_108 = arith.constant dense<0.000000e+00> : vector<16x64xf32>
    %224 = tpu.matmul %221, %200, %cst_108 {dimension_numbers = #tpu.dot_dimension_numbers<[1], [0], [0], [1], [0, 0, 1, 1], [], []>} : vector<16x64xbf16>, vector<64x64xbf16>, vector<16x64xf32> -> vector<16x64xf32>
    %225 = arith.mulf %222, %1 : vector<16x64xf32>
    %cst_109 = arith.constant dense<0.000000e+00> : vector<16x64xf32>
    %226 = tpu.matmul %222, %3, %cst_109 {dimension_numbers = #tpu.dot_dimension_numbers<[1], [0], [0], [1], [0, 0, 1, 1], [], []>} : vector<16x64xf32>, vector<64x64xf32>, vector<16x64xf32> -> vector<16x64xf32>
    %227 = arith.mulf %226, %2 : vector<16x64xf32>
    %228 = arith.addf %225, %227 : vector<16x64xf32>
    %229 = arith.mulf %223, %1 : vector<16x64xf32>
    %cst_110 = arith.constant dense<0.000000e+00> : vector<16x64xf32>
    %230 = tpu.matmul %223, %3, %cst_110 {dimension_numbers = #tpu.dot_dimension_numbers<[1], [0], [0], [1], [0, 0, 1, 1], [], []>} : vector<16x64xf32>, vector<64x64xf32>, vector<16x64xf32> -> vector<16x64xf32>
    %231 = arith.mulf %230, %2 : vector<16x64xf32>
    %232 = arith.addf %229, %231 : vector<16x64xf32>
    %233 = vector.shape_cast %228 : vector<16x64xf32> to vector<2x8x64xf32>
    %234 = arith.truncf %233 : vector<2x8x64xf32> to vector<2x8x64xbf16>
    %235 = vector.shape_cast %232 : vector<16x64xf32> to vector<2x8x64xf32>
    %236 = arith.truncf %235 : vector<2x8x64xf32> to vector<2x8x64xbf16>
    %237 = vector.shape_cast %224 : vector<16x64xf32> to vector<2x8x64xf32>
    %238 = arith.truncf %237 : vector<2x8x64xf32> to vector<2x8x64xbf16>
    %cst_111 = arith.constant 0.000000e+00 : f32
    %239 = vector.broadcast %cst_111 : f32 to vector<16x64xf32>
    %240 = vector.extract_strided_slice %234 {offsets = [0, 0, 0], sizes = [2, 8, 16], strides = [1, 1, 1]} : vector<2x8x64xbf16> to vector<2x8x16xbf16>
    %241 = vector.extract_strided_slice %236 {offsets = [0, 0, 0], sizes = [2, 8, 16], strides = [1, 1, 1]} : vector<2x8x64xbf16> to vector<2x8x16xbf16>
    %242 = vector.extract_strided_slice %238 {offsets = [0, 0, 0], sizes = [2, 8, 16], strides = [1, 1, 1]} : vector<2x8x64xbf16> to vector<2x8x16xbf16>
    "tpu.trace_start"() <{level = 10 : i32, message = "bqd,bkd->bqk"}> : () -> ()
    %cst_112 = arith.constant dense<0.000000e+00> : vector<2x8x8xf32>
    %243 = tpu.matmul %240, %241, %cst_112 {dimension_numbers = #tpu.dot_dimension_numbers<[2], [2], [1], [1], [0, 0, 0, 1, 1, 1], [0], [0]>} : vector<2x8x16xbf16>, vector<2x8x16xbf16>, vector<2x8x8xf32> -> vector<2x8x8xf32>
    "tpu.trace_stop"() : () -> ()
    %cst_113 = arith.constant 2.500000e-01 : f32
    %244 = vector.broadcast %cst_113 : f32 to vector<2x8x8xf32>
    %245 = arith.mulf %243, %244 : vector<2x8x8xf32>
    %cst_114 = arith.constant -1.000000e+30 : f32
    %246 = vector.shape_cast %7 : vector<1x8x8xi1> to vector<1x8x8xi1>
    %247 = vector.broadcast %246 : vector<1x8x8xi1> to vector<2x8x8xi1>
    %248 = vector.broadcast %cst_114 : f32 to vector<2x8x8xf32>
    %249 = arith.select %247, %245, %248 : vector<2x8x8xi1>, vector<2x8x8xf32>
    %cst_115 = arith.constant dense<0xFF800000> : vector<2x8xf32>
    %250 = vector.multi_reduction <maximumf>, %249, %cst_115 [2] : vector<2x8x8xf32> to vector<2x8xf32>
    %251 = vector.shape_cast %250 : vector<2x8xf32> to vector<2x8x1xf32>
    %252 = vector.broadcast %251 : vector<2x8x1xf32> to vector<2x8x8xf32>
    %253 = arith.subf %249, %252 : vector<2x8x8xf32>
    %254 = math.exp %253 : vector<2x8x8xf32>
    %cst_116 = arith.constant dense<0.000000e+00> : vector<2x8xf32>
    %255 = vector.multi_reduction <add>, %254, %cst_116 [2] : vector<2x8x8xf32> to vector<2x8xf32>
    %256 = vector.shape_cast %255 : vector<2x8xf32> to vector<2x8x1xf32>
    %257 = tpu.reciprocal %256 {approx = true} : vector<2x8x1xf32> -> vector<2x8x1xf32>
    %258 = vector.broadcast %257 : vector<2x8x1xf32> to vector<2x8x8xf32>
    %259 = arith.mulf %254, %258 : vector<2x8x8xf32>
    %260 = arith.truncf %259 : vector<2x8x8xf32> to vector<2x8x8xbf16>
    "tpu.trace_start"() <{level = 10 : i32, message = "bqk,bkd->bqd"}> : () -> ()
    %cst_117 = arith.constant dense<0.000000e+00> : vector<2x8x16xf32>
    %261 = tpu.matmul %260, %242, %cst_117 {dimension_numbers = #tpu.dot_dimension_numbers<[2], [1], [1], [2], [0, 0, 0, 1, 1, 2], [0], [0]>} : vector<2x8x8xbf16>, vector<2x8x16xbf16>, vector<2x8x16xf32> -> vector<2x8x16xf32>
    "tpu.trace_stop"() : () -> ()
    %262 = vector.shape_cast %261 : vector<2x8x16xf32> to vector<16x16xf32>
    %263 = arith.truncf %262 : vector<16x16xf32> to vector<16x16xbf16>
    %264 = vector.extract_strided_slice %202 {offsets = [0, 0], sizes = [16, 64], strides = [1, 1]} : vector<64x64xbf16> to vector<16x64xbf16>
    %cst_118 = arith.constant dense<0.000000e+00> : vector<16x64xf32>
    %265 = tpu.matmul %263, %264, %cst_118 {dimension_numbers = #tpu.dot_dimension_numbers<[1], [0], [0], [1], [0, 0, 1, 1], [], []>} : vector<16x16xbf16>, vector<16x64xbf16>, vector<16x64xf32> -> vector<16x64xf32>
    %266 = arith.addf %239, %265 : vector<16x64xf32>
    %267 = vector.extract_strided_slice %234 {offsets = [0, 0, 16], sizes = [2, 8, 16], strides = [1, 1, 1]} : vector<2x8x64xbf16> to vector<2x8x16xbf16>
    %268 = vector.extract_strided_slice %236 {offsets = [0, 0, 16], sizes = [2, 8, 16], strides = [1, 1, 1]} : vector<2x8x64xbf16> to vector<2x8x16xbf16>
    %269 = vector.extract_strided_slice %238 {offsets = [0, 0, 16], sizes = [2, 8, 16], strides = [1, 1, 1]} : vector<2x8x64xbf16> to vector<2x8x16xbf16>
    "tpu.trace_start"() <{level = 10 : i32, message = "bqd,bkd->bqk"}> : () -> ()
    %cst_119 = arith.constant dense<0.000000e+00> : vector<2x8x8xf32>
    %270 = tpu.matmul %267, %268, %cst_119 {dimension_numbers = #tpu.dot_dimension_numbers<[2], [2], [1], [1], [0, 0, 0, 1, 1, 1], [0], [0]>} : vector<2x8x16xbf16>, vector<2x8x16xbf16>, vector<2x8x8xf32> -> vector<2x8x8xf32>
    "tpu.trace_stop"() : () -> ()
    %cst_120 = arith.constant 2.500000e-01 : f32
    %271 = vector.broadcast %cst_120 : f32 to vector<2x8x8xf32>
    %272 = arith.mulf %270, %271 : vector<2x8x8xf32>
    %cst_121 = arith.constant -1.000000e+30 : f32
    %273 = vector.shape_cast %7 : vector<1x8x8xi1> to vector<1x8x8xi1>
    %274 = vector.broadcast %273 : vector<1x8x8xi1> to vector<2x8x8xi1>
    %275 = vector.broadcast %cst_121 : f32 to vector<2x8x8xf32>
    %276 = arith.select %274, %272, %275 : vector<2x8x8xi1>, vector<2x8x8xf32>
    %cst_122 = arith.constant dense<0xFF800000> : vector<2x8xf32>
    %277 = vector.multi_reduction <maximumf>, %276, %cst_122 [2] : vector<2x8x8xf32> to vector<2x8xf32>
    %278 = vector.shape_cast %277 : vector<2x8xf32> to vector<2x8x1xf32>
    %279 = vector.broadcast %278 : vector<2x8x1xf32> to vector<2x8x8xf32>
    %280 = arith.subf %276, %279 : vector<2x8x8xf32>
    %281 = math.exp %280 : vector<2x8x8xf32>
    %cst_123 = arith.constant dense<0.000000e+00> : vector<2x8xf32>
    %282 = vector.multi_reduction <add>, %281, %cst_123 [2] : vector<2x8x8xf32> to vector<2x8xf32>
    %283 = vector.shape_cast %282 : vector<2x8xf32> to vector<2x8x1xf32>
    %284 = tpu.reciprocal %283 {approx = true} : vector<2x8x1xf32> -> vector<2x8x1xf32>
    %285 = vector.broadcast %284 : vector<2x8x1xf32> to vector<2x8x8xf32>
    %286 = arith.mulf %281, %285 : vector<2x8x8xf32>
    %287 = arith.truncf %286 : vector<2x8x8xf32> to vector<2x8x8xbf16>
    "tpu.trace_start"() <{level = 10 : i32, message = "bqk,bkd->bqd"}> : () -> ()
    %cst_124 = arith.constant dense<0.000000e+00> : vector<2x8x16xf32>
    %288 = tpu.matmul %287, %269, %cst_124 {dimension_numbers = #tpu.dot_dimension_numbers<[2], [1], [1], [2], [0, 0, 0, 1, 1, 2], [0], [0]>} : vector<2x8x8xbf16>, vector<2x8x16xbf16>, vector<2x8x16xf32> -> vector<2x8x16xf32>
    "tpu.trace_stop"() : () -> ()
    %289 = vector.shape_cast %288 : vector<2x8x16xf32> to vector<16x16xf32>
    %290 = arith.truncf %289 : vector<16x16xf32> to vector<16x16xbf16>
    %291 = vector.extract_strided_slice %202 {offsets = [16, 0], sizes = [16, 64], strides = [1, 1]} : vector<64x64xbf16> to vector<16x64xbf16>
    %cst_125 = arith.constant dense<0.000000e+00> : vector<16x64xf32>
    %292 = tpu.matmul %290, %291, %cst_125 {dimension_numbers = #tpu.dot_dimension_numbers<[1], [0], [0], [1], [0, 0, 1, 1], [], []>} : vector<16x16xbf16>, vector<16x64xbf16>, vector<16x64xf32> -> vector<16x64xf32>
    %293 = arith.addf %266, %292 : vector<16x64xf32>
    %294 = vector.extract_strided_slice %234 {offsets = [0, 0, 32], sizes = [2, 8, 16], strides = [1, 1, 1]} : vector<2x8x64xbf16> to vector<2x8x16xbf16>
    %295 = vector.extract_strided_slice %236 {offsets = [0, 0, 32], sizes = [2, 8, 16], strides = [1, 1, 1]} : vector<2x8x64xbf16> to vector<2x8x16xbf16>
    %296 = vector.extract_strided_slice %238 {offsets = [0, 0, 32], sizes = [2, 8, 16], strides = [1, 1, 1]} : vector<2x8x64xbf16> to vector<2x8x16xbf16>
    "tpu.trace_start"() <{level = 10 : i32, message = "bqd,bkd->bqk"}> : () -> ()
    %cst_126 = arith.constant dense<0.000000e+00> : vector<2x8x8xf32>
    %297 = tpu.matmul %294, %295, %cst_126 {dimension_numbers = #tpu.dot_dimension_numbers<[2], [2], [1], [1], [0, 0, 0, 1, 1, 1], [0], [0]>} : vector<2x8x16xbf16>, vector<2x8x16xbf16>, vector<2x8x8xf32> -> vector<2x8x8xf32>
    "tpu.trace_stop"() : () -> ()
    %cst_127 = arith.constant 2.500000e-01 : f32
    %298 = vector.broadcast %cst_127 : f32 to vector<2x8x8xf32>
    %299 = arith.mulf %297, %298 : vector<2x8x8xf32>
    %cst_128 = arith.constant -1.000000e+30 : f32
    %300 = vector.shape_cast %7 : vector<1x8x8xi1> to vector<1x8x8xi1>
    %301 = vector.broadcast %300 : vector<1x8x8xi1> to vector<2x8x8xi1>
    %302 = vector.broadcast %cst_128 : f32 to vector<2x8x8xf32>
    %303 = arith.select %301, %299, %302 : vector<2x8x8xi1>, vector<2x8x8xf32>
    %cst_129 = arith.constant dense<0xFF800000> : vector<2x8xf32>
    %304 = vector.multi_reduction <maximumf>, %303, %cst_129 [2] : vector<2x8x8xf32> to vector<2x8xf32>
    %305 = vector.shape_cast %304 : vector<2x8xf32> to vector<2x8x1xf32>
    %306 = vector.broadcast %305 : vector<2x8x1xf32> to vector<2x8x8xf32>
    %307 = arith.subf %303, %306 : vector<2x8x8xf32>
    %308 = math.exp %307 : vector<2x8x8xf32>
    %cst_130 = arith.constant dense<0.000000e+00> : vector<2x8xf32>
    %309 = vector.multi_reduction <add>, %308, %cst_130 [2] : vector<2x8x8xf32> to vector<2x8xf32>
    %310 = vector.shape_cast %309 : vector<2x8xf32> to vector<2x8x1xf32>
    %311 = tpu.reciprocal %310 {approx = true} : vector<2x8x1xf32> -> vector<2x8x1xf32>
    %312 = vector.broadcast %311 : vector<2x8x1xf32> to vector<2x8x8xf32>
    %313 = arith.mulf %308, %312 : vector<2x8x8xf32>
    %314 = arith.truncf %313 : vector<2x8x8xf32> to vector<2x8x8xbf16>
    "tpu.trace_start"() <{level = 10 : i32, message = "bqk,bkd->bqd"}> : () -> ()
    %cst_131 = arith.constant dense<0.000000e+00> : vector<2x8x16xf32>
    %315 = tpu.matmul %314, %296, %cst_131 {dimension_numbers = #tpu.dot_dimension_numbers<[2], [1], [1], [2], [0, 0, 0, 1, 1, 2], [0], [0]>} : vector<2x8x8xbf16>, vector<2x8x16xbf16>, vector<2x8x16xf32> -> vector<2x8x16xf32>
    "tpu.trace_stop"() : () -> ()
    %316 = vector.shape_cast %315 : vector<2x8x16xf32> to vector<16x16xf32>
    %317 = arith.truncf %316 : vector<16x16xf32> to vector<16x16xbf16>
    %318 = vector.extract_strided_slice %202 {offsets = [32, 0], sizes = [16, 64], strides = [1, 1]} : vector<64x64xbf16> to vector<16x64xbf16>
    %cst_132 = arith.constant dense<0.000000e+00> : vector<16x64xf32>
    %319 = tpu.matmul %317, %318, %cst_132 {dimension_numbers = #tpu.dot_dimension_numbers<[1], [0], [0], [1], [0, 0, 1, 1], [], []>} : vector<16x16xbf16>, vector<16x64xbf16>, vector<16x64xf32> -> vector<16x64xf32>
    %320 = arith.addf %293, %319 : vector<16x64xf32>
    %321 = vector.extract_strided_slice %234 {offsets = [0, 0, 48], sizes = [2, 8, 16], strides = [1, 1, 1]} : vector<2x8x64xbf16> to vector<2x8x16xbf16>
    %322 = vector.extract_strided_slice %236 {offsets = [0, 0, 48], sizes = [2, 8, 16], strides = [1, 1, 1]} : vector<2x8x64xbf16> to vector<2x8x16xbf16>
    %323 = vector.extract_strided_slice %238 {offsets = [0, 0, 48], sizes = [2, 8, 16], strides = [1, 1, 1]} : vector<2x8x64xbf16> to vector<2x8x16xbf16>
    "tpu.trace_start"() <{level = 10 : i32, message = "bqd,bkd->bqk"}> : () -> ()
    %cst_133 = arith.constant dense<0.000000e+00> : vector<2x8x8xf32>
    %324 = tpu.matmul %321, %322, %cst_133 {dimension_numbers = #tpu.dot_dimension_numbers<[2], [2], [1], [1], [0, 0, 0, 1, 1, 1], [0], [0]>} : vector<2x8x16xbf16>, vector<2x8x16xbf16>, vector<2x8x8xf32> -> vector<2x8x8xf32>
    "tpu.trace_stop"() : () -> ()
    %cst_134 = arith.constant 2.500000e-01 : f32
    %325 = vector.broadcast %cst_134 : f32 to vector<2x8x8xf32>
    %326 = arith.mulf %324, %325 : vector<2x8x8xf32>
    %cst_135 = arith.constant -1.000000e+30 : f32
    %327 = vector.shape_cast %7 : vector<1x8x8xi1> to vector<1x8x8xi1>
    %328 = vector.broadcast %327 : vector<1x8x8xi1> to vector<2x8x8xi1>
    %329 = vector.broadcast %cst_135 : f32 to vector<2x8x8xf32>
    %330 = arith.select %328, %326, %329 : vector<2x8x8xi1>, vector<2x8x8xf32>
    %cst_136 = arith.constant dense<0xFF800000> : vector<2x8xf32>
    %331 = vector.multi_reduction <maximumf>, %330, %cst_136 [2] : vector<2x8x8xf32> to vector<2x8xf32>
    %332 = vector.shape_cast %331 : vector<2x8xf32> to vector<2x8x1xf32>
    %333 = vector.broadcast %332 : vector<2x8x1xf32> to vector<2x8x8xf32>
    %334 = arith.subf %330, %333 : vector<2x8x8xf32>
    %335 = math.exp %334 : vector<2x8x8xf32>
    %cst_137 = arith.constant dense<0.000000e+00> : vector<2x8xf32>
    %336 = vector.multi_reduction <add>, %335, %cst_137 [2] : vector<2x8x8xf32> to vector<2x8xf32>
    %337 = vector.shape_cast %336 : vector<2x8xf32> to vector<2x8x1xf32>
    %338 = tpu.reciprocal %337 {approx = true} : vector<2x8x1xf32> -> vector<2x8x1xf32>
    %339 = vector.broadcast %338 : vector<2x8x1xf32> to vector<2x8x8xf32>
    %340 = arith.mulf %335, %339 : vector<2x8x8xf32>
    %341 = arith.truncf %340 : vector<2x8x8xf32> to vector<2x8x8xbf16>
    "tpu.trace_start"() <{level = 10 : i32, message = "bqk,bkd->bqd"}> : () -> ()
    %cst_138 = arith.constant dense<0.000000e+00> : vector<2x8x16xf32>
    %342 = tpu.matmul %341, %323, %cst_138 {dimension_numbers = #tpu.dot_dimension_numbers<[2], [1], [1], [2], [0, 0, 0, 1, 1, 2], [0], [0]>} : vector<2x8x8xbf16>, vector<2x8x16xbf16>, vector<2x8x16xf32> -> vector<2x8x16xf32>
    "tpu.trace_stop"() : () -> ()
    %343 = vector.shape_cast %342 : vector<2x8x16xf32> to vector<16x16xf32>
    %344 = arith.truncf %343 : vector<16x16xf32> to vector<16x16xbf16>
    %345 = vector.extract_strided_slice %202 {offsets = [48, 0], sizes = [16, 64], strides = [1, 1]} : vector<64x64xbf16> to vector<16x64xbf16>
    %cst_139 = arith.constant dense<0.000000e+00> : vector<16x64xf32>
    %346 = tpu.matmul %344, %345, %cst_139 {dimension_numbers = #tpu.dot_dimension_numbers<[1], [0], [0], [1], [0, 0, 1, 1], [], []>} : vector<16x16xbf16>, vector<16x64xbf16>, vector<16x64xf32> -> vector<16x64xf32>
    %347 = arith.addf %320, %346 : vector<16x64xf32>
    %348 = arith.addf %190, %347 : vector<16x64xf32>
    %349 = arith.mulf %348, %348 : vector<16x64xf32>
    %cst_140 = arith.constant dense<0.000000e+00> : vector<16xf32>
    %350 = vector.multi_reduction <add>, %349, %cst_140 [1] : vector<16x64xf32> to vector<16xf32>
    %351 = vector.shape_cast %350 : vector<16xf32> to vector<16x1xf32>
    %cst_141 = arith.constant 6.400000e+01 : f32
    %352 = vector.broadcast %cst_141 : f32 to vector<16x1xf32>
    %353 = arith.divf %351, %352 : vector<16x1xf32>
    %cst_142 = arith.constant 9.99999974E-6 : f32
    %354 = vector.broadcast %cst_142 : f32 to vector<16x1xf32>
    %355 = arith.addf %353, %354 : vector<16x1xf32>
    %356 = math.rsqrt %355 : vector<16x1xf32>
    %357 = vector.broadcast %356 : vector<16x1xf32> to vector<16x64xf32>
    %358 = arith.mulf %348, %357 : vector<16x64xf32>
    %359 = vector.broadcast %194 : vector<1x64xf32> to vector<16x64xf32>
    %360 = arith.mulf %358, %359 : vector<16x64xf32>
    %361 = arith.truncf %360 : vector<16x64xf32> to vector<16x64xbf16>
    %cst_143 = arith.constant dense<0.000000e+00> : vector<16x192xf32>
    %362 = tpu.matmul %361, %204, %cst_143 {dimension_numbers = #tpu.dot_dimension_numbers<[1], [0], [0], [1], [0, 0, 1, 1], [], []>} : vector<16x64xbf16>, vector<64x192xbf16>, vector<16x192xf32> -> vector<16x192xf32>
    %cst_144 = arith.constant dense<0.000000e+00> : vector<16x192xf32>
    %363 = tpu.matmul %361, %208, %cst_144 {dimension_numbers = #tpu.dot_dimension_numbers<[1], [0], [0], [1], [0, 0, 1, 1], [], []>} : vector<16x64xbf16>, vector<64x192xbf16>, vector<16x192xf32> -> vector<16x192xf32>
    %364 = arith.negf %362 : vector<16x192xf32>
    %365 = math.exp %364 : vector<16x192xf32>
    %cst_145 = arith.constant 1.000000e+00 : f32
    %366 = vector.broadcast %cst_145 : f32 to vector<16x192xf32>
    %367 = arith.addf %366, %365 : vector<16x192xf32>
    %368 = arith.divf %366, %367 : vector<16x192xf32>
    %369 = arith.mulf %362, %368 : vector<16x192xf32>
    %370 = arith.mulf %369, %363 : vector<16x192xf32>
    %371 = arith.truncf %370 : vector<16x192xf32> to vector<16x192xbf16>
    %cst_146 = arith.constant dense<0.000000e+00> : vector<16x64xf32>
    %372 = tpu.matmul %371, %206, %cst_146 {dimension_numbers = #tpu.dot_dimension_numbers<[1], [0], [0], [1], [0, 0, 1, 1], [], []>} : vector<16x192xbf16>, vector<192x64xbf16>, vector<16x64xf32> -> vector<16x64xf32>
    %373 = arith.addf %348, %372 : vector<16x64xf32>
    %374 = vector.shape_cast %373 : vector<16x64xf32> to vector<2x8x64xf32>
    %375 = vector.extract_strided_slice %374 {offsets = [0, 7, 0], sizes = [2, 1, 64], strides = [1, 1, 1]} : vector<2x8x64xf32> to vector<2x1x64xf32>
    %376 = vector.shape_cast %375 : vector<2x1x64xf32> to vector<2x64xf32>
    %c0_147 = arith.constant 0 : index
    %c0_148 = arith.constant 0 : index
    %377 = vector.load %arg13[%c0_147, %c0_148] : memref<1x64xf32, #tpu.memory_space<vmem>>, vector<1x64xf32>
    %378 = arith.mulf %376, %376 : vector<2x64xf32>
    %cst_149 = arith.constant dense<0.000000e+00> : vector<2xf32>
    %379 = vector.multi_reduction <add>, %378, %cst_149 [1] : vector<2x64xf32> to vector<2xf32>
    %380 = vector.shape_cast %379 : vector<2xf32> to vector<2x1xf32>
    %cst_150 = arith.constant 6.400000e+01 : f32
    %381 = vector.broadcast %cst_150 : f32 to vector<2x1xf32>
    %382 = arith.divf %380, %381 : vector<2x1xf32>
    %cst_151 = arith.constant 9.99999974E-6 : f32
    %383 = vector.broadcast %cst_151 : f32 to vector<2x1xf32>
    %384 = arith.addf %382, %383 : vector<2x1xf32>
    %385 = math.rsqrt %384 : vector<2x1xf32>
    %386 = vector.broadcast %385 : vector<2x1xf32> to vector<2x64xf32>
    %387 = arith.mulf %376, %386 : vector<2x64xf32>
    %388 = vector.broadcast %377 : vector<1x64xf32> to vector<2x64xf32>
    %389 = arith.mulf %387, %388 : vector<2x64xf32>
    %390 = arith.truncf %389 : vector<2x64xf32> to vector<2x64xbf16>
    %c0_152 = arith.constant 0 : index
    %c0_153 = arith.constant 0 : index
    %391 = vector.load %arg14[%c0_152, %c0_153] : memref<64x64xbf16, #tpu.memory_space<vmem>>, vector<64x64xbf16>
    %cst_154 = arith.constant dense<0.000000e+00> : vector<2x64xf32>
    %392 = tpu.matmul %390, %391, %cst_154 {dimension_numbers = #tpu.dot_dimension_numbers<[1], [0], [0], [1], [0, 0, 1, 1], [], []>} : vector<2x64xbf16>, vector<64x64xbf16>, vector<2x64xf32> -> vector<2x64xf32>
    %393 = vector.shape_cast %392 : vector<2x64xf32> to vector<2x1x64xf32>
    %c0_155 = arith.constant 0 : index
    %c0_156 = arith.constant 0 : index
    %c0_157 = arith.constant 0 : index
    %394 = vector.load %arg15[%c0_155, %c0_156, %c0_157] : memref<2x1x64xf32, #tpu.memory_space<vmem>>, vector<2x1x64xf32>
    tpu.vector_store %arg15[%c0_155, %c0_156, %c0_157], %393 {strides = array<i32>} : memref<2x1x64xf32, #tpu.memory_space<vmem>>, vector<2x1x64xf32>,
    return
  }
}

</mosaic_0001>

<bundles_post_ra>
// kernel: tile.13
= control target key start
LH: loop header
LB: loop body
LE: loop exit
PB: predicated region body
PF: predicated region fallthrough
CT: control target
= control target key end

     0   :  { %s154_s0 = inlined_call_operand.vmem [shape: f32[8,16], index: 0, kind: input, shape index: {}]   ;;  %s155_s1 = inlined_call_operand.vmem [shape: f32[2,8,4,16], index: 1, kind: output, shape index: {}]  }
   0x1   :  { %v4_v0 = vld [vmem:[%s154_s0] ss:$0 sm:$0xff]  ;;  %v51_v1 = vld [vmem:[%s154_s0 + $0x1] ss:$0 sm:$0xff]  ;;  %v54_v2 = vld [vmem:[%s154_s0 + $0x2] ss:$0 sm:$0xff] }
   0x2   :  { %5 = vst [vmem:[%s155_s1] sm:$0xf] %v4_v0  ;;  %50 = vst [vmem:[%s155_s1 + $0x20] sm:$0xf] %v4_v0  ;;  %v57_v3 = vld [vmem:[%s154_s0 + $0x3] ss:$0 sm:$0xff] }
   0x3   :  { %52 = vst [vmem:[%s155_s1 + $0x4] sm:$0xf] %v51_v1  ;;  %53 = vst [vmem:[%s155_s1 + $0x24] sm:$0xf] %v51_v1  ;;  %v60_v4 = vld [vmem:[%s154_s0 + $0x4] ss:$0 sm:$0xff] }
   0x4   :  { %55 = vst [vmem:[%s155_s1 + $0x8] sm:$0xf] %v54_v2  ;;  %56 = vst [vmem:[%s155_s1 + $0x28] sm:$0xf] %v54_v2  ;;  %v63_v5 = vld [vmem:[%s154_s0 + $0x5] ss:$0 sm:$0xff] }
   0x5   :  { %58 = vst [vmem:[%s155_s1 + $0xc] sm:$0xf] %v57_v3  ;;  %59 = vst [vmem:[%s155_s1 + $0x2c] sm:$0xf] %v57_v3  ;;  %v66_v6 = vld [vmem:[%s154_s0 + $0x6] ss:$0 sm:$0xff] }
   0x6   :  { %61 = vst [vmem:[%s155_s1 + $0x10] sm:$0xf] %v60_v4  ;;  %62 = vst [vmem:[%s155_s1 + $0x30] sm:$0xf] %v60_v4  ;;  %v69_v7 = vld [vmem:[%s154_s0 + $0x7] ss:$0 sm:$0xff] }
   0x7   :  { %64 = vst [vmem:[%s155_s1 + $0x14] sm:$0xf] %v63_v5  ;;  %65 = vst [vmem:[%s155_s1 + $0x34] sm:$0xf] %v63_v5 }
   0x8   :  { %67 = vst [vmem:[%s155_s1 + $0x18] sm:$0xf] %v66_v6  ;;  %68 = vst [vmem:[%s155_s1 + $0x38] sm:$0xf] %v66_v6 }
   0x9   :  { %70 = vst [vmem:[%s155_s1 + $0x1c] sm:$0xf] %v69_v7  ;;  %71 = vst [vmem:[%s155_s1 + $0x3c] sm:$0xf] %v69_v7 }

// kernel: tile.14
= control target key start
LH: loop header
LB: loop body
LE: loop exit
PB: predicated region body
PF: predicated region fallthrough
CT: control target
= control target key end

     0   :  { %vm83_vm0 = vcmask 1047556   ;;  %vm85_vm1 = vcmask 130048   ;;  %s196_s9 = smov 48   ;;  %s197_s14 = smov 16   ;;  %vm104_vm2 = vcmask 523648   ;;  %vm125_vm3 = vcmask 392448   ;;  %s290_s0 = inlined_call_operand.vmem [shape: f32[2,8,4,16], index: 0, kind: input, shape index: {}]   ;;  %s291_s1 = inlined_call_operand.vmem [shape: f32[16,64], index: 1, kind: output, shape index: {}]  }
   0x1   :  { %v181_v0 = vld [vmem:[%s290_s0 + $0x1c] sm:$0xf]  ;;  %v182_v1 = vld [vmem:[%s290_s0 + $0x18] sm:$0xf]  ;;  %v183_v2 = vld [vmem:[%s290_s0 + $0x14] sm:$0xf] }
   0x2   :  { %49 = vst [vmem:[#allocation0 + $0x38] sm:$0xf] %v181_v0  ;;  %54 = vst [vmem:[#allocation0 + $0x30] sm:$0xf] %v182_v1  ;;  %v184_v3 = vld [vmem:[%s290_s0 + $0x10] sm:$0xf] }
   0x3   :  { %59 = vst [vmem:[#allocation0 + $0x28] sm:$0xf] %v183_v2  ;;  %v185_v4 = vld [vmem:[%s290_s0 + $0xc] sm:$0xf]  ;;  %v186_v5 = vld [vmem:[%s290_s0 + $0x8] sm:$0xf] }
   0x4   :  { %64 = vst [vmem:[#allocation0 + $0x20] sm:$0xf] %v184_v3  ;;  %69 = vst [vmem:[#allocation0 + $0x18] sm:$0xf] %v185_v4  ;;  %v187_v6 = vld [vmem:[%s290_s0 + $0x4] sm:$0xf] }
   0x5   :  { %74 = vst [vmem:[#allocation0 + $0x10] sm:$0xf] %v186_v5  ;;  %v79_v7 = vld [vmem:[%s290_s0] sm:$0xf]  ;;  %78 = vst [vmem:[#allocation0 + $0x8] sm:$0xf] %v187_v6 }
   0x6   :  { %80 = vst [vmem:[#allocation0] sm:$0xf] %v79_v7  ;;  %v173_v8 = vld [vmem:[%s290_s0 + $0x3c] sm:$0xf]  ;;  %v174_v9 = vld [vmem:[%s290_s0 + $0x38] sm:$0xf] }
   0x7   :  { %9 = vst [vmem:[#allocation0 + $0x78] sm:$0xf] %v173_v8  ;;  %14 = vst [vmem:[#allocation0 + $0x70] sm:$0xf] %v174_v9  ;;  %v175_v10 = vld [vmem:[%s290_s0 + $0x34] sm:$0xf] }
   0x8   :  { %v176_v11 = vld [vmem:[%s290_s0 + $0x30] sm:$0xf]  ;;  %v177_v12 = vld [vmem:[%s290_s0 + $0x2c] sm:$0xf]  ;;  %19 = vst [vmem:[#allocation0 + $0x68] sm:$0xf] %v175_v10 }
   0x9   :  { %24 = vst [vmem:[#allocation0 + $0x60] sm:$0xf] %v176_v11  ;;  %29 = vst [vmem:[#allocation0 + $0x58] sm:$0xf] %v177_v12  ;;  %v178_v13 = vld [vmem:[%s290_s0 + $0x28] sm:$0xf] }
   0xa   :  { %v179_v14 = vld [vmem:[%s290_s0 + $0x24] sm:$0xf]  ;;  %v180_v15 = vld [vmem:[%s290_s0 + $0x20] sm:$0xf]  ;;  %34 = vst [vmem:[#allocation0 + $0x50] sm:$0xf] %v178_v13 }
   0xb   :  { %39 = vst [vmem:[#allocation0 + $0x48] sm:$0xf] %v179_v14  ;;  %44 = vst [vmem:[#allocation0 + $0x40] sm:$0xf] %v180_v15  ;;  %s195_s0 = smov 32   ;;  %vm146_vm4 = vcmask 261248  }
   0xc   :  { %v120_v16 = vld [vmem:[#allocation0 + $0x2] ss:$8 sm:$0xf0]   ;;  %v99_v17 = vld [vmem:[#allocation0 + $0x3] ss:$8 sm:$0xf0]  }
   0xd   :  { %v118_v18 = vld [vmem:[#allocation0 + $0x2] ss:$8 sm:$0xf]   ;;  %v97_v19 = vld [vmem:[#allocation0 + $0x3] ss:$8 sm:$0xf]  }
   0xe   :  { %v122_v20 = vsel %vm83_vm0, %v120_v16, %v118_v18  ;;  %v101_v21 = vsel %vm83_vm0, %v99_v17, %v97_v19  ;;  %v139_v24 = vld [vmem:[#allocation0 + $0x1] ss:$8 sm:$0xf]   ;;  %v81_v32 = vld [vmem:[#allocation0] ss:$8 sm:$0xf]  }
   0xf   :  { %123 = vrot.lane.b32.xlu1 %v122_v20, %s195_s0  ;;  %102 = vrot.lane.b32.xlu0 %v101_v21, %s196_s9  ;;  %v141_v25 = vld [vmem:[#allocation0 + $0x1] ss:$8 sm:$0xf0]   ;;  %v82_v33 = vld [vmem:[#allocation0] ss:$8 sm:$0xf0]  }
  0x10   :  { %v130_v22 = vld [vmem:[#allocation0 + $0x42] ss:$8 sm:$0xf0]   ;;  %v109_v23 = vld [vmem:[#allocation0 + $0x43] ss:$8 sm:$0xf0]   ;;  %v84_v34 = vsel %vm83_vm0, %v82_v33, %v81_v32  ;;  %v143_v38 = vsel %vm83_vm0, %v141_v25, %v139_v24 }
  0x11   :  { %v151_v31 = vld [vmem:[#allocation0 + $0x41] ss:$8 sm:$0xf0]   ;;  %v90_v36 = vld [vmem:[#allocation0 + $0x40] ss:$8 sm:$0xf0]  }
  0x12   :  { %v128_v26 = vld [vmem:[#allocation0 + $0x42] ss:$8 sm:$0xf]   ;;  %v107_v27 = vld [vmem:[#allocation0 + $0x43] ss:$8 sm:$0xf]  }
  0x13   :  { %v132_v28 = vsel %vm83_vm0, %v130_v22, %v128_v26  ;;  %v111_v29 = vsel %vm83_vm0, %v109_v23, %v107_v27  ;;  %v149_v30 = vld [vmem:[#allocation0 + $0x41] ss:$8 sm:$0xf]   ;;  %v88_v35 = vld [vmem:[#allocation0 + $0x40] ss:$8 sm:$0xf]  }
  0x14   :  { %133 = vrot.lane.b32.xlu1 %v132_v28, %s195_s0  ;;  %112 = vrot.lane.b32.xlu0 %v111_v29, %s196_s9  ;;  %v153_v37 = vsel %vm83_vm0, %v151_v31, %v149_v30  ;;  %86 = vst.msk [vmem:[%s291_s1] sm:$0xff] %vm85_vm1, %v84_v34   ;;  %v92_v39 = vsel %vm83_vm0, %v90_v36, %v88_v35 }
  0x15   :  { %188 = vst.msk [vmem:[%s291_s1 + $0x8] sm:$0xff] %vm85_vm1, %v92_v39  }
  0x18   :  { %154 = vrot.lane.b32.xlu1 %v153_v37, %s197_s14  ;;  %144 = vrot.lane.b32.xlu0 %v143_v38, %s197_s14 }
  0x81   :  { %v124_v40 = vpop.permute.xlu1 %123   ;;  %v103_v41 = vpop.permute.xlu0 %102  }
  0x82   :  { %105 = vst.msk [vmem:[%s291_s1] sm:$0xff] %vm104_vm2, %v103_v41  }
  0x83   :  { %126 = vst.msk [vmem:[%s291_s1] sm:$0xff] %vm125_vm3, %v124_v40  }
  0x86   :  { %v134_v42 = vpop.permute.xlu1 %133   ;;  %v113_v43 = vpop.permute.xlu0 %112  }
  0x87   :  { %189 = vst.msk [vmem:[%s291_s1 + $0x8] sm:$0xff] %vm104_vm2, %v113_v43  }
  0x88   :  { %190 = vst.msk [vmem:[%s291_s1 + $0x8] sm:$0xff] %vm125_vm3, %v134_v42  }
  0x8a   :  { %v155_v44 = vpop.permute.xlu1 %154   ;;  %v145_v45 = vpop.permute.xlu0 %144  }
  0x8b   :  { %191 = vst.msk [vmem:[%s291_s1 + $0x8] sm:$0xff] %vm146_vm4, %v155_v44   ;;  %147 = vst.msk [vmem:[%s291_s1] sm:$0xff] %vm146_vm4, %v145_v45  }

// kernel: transformer_forward.1
= control target key start
LH: loop header
LB: loop body
LE: loop exit
PB: predicated region body
PF: predicated region fallthrough
CT: control target
= control target key end

     0   :  { %vm147_vm0 = vcmask 523264   ;;  %v5164_v8 = vmov 0.0   ;;  %vm5165_vm1 = vmmov 0   ;;  %s6232_s0 = inlined_call_operand.vmem [shape: f32[16,64], index: 0, kind: input, shape index: {}]   ;;  %s6233_s1 = inlined_call_operand.vmem [shape: f32[16,64], index: 1, kind: input, shape index: {}]   ;;  %s6234_s2 = inlined_call_operand.vmem [shape: f32[16,64], index: 2, kind: input, shape index: {}]   ;;  %s6235_s3 = inlined_call_operand.vmem [shape: f32[64,64], index: 3, kind: input, shape index: {}]   ;;  %s6236_s4 = inlined_call_operand.vmem [shape: f32[2,1,64], index: 4, kind: input, shape index: {}]   ;;  %s6237_s5 = inlined_call_operand.vmem [shape: bf16[2,64,64], index: 5, kind: input, shape index: {}]   ;;  %s6238_s6 = inlined_call_operand.vmem [shape: bf16[2,64,64], index: 6, kind: input, shape index: {}]   ;;  %s6239_s7 = inlined_call_operand.vmem [shape: bf16[2,64,64], index: 7, kind: input, shape index: {}]   ;;  %s6240_s8 = inlined_call_operand.vmem [shape: bf16[2,64,64], index: 8, kind: input, shape index: {}]   ;;  %s6241_s9 = inlined_call_operand.vmem [shape: f32[2,1,64], index: 9, kind: input, shape index: {}]   ;;  %s6242_s10 = inlined_call_operand.vmem [shape: bf16[2,64,192], index: 10, kind: input, shape index: {}]   ;;  %s6243_s11 = inlined_call_operand.vmem [shape: bf16[2,192,64], index: 11, kind: input, shape index: {}]   ;;  %s6244_s12 = inlined_call_operand.vmem [shape: bf16[2,64,192], index: 12, kind: input, shape index: {}]   ;;  %s6245_s13 = inlined_call_operand.vmem [shape: f32[1,64], index: 13, kind: input, shape index: {}]   ;;  %s6246_s14 = inlined_call_operand.vmem [shape: bf16[64,64], index: 14, kind: input, shape index: {}]   ;;  %s6247_s15 = inlined_call_operand.hbm [shape: f32[2,1,64], index: 15, kind: output, shape index: {}]  }
   0x1   :  { %v52_v0 = vld [vmem:[%s6232_s0] sm:$0xff]  ;;  %v53_v1 = vld [vmem:[%s6232_s0 + $0x8] sm:$0xff]  ;;  %v4904_v6 = vld [vmem:[%s6237_s5 + $0x18] sm:$0xff]   ;;  %4494 = vmatprep.subr.bf16.mxu1 %v5164_v8  ;;  %4518 = vmatprep.subr.bf16.mxu0 %v5164_v8 }
   0x2   :  { %v145_v2 = vmul.f32 %v52_v0, %v52_v0  ;;  %v146_v3 = vmul.f32 %v53_v1, %v53_v1  ;;  %v4905_v7 = vld [vmem:[%s6239_s7 + $0x18] sm:$0xff]   ;;  %4495 = vmatpush3.bf16.msra.mxu1 %v4904_v6  ;;  %v4906_v9 = vld [vmem:[%s6237_s5 + $0x10] sm:$0xff]   ;;  %v4908_v11 = vld [vmem:[%s6237_s5 + $0x8] sm:$0xff]   ;;  %4502 = vmatprep.mubr.msk.bf16.mxu1 %vm5165_vm1, %v5164_v8 }
   0x3   :  { %4519 = vmatpush3.bf16.msra.mxu0 %v4905_v7  ;;  %v4907_v10 = vld [vmem:[%s6239_s7 + $0x10] sm:$0xff]   ;;  %4496 = vmatprep.subr.bf16.mxu1 %v5164_v8  ;;  %v4909_v12 = vld [vmem:[%s6239_s7 + $0x8] sm:$0xff]   ;;  %v4910_v13 = vld [vmem:[%s6237_s5] sm:$0xff]  }
   0x4   :  { %v148_v4 = vsel %vm147_vm0, %v145_v2, 0.0  ;;  %v151_v5 = vsel %vm147_vm0, %v146_v3, 0.0  ;;  %4520 = vmatprep.subr.bf16.mxu0 %v5164_v8  ;;  %4526 = vmatprep.mubr.msk.bf16.mxu0 %vm5165_vm1, %v5164_v8  ;;  %v4911_v14 = vld [vmem:[%s6239_s7] sm:$0xff]  }
   0x5   :  { %149 = vadd.xlane.f32.xlu0 %v148_v4 }
   0x6   :  { %4497 = vmatpush3.bf16.msra.mxu1 %v4906_v9 }
   0x7   :  { %4521 = vmatpush3.bf16.msra.mxu0 %v4907_v10  ;;  %4498 = vmatprep.subr.bf16.mxu1 %v5164_v8 }
   0x8   :  { %4522 = vmatprep.subr.bf16.mxu0 %v5164_v8 }
   0x9   :  { %152 = vadd.xlane.f32.xlu0 %v151_v5 }
   0xa   :  { %4499 = vmatpush3.bf16.msra.mxu1 %v4908_v11 }
   0xb   :  { %4523 = vmatpush3.bf16.msra.mxu0 %v4909_v12  ;;  %4500 = vmatprep.subr.bf16.mxu1 %v5164_v8 }
   0xc   :  { %4524 = vmatprep.subr.bf16.mxu0 %v5164_v8 }
   0xe   :  { %4501 = vmatpush3.bf16.msra.mxu1 %v4910_v13 }
   0xf   :  { %4525 = vmatpush3.bf16.msra.mxu0 %v4911_v14  ;;  %4506 = vmatprep.subr.bf16.mxu1 %v5164_v8 }
  0x10   :  { %20 = vsyncpa [#allocation3], 0  ;;  %v65_v15 = vld [vmem:[%s6235_s3 + $0x38] sm:$0xff]  ;;  %v4099_v25 = vld [vmem:[%s6236_s4] ss:$0 sm:$0xff]  ;;  %vm677_vm2 = vcmask 1043456  }
  0x11   :  { %4549 = vmatprep.subr.mxu0 %v65_v15  ;;  %v4912_v29 = vld [vmem:[%s6238_s6 + $0x18] sm:$0xff]   ;;  %v4913_v31 = vld [vmem:[%s6238_s6 + $0x10] sm:$0xff]   ;;  %v63_v33 = vld [vmem:[%s6235_s3 + $0x28] sm:$0xff]  ;;  %vm550_vm3 = vcmask 130048   ;;  %vm649_vm5 = vcmask 64512   ;;  %s5166_s27 = smov 112  }
  0x12   :  { %v64_v32 = vld [vmem:[%s6235_s3 + $0x30] sm:$0xff]  ;;  %v4914_v34 = vld [vmem:[%s6238_s6 + $0x8] sm:$0xff]   ;;  %v62_v35 = vld [vmem:[%s6235_s3 + $0x20] sm:$0xff]  ;;  %s5167_s28 = smov 96   ;;  %s5168_s18 = smov 80   ;;  %vm3941_vm6 = vcmask 523271  }
  0x13   :  { %v61_v36 = vld [vmem:[%s6235_s3 + $0x18] sm:$0xff]  ;;  %v4915_v37 = vld [vmem:[%s6238_s6] sm:$0xff]   ;;  %v60_v38 = vld [vmem:[%s6235_s3 + $0x10] sm:$0xff]  ;;  %vm3945_vm7 = vcmask 516096   ;;  %vm3986_vm8 = vcmask 1041409  }
  0x14   :  { %v59_v39 = vld [vmem:[%s6235_s3 + $0x8] sm:$0xff]  ;;  %v58_v40 = vld [vmem:[%s6235_s3] sm:$0xff] }
  0x15   :  { %v54_v57 = vld [vmem:[%s6233_s1] sm:$0xff]  ;;  %v57_v62 = vld [vmem:[%s6234_s2 + $0x8] sm:$0xff] }
  0x16   :  { %v56_v58 = vld [vmem:[%s6234_s2] sm:$0xff]  ;;  %v55_v2 = vld [vmem:[%s6233_s1 + $0x8] sm:$0xff] }
  0x8e   :  { %v150_v16 = vpop.xlane.xlu0 %149 }
  0x8f   :  { %v155_v17 = vmul.f32 0.015625, %v150_v16 }
  0x91   :  { %v157_v18 = vadd.f32 1e-05, %v155_v17 }
  0x92   :  { %v153_v19 = vpop.xlane.xlu0 %152 }
  0x93   :  { %5012 = vrsqrt.f32 %v157_v18  ;;  %v156_v20 = vmul.f32 0.015625, %v153_v19 }
  0x95   :  { %v158_v21 = vadd.f32 1e-05, %v156_v20  ;;  %v66_v20 = vlaneseq }
  0x97   :  { %5014 = vrsqrt.f32 %v158_v21  ;;  %v5400_v21 = vshrl.u32 %v66_v20, 7 }
  0xa0   :  { %v5013_v22 = vpop.eup %5012 }
  0xa1   :  { %v161_v23 = vmul.f32 %v5013_v22, %v52_v0  ;;  %v69_v22 = vand.u32 127, %v66_v20 }
  0xa3   :  { %v169_v27 = vmul.f32 %v4099_v25, %v161_v23  ;;  %vm5403_vm4 = vcmp.le.s32.totalorder %v69_v22, %v5400_v21 }
  0xa4   :  { %v5015_v24 = vpop.eup %5014 }
  0xa5   :  { %v162_v26 = vmul.f32 %v5015_v24, %v53_v1 }
  0xa7   :  { %v170_v28 = vmul.f32 %v4099_v25, %v162_v26 }
  0xa9   :  { %v171_v30 = vpack.c.bf16 %v170_v28, %v169_v27 }
  0xab   :  { %4503 = vmatmul.mubr.msk.bf16.vlgmr.msra.gmra.mxu1 %vm147_vm0, %v171_v30  ;;  %4527 = vmatmul.mubr.msk.bf16.vlgmr.msra.gmra.mxu0 %vm147_vm0, %v171_v30 }
  0xac   :  { %4507 = vmatpush3.bf16.msra.mxu1 %v4912_v29  ;;  %4514 = vmatprep.mubr.msk.bf16.mxu1 %vm5165_vm1, %v5164_v8 }
  0xad   :  { %4508 = vmatprep.subr.bf16.mxu1 %v5164_v8  ;;  %4550 = vmatpush3.msra.mxu0 %v65_v15 }
  0xae   :  { %4551 = vmatprep.subr.mxu0 %v64_v32 }
  0xaf   :  { %4552 = vmatpush3.msra.mxu0 %v64_v32 }
  0xb0   :  { %4509 = vmatpush3.bf16.msra.mxu1 %v4913_v31  ;;  %4553 = vmatprep.subr.mxu0 %v63_v33 }
  0xb1   :  { %4510 = vmatprep.subr.bf16.mxu1 %v5164_v8  ;;  %4554 = vmatpush3.msra.mxu0 %v63_v33 }
  0xb2   :  { %4555 = vmatprep.subr.mxu0 %v62_v35 }
  0xb3   :  { %4556 = vmatpush3.msra.mxu0 %v62_v35 }
  0xb4   :  { %4511 = vmatpush3.bf16.msra.mxu1 %v4914_v34  ;;  %4557 = vmatprep.subr.mxu0 %v61_v36 }
  0xb5   :  { %4512 = vmatprep.subr.bf16.mxu1 %v5164_v8  ;;  %4558 = vmatpush3.msra.mxu0 %v61_v36 }
  0xb6   :  { %4559 = vmatprep.subr.mxu0 %v60_v38 }
  0xb7   :  { %4560 = vmatpush3.msra.mxu0 %v60_v38 }
  0xb8   :  { %4513 = vmatpush3.bf16.msra.mxu1 %v4915_v37  ;;  %4561 = vmatprep.subr.mxu0 %v59_v39 }
  0xb9   :  { %4530 = vmatprep.subr.mxu1 %v65_v15  ;;  %4562 = vmatpush3.msra.mxu0 %v59_v39 }
  0xba   :  { %4563 = vmatprep.subr.mxu0 %v58_v40 }
  0xbb   :  { %4515 = vmatmul.mubr.msk.bf16.vlgmr.msra.gmra.mxu1 %vm147_vm0, %v171_v30  ;;  %4564 = vmatpush3.msra.mxu0 %v58_v40 }
  0xbc   :  { %4531 = vmatpush3.msra.mxu1 %v65_v15  ;;  %4580 = vmatprep.subr.bf16.mxu0 %v5164_v8 }
  0xbd   :  { %4532 = vmatprep.subr.mxu1 %v64_v32 }
  0xbe   :  { %4533 = vmatpush3.msra.mxu1 %v64_v32 }
  0xbf   :  { %4534 = vmatprep.subr.mxu1 %v63_v33 }
  0xc0   :  { %4535 = vmatpush3.msra.mxu1 %v63_v33 }
  0xc1   :  { %4536 = vmatprep.subr.mxu1 %v62_v35 }
  0xc2   :  { %4537 = vmatpush3.msra.mxu1 %v62_v35 }
  0xc3   :  { %4538 = vmatprep.subr.mxu1 %v61_v36 }
  0xc4   :  { %4539 = vmatpush3.msra.mxu1 %v61_v36 }
  0xc5   :  { %4540 = vmatprep.subr.mxu1 %v60_v38 }
  0xc6   :  { %4541 = vmatpush3.msra.mxu1 %v60_v38 }
  0xc7   :  { %4542 = vmatprep.subr.mxu1 %v59_v39 }
  0xc8   :  { %4543 = vmatpush3.msra.mxu1 %v59_v39 }
  0xc9   :  { %4544 = vmatprep.subr.mxu1 %v58_v40 }
  0xca   :  { %4545 = vmatpush3.msra.mxu1 %v58_v40 }
  0xcb   :  { %4568 = vmatprep.subr.bf16.mxu1 %v5164_v8 }
 0x16b   :  { %v233_v41 = vpop.f32.mrf.mxu1  ;;  %v363_v42 = vpop.f32.mrf.mxu0 }
 0x16c   :  { %4546 = vmatprep.mubr.msk.f32.mxu1 %vm147_vm0, %v233_v41  ;;  %v5352_v50 = vpack.c.bf16 %v363_v42, %v363_v42  ;;  %v370_v6 = vmul.f32 %v233_v41, %v54_v57 }
 0x16d   :  { %v4504_v43 = vpop.f32.mrf.mxu1  ;;  %v4528_v44 = vpop.f32.mrf.mxu0 }
 0x16e   :  { %v679_v53 = vsel %vm677_vm2, %v5352_v50, 0 }
 0x16f   :  { %v236_v45 = vpop.f32.mrf.mxu1  ;;  %v366_v46 = vpop.f32.mrf.mxu0 }
 0x170   :  { %4547 = vmatmul.mubr.msk.f32.vlgmr.msra.gmra.mxu1 %vm147_vm0, %v236_v45  ;;  %v371_v14 = vmul.f32 %v236_v45, %v55_v2  ;;  %v5389_v17 = vpack.c.bf16 %v366_v46, %v366_v46 }
 0x171   :  { %v4505_v47 = vpop.f32.mrf.mxu1  ;;  %v4529_v48 = vpop.f32.mrf.mxu0  ;;  %4570 = vmatprep.mubr.msk.bf16.mxu1 %vm5165_vm1, %v5164_v8 }
 0x172   :  { %v725_v19 = vsel %vm677_vm2, %v5389_v17, 0 }
 0x17b   :  { %v298_v49 = vpop.f32.mrf.mxu1 }
 0x17c   :  { %4565 = vmatprep.mubr.msk.f32.mxu0 %vm147_vm0, %v298_v49  ;;  %v457_v60 = vmul.f32 %v298_v49, %v54_v57 }
 0x17d   :  { %v4516_v51 = vpop.f32.mrf.mxu1 }
 0x17f   :  { %v301_v52 = vpop.f32.mrf.mxu1 }
 0x180   :  { %4566 = vmatmul.mubr.msk.f32.vlgmr.msra.gmra.mxu0 %vm147_vm0, %v301_v52  ;;  %v458_v3 = vmul.f32 %v301_v52, %v55_v2 }
 0x181   :  { %4581 = vmatpush3.bf16.msra.mxu0 %v679_v53  ;;  %v4517_v54 = vpop.f32.mrf.mxu1  ;;  %4582 = vmatprep.mubr.msk.bf16.mxu0 %vm5165_vm1, %v5164_v8 }
 0x182   :  { %4592 = vmatprep.subr.bf16.mxu0 %v5164_v8 }
 0x230   :  { %v4548_v55 = vpop.f32.mrf.mxu1 }
 0x231   :  { %v454_v12 = vmul.f32 %v4548_v55, %v57_v62 }
 0x232   :  { %v444_v63 = vpop.f32.mrf.mxu1 }
 0x233   :  { %v453_v4 = vmul.f32 %v444_v63, %v56_v58  ;;  %v456_v16 = vadd.f32 %v454_v12, %v371_v14 }
 0x235   :  { %v455_v10 = vadd.f32 %v453_v4, %v370_v6  ;;  %v5391_v18 = vpack.c.bf16 %v456_v16, %v456_v16 }
 0x237   :  { %v5380_v13 = vpack.c.bf16 %v455_v10, %v455_v10 }
 0x240   :  { %v4567_v56 = vpop.f32.mrf.mxu0 }
 0x241   :  { %v541_v0 = vmul.f32 %v4567_v56, %v57_v62 }
 0x242   :  { %v531_v59 = vpop.f32.mrf.mxu0 }
 0x243   :  { %v540_v61 = vmul.f32 %v531_v59, %v56_v58  ;;  %v543_v7 = vadd.f32 %v541_v0, %v458_v3 }
 0x245   :  { %v542_v1 = vadd.f32 %v540_v61, %v457_v60  ;;  %v5378_v11 = vpack.c.bf16 %v543_v7, %v543_v7 }
 0x247   :  { %v5373_v5 = vpack.c.bf16 %v542_v1, %v542_v1  ;;  %v601_v15 = vsel %vm550_vm3, %v5378_v11, 0 }
 0x249   :  { %v555_v9 = vsel %vm550_vm3, %v5373_v5, 0 }
 0x24a   :  { %4569 = vmatpush3.bf16.xpose.msra.mxu1 %v555_v9 }
 0x24b   :  { %4574 = vmatprep.subr.bf16.mxu1 %v5164_v8 }
 0x251   :  { %4571 = vmatmul.mubr.msk.bf16.vlgmr.msra.gmra.mxu1 %vm550_vm3, %v5380_v13 }
 0x252   :  { %4575 = vmatpush3.bf16.xpose.msra.mxu1 %v601_v15  ;;  %4576 = vmatprep.mubr.msk.bf16.mxu1 %vm5165_vm1, %v5164_v8 }
 0x253   :  { %4586 = vmatprep.subr.bf16.mxu1 %v5164_v8 }
 0x259   :  { %4577 = vmatmul.mubr.msk.bf16.vlgmr.msra.gmra.mxu1 %vm550_vm3, %v5391_v18 }
 0x25a   :  { %4587 = vmatpush3.bf16.msra.mxu1 %v725_v19  ;;  %4588 = vmatprep.mubr.msk.bf16.mxu1 %vm5165_vm1, %v5164_v8 }
 0x25b   :  { %4598 = vmatprep.subr.bf16.mxu1 %v5164_v8 }
 0x311   :  { %v591_v23 = vpop.f32.mrf.mxu1 }
 0x312   :  { %v643_v25 = vmul.f32 0.25, %v591_v23 }
 0x313   :  { %v4572_v26 = vpop.f32.mrf.mxu1 }
 0x314   :  { %v647_v27 = vsel %vm5403_vm4, %v643_v25, -1e+30 }
 0x315   :  { %v594_v28 = vpop.f32.mrf.mxu1  ;;  %v650_v29 = vsel %vm649_vm5, %v647_v27, -inf }
 0x316   :  { %651 = vmax.xlane.f32.xlu1 %v650_v29 }
 0x317   :  { %v4573_v30 = vpop.f32.mrf.mxu1 }
 0x319   :  { %v637_v31 = vpop.f32.mrf.mxu1 }
 0x31a   :  { %v644_v32 = vmul.f32 0.25, %v637_v31 }
 0x31b   :  { %v4578_v33 = vpop.f32.mrf.mxu1 }
 0x31c   :  { %v648_v34 = vsel %vm5403_vm4, %v644_v32, -1e+30 }
 0x31d   :  { %v640_v35 = vpop.f32.mrf.mxu1  ;;  %v653_v36 = vsel %vm649_vm5, %v648_v34, -inf }
 0x31e   :  { %654 = vmax.xlane.f32.xlu1 %v653_v36 }
 0x31f   :  { %v4579_v37 = vpop.f32.mrf.mxu1 }
 0x32f   :  { %824 = vrot.lane.b32.xlu1 %v5378_v11, %s5166_s27 }
 0x39f   :  { %v652_v38 = vpop.xlane.xlu1 %651 }
 0x3a0   :  { %v656_v39 = vsub.f32 %v647_v27, %v652_v38 }
 0x3a2   :  { %v658_v40 = vmul.f32 1.442695, %v656_v39 }
 0x3a4   :  { %5016 = vpow2.f32 %v658_v40 }
 0x3a7   :  { %v655_v41 = vpop.xlane.xlu1 %654 }
 0x3a8   :  { %v657_v42 = vsub.f32 %v648_v34, %v655_v41 }
 0x3aa   :  { %v660_v43 = vmul.f32 1.442695, %v657_v42 }
 0x3ab   :  { %v825_v49 = vpop.permute.xlu1 %824 }
 0x3ac   :  { %5018 = vpow2.f32 %v660_v43  ;;  %v830_v61 = vsel %vm550_vm3, %v825_v49, 0 }
 0x3b1   :  { %v5017_v44 = vpop.eup %5016 }
 0x3b2   :  { %v662_v45 = vsel %vm649_vm5, %v5017_v44, 0.0 }
 0x3b3   :  { %663 = vadd.xlane.f32.xlu0 %v662_v45 }
 0x3b9   :  { %v5019_v46 = vpop.eup %5018 }
 0x3ba   :  { %v665_v47 = vsel %vm649_vm5, %v5019_v46, 0.0 }
 0x3bb   :  { %666 = vadd.xlane.f32.xlu1 %v665_v47 }
 0x3c9   :  { %772 = vrot.lane.b32.xlu0 %v5373_v5, %s5166_s27 }
 0x3cc   :  { %769 = vrot.lane.b32.xlu1 %v5380_v13, %s5166_s27 }
 0x3d0   :  { %821 = vrot.lane.b32.xlu1 %v5391_v18, %s5166_s27 }
 0x43c   :  { %v664_v48 = vpop.xlane.xlu0 %663 }
 0x43d   :  { %5020 = vrcp.f32 %v664_v48 }
 0x440   :  { %v773_v54 = vpop.permute.xlu0 %772 }
 0x441   :  { %v778_v56 = vsel %vm550_vm3, %v773_v54, 0 }
 0x444   :  { %v667_v51 = vpop.xlane.xlu1 %666 }
 0x445   :  { %5022 = vrcp.f32 %v667_v51 }
 0x448   :  { %v770_v60 = vpop.permute.xlu1 %769 }
 0x44a   :  { %v5021_v52 = vpop.eup %5020 }
 0x44b   :  { %v670_v53 = vmul.f32 %v5021_v52, %v5017_v44  ;;  %v4916_v52 = vld [vmem:[%s6240_s8] sm:$0xff]  }
 0x44c   :  { %v822_v62 = vpop.permute.xlu1 %821 }
 0x44d   :  { %v672_v55 = vpack.c.bf16 %v670_v53, %v670_v53 }
 0x44f   :  { %4583 = vmatmul.mubr.msk.bf16.vlgmr.msra.gmra.mxu0 %vm649_vm5, %v672_v55 }
 0x450   :  { %4593 = vmatpush3.bf16.xpose.msra.mxu0 %v778_v56  ;;  %4594 = vmatprep.mubr.msk.bf16.mxu0 %vm5165_vm1, %v5164_v8 }
 0x451   :  { %4604 = vmatprep.subr.bf16.mxu0 %v5164_v8 }
 0x452   :  { %v5023_v57 = vpop.eup %5022 }
 0x453   :  { %v671_v58 = vmul.f32 %v5023_v57, %v5019_v46 }
 0x455   :  { %v673_v59 = vpack.c.bf16 %v671_v58, %v671_v58  ;;  %v4917_v58 = vld [vmem:[%s6240_s8 + $0x8] sm:$0xff]  }
 0x457   :  { %4589 = vmatmul.mubr.msk.bf16.vlgmr.msra.gmra.mxu1 %vm649_vm5, %v673_v59  ;;  %4595 = vmatmul.mubr.msk.bf16.vlgmr.msra.gmra.mxu0 %vm550_vm3, %v770_v60 }
 0x458   :  { %4599 = vmatpush3.bf16.xpose.msra.mxu1 %v830_v61  ;;  %4600 = vmatprep.mubr.msk.bf16.mxu1 %vm5165_vm1, %v5164_v8 }
 0x459   :  { %4610 = vmatprep.subr.bf16.mxu1 %v5164_v8  ;;  %4606 = vmatprep.mubr.msk.bf16.mxu0 %vm5165_vm1, %v5164_v8 }
 0x45f   :  { %4601 = vmatmul.mubr.msk.bf16.vlgmr.msra.gmra.mxu1 %vm550_vm3, %v822_v62 }
 0x460   :  { %4612 = vmatprep.mubr.msk.bf16.mxu1 %vm5165_vm1, %v5164_v8 }
 0x50f   :  { %v5439_v63 = vpop.f32.mrf.mxu0 }
 0x511   :  { %v4584_v0 = vpop.f32.mrf.mxu0 }
 0x513   :  { %v718_v1 = vpop.f32.mrf.mxu0 }
 0x515   :  { %v4585_v2 = vpop.f32.mrf.mxu0 }
 0x517   :  { %v5441_v3 = vpop.f32.mrf.mxu1  ;;  %v814_v4 = vpop.f32.mrf.mxu0 }
 0x518   :  { %v767_v6 = vpack.c.bf16 %v5441_v3, %v5439_v63  ;;  %v872_v7 = vmul.f32 0.25, %v814_v4 }
 0x519   :  { %v4590_v9 = vpop.f32.mrf.mxu1  ;;  %v4596_v10 = vpop.f32.mrf.mxu0 }
 0x51a   :  { %v874_v12 = vsel %vm5403_vm4, %v872_v7, -1e+30 }
 0x51b   :  { %v764_v14 = vpop.f32.mrf.mxu1  ;;  %v817_v15 = vpop.f32.mrf.mxu0  ;;  %v876_v16 = vsel %vm649_vm5, %v874_v12, -inf }
 0x51c   :  { %877 = vmax.xlane.f32.xlu0 %v876_v16 }
 0x51d   :  { %v4591_v19 = vpop.f32.mrf.mxu1  ;;  %v4597_v20 = vpop.f32.mrf.mxu0 }
 0x51f   :  { %v866_v22 = vpop.f32.mrf.mxu1 }
 0x520   :  { %v873_v23 = vmul.f32 0.25, %v866_v22 }
 0x521   :  { %v4602_v25 = vpop.f32.mrf.mxu1 }
 0x522   :  { %v875_v26 = vsel %vm5403_vm4, %v873_v23, -1e+30 }
 0x523   :  { %v869_v27 = vpop.f32.mrf.mxu1  ;;  %v879_v28 = vsel %vm649_vm5, %v875_v26, -inf }
 0x524   :  { %880 = vmax.xlane.f32.xlu1 %v879_v28 }
 0x525   :  { %v4603_v29 = vpop.f32.mrf.mxu1 }
 0x535   :  { %950 = vrot.lane.b32.xlu1 %v5389_v17, %s5166_s27 }
 0x539   :  { %1101 = vrot.lane.b32.xlu1 %v5373_v5, %s5167_s28 }
 0x53d   :  { %1151 = vrot.lane.b32.xlu1 %v5378_v11, %s5167_s28 }
 0x541   :  { %1149 = vrot.lane.b32.xlu1 %v5391_v18, %s5167_s28 }
 0x5a5   :  { %v878_v30 = vpop.xlane.xlu0 %877 }
 0x5a6   :  { %v882_v31 = vsub.f32 %v874_v12, %v878_v30 }
 0x5a8   :  { %v884_v32 = vmul.f32 1.442695, %v882_v31 }
 0x5aa   :  { %5024 = vpow2.f32 %v884_v32 }
 0x5ad   :  { %v881_v33 = vpop.xlane.xlu1 %880 }
 0x5ae   :  { %v883_v34 = vsub.f32 %v875_v26, %v881_v33 }
 0x5b0   :  { %v886_v35 = vmul.f32 1.442695, %v883_v34 }
 0x5b1   :  { %v951_v36 = vpop.permute.xlu1 %950 }
 0x5b2   :  { %5026 = vpow2.f32 %v886_v35  ;;  %v956_v37 = vsel %vm677_vm2, %v951_v36, 0 }
 0x5b3   :  { %4611 = vmatpush3.bf16.msra.mxu1 %v956_v37 }
 0x5b4   :  { %4622 = vmatprep.subr.bf16.mxu1 %v5164_v8 }
 0x5b5   :  { %v1102_v54 = vpop.permute.xlu1 %1101 }
 0x5b6   :  { %v1107_v2 = vsel %vm550_vm3, %v1102_v54, 0 }
 0x5b7   :  { %v5025_v38 = vpop.eup %5024 }
 0x5b8   :  { %v888_v39 = vsel %vm649_vm5, %v5025_v38, 0.0 }
 0x5b9   :  { %889 = vadd.xlane.f32.xlu0 %v888_v39  ;;  %v1152_v55 = vpop.permute.xlu1 %1151 }
 0x5ba   :  { %v1157_v56 = vsel %vm550_vm3, %v1152_v55, 0 }
 0x5bd   :  { %v1150_v57 = vpop.permute.xlu1 %1149 }
 0x5bf   :  { %v5027_v40 = vpop.eup %5026 }
 0x5c0   :  { %v891_v41 = vsel %vm649_vm5, %v5027_v40, 0.0 }
 0x5c1   :  { %892 = vadd.xlane.f32.xlu0 %v891_v41 }
 0x5d7   :  { %901 = vrot.lane.b32.xlu0 %v5352_v50, %s5166_s27 }
 0x5db   :  { %1099 = vrot.lane.b32.xlu0 %v5380_v13, %s5167_s28 }
 0x642   :  { %v890_v42 = vpop.xlane.xlu0 %889 }
 0x643   :  { %5028 = vrcp.f32 %v890_v42 }
 0x64a   :  { %v893_v43 = vpop.xlane.xlu0 %892 }
 0x64b   :  { %5030 = vrcp.f32 %v893_v43 }
 0x64e   :  { %v902_v44 = vpop.permute.xlu0 %901 }
 0x64f   :  { %v907_v45 = vsel %vm677_vm2, %v902_v44, 0 }
 0x650   :  { %v5029_v46 = vpop.eup %5028  ;;  %4605 = vmatpush3.bf16.msra.mxu0 %v907_v45 }
 0x651   :  { %v896_v47 = vmul.f32 %v5029_v46, %v5025_v38  ;;  %4616 = vmatprep.subr.bf16.mxu0 %v5164_v8 }
 0x652   :  { %v1100_v7 = vpop.permute.xlu0 %1099 }
 0x653   :  { %v898_v48 = vpack.c.bf16 %v896_v47, %v896_v47 }
 0x655   :  { %4607 = vmatmul.mubr.msk.bf16.vlgmr.msra.gmra.mxu0 %vm649_vm5, %v898_v48 }
 0x656   :  { %4618 = vmatprep.mubr.msk.bf16.mxu0 %vm5165_vm1, %v5164_v8  ;;  %4617 = vmatpush3.bf16.msra.mxu0 %v4917_v58 }
 0x657   :  { %4628 = vmatprep.subr.bf16.mxu0 %v5164_v8 }
 0x658   :  { %v5031_v49 = vpop.eup %5030 }
 0x659   :  { %v897_v51 = vmul.f32 %v5031_v49, %v5027_v40 }
 0x65b   :  { %v899_v53 = vpack.c.bf16 %v897_v51, %v897_v51 }
 0x65d   :  { %4613 = vmatmul.mubr.msk.bf16.vlgmr.msra.gmra.mxu1 %vm649_vm5, %v899_v53 }
 0x65e   :  { %4623 = vmatpush3.bf16.msra.mxu1 %v4916_v52  ;;  %4624 = vmatprep.mubr.msk.bf16.mxu1 %vm5165_vm1, %v5164_v8 }
 0x65f   :  { %4634 = vmatprep.subr.bf16.mxu1 %v5164_v8 }
 0x665   :  { %4625 = vmatmul.mubr.msk.bf16.vlgmr.msra.gmra.mxu1 %vm550_vm3, %v767_v6 }
 0x666   :  { %4635 = vmatpush3.bf16.xpose.msra.mxu1 %v1157_v56  ;;  %4636 = vmatprep.mubr.msk.bf16.mxu1 %vm5165_vm1, %v5164_v8 }
 0x667   :  { %4646 = vmatprep.subr.bf16.mxu1 %v5164_v8 }
 0x66d   :  { %4637 = vmatmul.mubr.msk.bf16.vlgmr.msra.gmra.mxu1 %vm550_vm3, %v1150_v57 }
 0x66e   :  { %4648 = vmatprep.mubr.msk.bf16.mxu1 %vm5165_vm1, %v5164_v8 }
 0x715   :  { %v943_v59 = vpop.f32.mrf.mxu0 }
 0x717   :  { %v4608_v60 = vpop.f32.mrf.mxu0 }
 0x719   :  { %v946_v61 = vpop.f32.mrf.mxu0 }
 0x71b   :  { %v4609_v62 = vpop.f32.mrf.mxu0 }
 0x71c   :  { %v4918_v62 = vld [vmem:[%s6240_s8 + $0x10] sm:$0xff]  }
 0x71d   :  { %v992_v63 = vpop.f32.mrf.mxu1 }
 0x71e   :  { %v998_v0 = vpack.c.bf16 %v992_v63, %v943_v59 }
 0x71f   :  { %v4614_v1 = vpop.f32.mrf.mxu1 }
 0x720   :  { %4619 = vmatmul.mubr.msk.bf16.vlgmr.msra.gmra.mxu0 %vm550_vm3, %v998_v0 }
 0x721   :  { %4629 = vmatpush3.bf16.xpose.msra.mxu0 %v1107_v2  ;;  %v995_v3 = vpop.f32.mrf.mxu1  ;;  %4630 = vmatprep.mubr.msk.bf16.mxu0 %vm5165_vm1, %v5164_v8 }
 0x722   :  { %4640 = vmatprep.subr.bf16.mxu0 %v5164_v8 }
 0x723   :  { %v4615_v4 = vpop.f32.mrf.mxu1 }
 0x725   :  { %v5499_v6 = vpop.f32.mrf.mxu1 }
 0x727   :  { %v4626_v9 = vpop.f32.mrf.mxu1 }
 0x728   :  { %4631 = vmatmul.mubr.msk.bf16.vlgmr.msra.gmra.mxu0 %vm550_vm3, %v1100_v7 }
 0x729   :  { %v5502_v10 = vpop.f32.mrf.mxu1  ;;  %4642 = vmatprep.mubr.msk.bf16.mxu0 %vm5165_vm1, %v5164_v8 }
 0x72b   :  { %v4627_v12 = vpop.f32.mrf.mxu1 }
 0x72d   :  { %v1193_v14 = vpop.f32.mrf.mxu1 }
 0x72e   :  { %v1200_v15 = vmul.f32 0.25, %v1193_v14 }
 0x72f   :  { %v4638_v16 = vpop.f32.mrf.mxu1 }
 0x730   :  { %v1202_v19 = vsel %vm5403_vm4, %v1200_v15, -1e+30 }
 0x731   :  { %v1196_v20 = vpop.f32.mrf.mxu1  ;;  %v1206_v22 = vsel %vm649_vm5, %v1202_v19, -inf }
 0x732   :  { %1207 = vmax.xlane.f32.xlu1 %v1206_v22 }
 0x733   :  { %v4639_v23 = vpop.f32.mrf.mxu1 }
 0x743   :  { %1275 = vrot.lane.b32.xlu1 %v5389_v17, %s5167_s28 }
 0x747   :  { %1378 = vrot.lane.b32.xlu1 %v5373_v5, %s5168_s18 }
 0x74b   :  { %1428 = vrot.lane.b32.xlu1 %v5378_v11, %s5168_s18 }
 0x74f   :  { %1426 = vrot.lane.b32.xlu1 %v5391_v18, %s5168_s18 }
 0x7bb   :  { %v1208_v25 = vpop.xlane.xlu1 %1207 }
 0x7bc   :  { %v1210_v28 = vsub.f32 %v1202_v19, %v1208_v25 }
 0x7be   :  { %v1213_v29 = vmul.f32 1.442695, %v1210_v28 }
 0x7bf   :  { %v1276_v26 = vpop.permute.xlu1 %1275 }
 0x7c0   :  { %v1281_v27 = vsel %vm677_vm2, %v1276_v26, 0  ;;  %5032 = vpow2.f32 %v1213_v29 }
 0x7c1   :  { %4647 = vmatpush3.bf16.msra.mxu1 %v1281_v27 }
 0x7c2   :  { %4658 = vmatprep.subr.bf16.mxu1 %v5164_v8 }
 0x7c3   :  { %v1379_v48 = vpop.permute.xlu1 %1378 }
 0x7c4   :  { %v1384_v51 = vsel %vm550_vm3, %v1379_v48, 0 }
 0x7c7   :  { %v1429_v9 = vpop.permute.xlu1 %1428 }
 0x7c8   :  { %v1434_v16 = vsel %vm550_vm3, %v1429_v9, 0 }
 0x7cb   :  { %v1427_v22 = vpop.permute.xlu1 %1426 }
 0x7cd   :  { %v5033_v37 = vpop.eup %5032 }
 0x7ce   :  { %v1218_v39 = vsel %vm649_vm5, %v5033_v37, 0.0 }
 0x7e0   :  { %v5519_v30 = vpop.f32.mrf.mxu0 }
 0x7e1   :  { %v1093_v29 = vadd.f32 %v5499_v6, %v5519_v30 }
 0x7e2   :  { %v4620_v31 = vpop.f32.mrf.mxu0 }
 0x7e4   :  { %v5521_v5 = vpop.f32.mrf.mxu0 }
 0x7e6   :  { %v4621_v32 = vpop.f32.mrf.mxu0 }
 0x7e8   :  { %v1143_v11 = vpop.f32.mrf.mxu0 }
 0x7e9   :  { %v1199_v33 = vmul.f32 0.25, %v1143_v11 }
 0x7ea   :  { %v4632_v34 = vpop.f32.mrf.mxu0 }
 0x7eb   :  { %v1201_v18 = vsel %vm5403_vm4, %v1199_v33, -1e+30  ;;  %v1096_v33 = vadd.f32 %v5502_v10, %v5521_v5 }
 0x7ec   :  { %v1146_v35 = vpop.f32.mrf.mxu0  ;;  %v1203_v36 = vsel %vm649_vm5, %v1201_v18, -inf }
 0x7ed   :  { %1204 = vmax.xlane.f32.xlu0 %v1203_v36 }
 0x7ee   :  { %v4633_v38 = vpop.f32.mrf.mxu0 }
 0x7f1   :  { %1219 = vadd.xlane.f32.xlu0 %v1218_v39 }
 0x876   :  { %v1205_v40 = vpop.xlane.xlu0 %1204 }
 0x877   :  { %v1209_v41 = vsub.f32 %v1201_v18, %v1205_v40 }
 0x879   :  { %v1211_v42 = vmul.f32 1.442695, %v1209_v41 }
 0x87a   :  { %v1220_v43 = vpop.xlane.xlu0 %1219 }
 0x87b   :  { %5034 = vpow2.f32 %v1211_v42 }
 0x87c   :  { %5036 = vrcp.f32 %v1220_v43 }
 0x888   :  { %v5035_v44 = vpop.eup %5034 }
 0x889   :  { %v5037_v45 = vpop.eup %5036  ;;  %v1215_v46 = vsel %vm649_vm5, %v5035_v44, 0.0 }
 0x88a   :  { %1216 = vadd.xlane.f32.xlu0 %v1215_v46  ;;  %v1224_v47 = vmul.f32 %v5037_v45, %v5033_v37 }
 0x88c   :  { %v1226_v49 = vpack.c.bf16 %v1224_v47, %v1224_v47 }
 0x88e   :  { %4649 = vmatmul.mubr.msk.bf16.vlgmr.msra.gmra.mxu1 %vm649_vm5, %v1226_v49 }
 0x88f   :  { %4659 = vmatpush3.bf16.xpose.msra.mxu1 %v1384_v51  ;;  %4660 = vmatprep.mubr.msk.bf16.mxu1 %vm5165_vm1, %v5164_v8 }
 0x890   :  { %4670 = vmatprep.subr.bf16.mxu1 %v5164_v8 }
 0x8a0   :  { %1227 = vrot.lane.b32.xlu0 %v5352_v50, %s5167_s28 }
 0x8a4   :  { %1376 = vrot.lane.b32.xlu0 %v5380_v13, %s5168_s18 }
 0x913   :  { %v1217_v52 = vpop.xlane.xlu0 %1216 }
 0x914   :  { %5038 = vrcp.f32 %v1217_v52 }
 0x917   :  { %v1228_v53 = vpop.permute.xlu0 %1227 }
 0x918   :  { %v1233_v54 = vsel %vm677_vm2, %v1228_v53, 0 }
 0x919   :  { %4641 = vmatpush3.bf16.msra.mxu0 %v1233_v54 }
 0x91a   :  { %4652 = vmatprep.subr.bf16.mxu0 %v5164_v8 }
 0x91b   :  { %v1377_v55 = vpop.permute.xlu0 %1376 }
 0x91c   :  { %4661 = vmatmul.mubr.msk.bf16.vlgmr.msra.gmra.mxu1 %vm550_vm3, %v1377_v55  ;;  %v4919_v55 = vld [vmem:[%s6240_s8 + $0x18] sm:$0xff]  }
 0x91d   :  { %4672 = vmatprep.mubr.msk.bf16.mxu1 %vm5165_vm1, %v5164_v8 }
 0x921   :  { %v5039_v56 = vpop.eup %5038 }
 0x922   :  { %v1223_v57 = vmul.f32 %v5039_v56, %v5035_v44 }
 0x924   :  { %v1225_v58 = vpack.c.bf16 %v1223_v57, %v1223_v57 }
 0x926   :  { %4643 = vmatmul.mubr.msk.bf16.vlgmr.msra.gmra.mxu0 %vm649_vm5, %v1225_v58 }
 0x927   :  { %4654 = vmatprep.mubr.msk.bf16.mxu0 %vm5165_vm1, %v5164_v8  ;;  %4653 = vmatpush3.bf16.msra.mxu0 %v4918_v62 }
 0x928   :  { %4664 = vmatprep.subr.bf16.mxu0 %v5164_v8 }
 0x94e   :  { %v1317_v13 = vpop.f32.mrf.mxu1 }
 0x950   :  { %v4650_v59 = vpop.f32.mrf.mxu1 }
 0x952   :  { %v1320_v60 = vpop.f32.mrf.mxu1 }
 0x954   :  { %v4651_v61 = vpop.f32.mrf.mxu1 }
 0x9dc   :  { %v1420_v63 = vpop.f32.mrf.mxu1 }
 0x9dd   :  { %v1476_v0 = vmul.f32 0.25, %v1420_v63 }
 0x9de   :  { %v4662_v1 = vpop.f32.mrf.mxu1 }
 0x9df   :  { %v1478_v2 = vsel %vm5403_vm4, %v1476_v0, -1e+30 }
 0x9e0   :  { %v1423_v3 = vpop.f32.mrf.mxu1  ;;  %v1480_v4 = vsel %vm649_vm5, %v1478_v2, -inf }
 0x9e1   :  { %1481 = vmax.xlane.f32.xlu0 %v1480_v4  ;;  %v5128_v3 = vld [vmem:[%s6232_s0] sm:$0xff] }
 0x9e2   :  { %v4663_v7 = vpop.f32.mrf.mxu1 }
 0x9e6   :  { %v1269_v12 = vpop.f32.mrf.mxu0 }
 0x9e7   :  { %v1323_v14 = vpack.c.bf16 %v1317_v13, %v1269_v12 }
 0x9e8   :  { %v4644_v15 = vpop.f32.mrf.mxu0 }
 0x9e9   :  { %4655 = vmatmul.mubr.msk.bf16.vlgmr.msra.gmra.mxu0 %vm550_vm3, %v1323_v14  ;;  %v5129_v15 = vld [vmem:[%s6232_s0 + $0x8] sm:$0xff] }
 0x9ea   :  { %4665 = vmatpush3.bf16.xpose.msra.mxu0 %v1434_v16  ;;  %v1272_v19 = vpop.f32.mrf.mxu0  ;;  %4666 = vmatprep.mubr.msk.bf16.mxu0 %vm5165_vm1, %v5164_v8 }
 0x9eb   :  { %4676 = vmatprep.subr.bf16.mxu0 %v5164_v8 }
 0x9ec   :  { %v4645_v20 = vpop.f32.mrf.mxu0 }
 0x9f1   :  { %4667 = vmatmul.mubr.msk.bf16.vlgmr.msra.gmra.mxu0 %vm550_vm3, %v1427_v22 }
 0x9f2   :  { %4678 = vmatprep.mubr.msk.bf16.mxu0 %vm5165_vm1, %v5164_v8 }
 0xa6a   :  { %v1482_v23 = vpop.xlane.xlu0 %1481 }
 0xa6b   :  { %v1486_v25 = vsub.f32 %v1478_v2, %v1482_v23  ;;  %v4922_v23 = vld [vmem:[%s6242_s10 + $0x34] ss:$8 sps:$4 sm:$0xff]  }
 0xa6d   :  { %v1488_v26 = vmul.f32 1.442695, %v1486_v25  ;;  %v4925_v25 = vld [vmem:[%s6244_s12 + $0x34] ss:$8 sps:$4 sm:$0xff]  }
 0xa6f   :  { %5040 = vpow2.f32 %v1488_v26  ;;  %v4920_v26 = vld [vmem:[%s6242_s10 + $0x30] ss:$8 sps:$4 sm:$0xff]  }
 0xa7c   :  { %v5041_v27 = vpop.eup %5040 }
 0xa7d   :  { %v1492_v28 = vsel %vm649_vm5, %v5041_v27, 0.0 }
 0xa7e   :  { %1493 = vadd.xlane.f32.xlu0 %v1492_v28  ;;  %v4928_v28 = vld [vmem:[%s6242_s10 + $0x24] ss:$8 sps:$4 sm:$0xff]  }
 0xaa9   :  { %v1367_v31 = vpop.f32.mrf.mxu0 }
 0xaaa   :  { %v1374_v32 = vadd.f32 %v1367_v31, %v1093_v29  ;;  %v4931_v29 = vld [vmem:[%s6244_s12 + $0x24] ss:$8 sps:$4 sm:$0xff]   ;;  %v4926_v31 = vld [vmem:[%s6242_s10 + $0x20] ss:$8 sps:$4 sm:$0xff]  }
 0xaab   :  { %v4656_v11 = vpop.f32.mrf.mxu0 }
 0xaac   :  { %v4934_v11 = vld [vmem:[%s6242_s10 + $0x14] ss:$8 sps:$4 sm:$0xff]  }
 0xaad   :  { %v1370_v34 = vpop.f32.mrf.mxu0 }
 0xaae   :  { %v1375_v18 = vadd.f32 %v1370_v34, %v1096_v33  ;;  %v4937_v33 = vld [vmem:[%s6244_s12 + $0x14] ss:$8 sps:$4 sm:$0xff]   ;;  %v4932_v34 = vld [vmem:[%s6242_s10 + $0x10] ss:$8 sps:$4 sm:$0xff]  }
 0xaaf   :  { %v4657_v35 = vpop.f32.mrf.mxu0 }
 0xab0   :  { %v4938_v35 = vld [vmem:[%s6242_s10] ss:$8 sps:$4 sm:$0xff]  }
 0xab1   :  { %v1470_v36 = vpop.f32.mrf.mxu0 }
 0xab2   :  { %v1477_v37 = vmul.f32 0.25, %v1470_v36  ;;  %v4940_v36 = vld [vmem:[%s6242_s10 + $0x4] ss:$8 sps:$4 sm:$0xff]  }
 0xab3   :  { %v4668_v38 = vpop.f32.mrf.mxu0 }
 0xab4   :  { %v1479_v39 = vsel %vm5403_vm4, %v1477_v37, -1e+30  ;;  %v4941_v37 = vld [vmem:[%s6244_s12] ss:$8 sps:$4 sm:$0xff]   ;;  %v4943_v38 = vld [vmem:[%s6244_s12 + $0x4] ss:$8 sps:$4 sm:$0xff]  }
 0xab5   :  { %v1473_v40 = vpop.f32.mrf.mxu0  ;;  %v1483_v41 = vsel %vm649_vm5, %v1479_v39, -inf }
 0xab6   :  { %1484 = vmax.xlane.f32.xlu1 %v1483_v41 }
 0xab7   :  { %v4669_v6 = vpop.f32.mrf.mxu0 }
 0xac7   :  { %1552 = vrot.lane.b32.xlu1 %v5389_v17, %s5168_s18 }
 0xb07   :  { %v1494_v46 = vpop.xlane.xlu0 %1493 }
 0xb3f   :  { %v1485_v30 = vpop.xlane.xlu1 %1484 }
 0xb40   :  { %v1487_v42 = vsub.f32 %v1479_v39, %v1485_v30  ;;  %v5169_v39 = vmov 0  }
 0xb42   :  { %v1490_v10 = vmul.f32 1.442695, %v1487_v42 }
 0xb43   :  { %v1553_v5 = vpop.permute.xlu1 %1552 }
 0xb44   :  { %5042 = vpow2.f32 %v1490_v10  ;;  %v1558_v43 = vsel %vm677_vm2, %v1553_v5, 0 }
 0xb45   :  { %4677 = vmatpush3.bf16.msra.mxu0 %v1558_v43  ;;  %5044 = vrcp.f32 %v1494_v46 }
 0xb46   :  { %1731 = vmatprep.subr.bf16.mxu0 %v4922_v23 }
 0xb51   :  { %v5043_v44 = vpop.eup %5042 }
 0xb52   :  { %v1495_v45 = vsel %vm649_vm5, %v5043_v44, 0.0  ;;  %v5045_v47 = vpop.eup %5044 }
 0xb53   :  { %1496 = vadd.xlane.f32.xlu0 %v1495_v45  ;;  %v1500_v17 = vmul.f32 %v5045_v47, %v5041_v27  ;;  %v4923_v27 = vld [vmem:[%s6244_s12 + $0x30] ss:$8 sps:$4 sm:$0xff]   ;;  %v4143_v45 = vld [vmem:[%s6241_s9] ss:$0 sm:$0xff] }
 0xb55   :  { %v1502_v52 = vpack.c.bf16 %v1500_v17, %v1500_v17  ;;  %v4944_v17 = vld [vmem:[%s6243_s11 + $0x38] sm:$0xff]  }
 0xb69   :  { %1504 = vrot.lane.b32.xlu0 %v5352_v50, %s5168_s18 }
 0xbdc   :  { %v1497_v48 = vpop.xlane.xlu0 %1496 }
 0xbdd   :  { %5046 = vrcp.f32 %v1497_v48 }
 0xbe0   :  { %v1505_v49 = vpop.permute.xlu0 %1504 }
 0xbe1   :  { %v1510_v51 = vsel %vm677_vm2, %v1505_v49, 0 }
 0xbe2   :  { %4671 = vmatpush3.bf16.msra.mxu1 %v1510_v51  ;;  %v4945_v51 = vld [vmem:[%s6243_s11 + $0x30] sm:$0xff]  }
 0xbe3   :  { %4682 = vmatprep.subr.bf16.mxu1 %v5164_v8 }
 0xbe5   :  { %4673 = vmatmul.mubr.msk.bf16.vlgmr.msra.gmra.mxu1 %vm649_vm5, %v1502_v52  ;;  %v4946_v52 = vld [vmem:[%s6243_s11 + $0x28] sm:$0xff]  }
 0xbe6   :  { %4684 = vmatprep.mubr.msk.bf16.mxu1 %vm5165_vm1, %v5164_v8  ;;  %4683 = vmatpush3.bf16.msra.mxu1 %v4919_v55  ;;  %v4950_v55 = vld [vmem:[%s6243_s11 + $0x8] sm:$0xff]  }
 0xbe7   :  { %1814 = vmatprep.subr.bf16.mxu1 %v4925_v25 }
 0xbea   :  { %v5047_v53 = vpop.eup %5046 }
 0xbeb   :  { %v1501_v50 = vmul.f32 %v5047_v53, %v5043_v44  ;;  %v4947_v53 = vld [vmem:[%s6243_s11 + $0x20] sm:$0xff]  }
 0xbed   :  { %v1503_v54 = vpack.c.bf16 %v1501_v50, %v1501_v50  ;;  %v4948_v50 = vld [vmem:[%s6243_s11 + $0x18] sm:$0xff]  }
 0xbef   :  { %4679 = vmatmul.mubr.msk.bf16.vlgmr.msra.gmra.mxu0 %vm649_vm5, %v1503_v54  ;;  %v4949_v54 = vld [vmem:[%s6243_s11 + $0x10] sm:$0xff]  }
 0xbf0   :  { %1732 = vmatpush1.bf16.msra.mxu0 %v4920_v26  ;;  %1755 = vmatprep.mubr.bf16.mxu0 %v5169_v39 }
 0xbf1   :  { %1733 = vmatprep.subr.bf16.mxu0 %v4928_v28 }
 0xbf4   :  { %1734 = vmatpush1.bf16.msra.mxu0 %v4926_v31 }
 0xbf5   :  { %1735 = vmatprep.subr.bf16.mxu0 %v4934_v11 }
 0xbf8   :  { %1736 = vmatpush1.bf16.msra.mxu0 %v4932_v34 }
 0xbf9   :  { %1737 = vmatprep.subr.bf16.mxu0 %v4940_v36 }
 0xbfc   :  { %1738 = vmatpush1.bf16.msra.mxu0 %v4938_v35 }
 0xbfd   :  { %1958 = vmatprep.subr.bf16.mxu0 %v5169_v39 }
 0xca5   :  { %v1546_v56 = vpop.f32.mrf.mxu1 }
 0xca7   :  { %v4674_v57 = vpop.f32.mrf.mxu1 }
 0xca8   :  { %v4952_v57 = vld [vmem:[%s6243_s11 + $0x58] sm:$0xff]  }
 0xca9   :  { %v1549_v58 = vpop.f32.mrf.mxu1 }
 0xcaa   :  { %v4953_v58 = vld [vmem:[%s6243_s11 + $0x50] sm:$0xff]  }
 0xcab   :  { %v4675_v13 = vpop.f32.mrf.mxu1 }
 0xcac   :  { %v4954_v13 = vld [vmem:[%s6243_s11 + $0x48] sm:$0xff]  }
 0xcaf   :  { %v1594_v59 = vpop.f32.mrf.mxu0 }
 0xcb0   :  { %v1600_v60 = vpack.c.bf16 %v1594_v59, %v1546_v56  ;;  %v4951_v56 = vld [vmem:[%s6243_s11] sm:$0xff]  }
 0xcb1   :  { %v4680_v61 = vpop.f32.mrf.mxu0  ;;  %v4955_v59 = vld [vmem:[%s6243_s11 + $0x40] sm:$0xff]  }
 0xcb2   :  { %4685 = vmatmul.mubr.msk.bf16.vlgmr.msra.gmra.mxu1 %vm550_vm3, %v1600_v60  ;;  %v5711_v60 = vld [vmem:[%s6235_s3 + $0x38] sm:$0xff] }
 0xcb3   :  { %v1597_v62 = vpop.f32.mrf.mxu0  ;;  %1815 = vmatpush1.bf16.msra.mxu1 %v4923_v27  ;;  %1838 = vmatprep.mubr.bf16.mxu1 %v5169_v39 }
 0xcb4   :  { %1816 = vmatprep.subr.bf16.mxu1 %v4931_v29 }
 0xcb5   :  { %v4681_v63 = vpop.f32.mrf.mxu0 }
 0xd72   :  { %v1644_v0 = vpop.f32.mrf.mxu1 }
 0xd73   :  { %v1651_v1 = vadd.f32 %v1644_v0, %v1374_v32  ;;  %v4929_v32 = vld [vmem:[%s6244_s12 + $0x20] ss:$8 sps:$4 sm:$0xff]  }
 0xd74   :  { %v4686_v2 = vpop.f32.mrf.mxu1  ;;  %1817 = vmatpush1.bf16.msra.mxu1 %v4929_v32 }
 0xd75   :  { %v5587_v4 = vadd.f32 %v5128_v3, %v1651_v1  ;;  %1818 = vmatprep.subr.bf16.mxu1 %v4937_v33 }
 0xd76   :  { %v1647_v7 = vpop.f32.mrf.mxu1 }
 0xd77   :  { %v1652_v9 = vadd.f32 %v1647_v7, %v1375_v18  ;;  %v1655_v12 = vmul.f32 %v5587_v4, %v5587_v4  ;;  %v4935_v18 = vld [vmem:[%s6244_s12 + $0x10] ss:$8 sps:$4 sm:$0xff]  }
 0xd78   :  { %v4687_v14 = vpop.f32.mrf.mxu1  ;;  %1819 = vmatpush1.bf16.msra.mxu1 %v4935_v18 }
 0xd79   :  { %v5594_v16 = vadd.f32 %v5129_v15, %v1652_v9  ;;  %v1657_v19 = vsel %vm147_vm0, %v1655_v12, 0.0  ;;  %1820 = vmatprep.subr.bf16.mxu1 %v4943_v38 }
 0xd7a   :  { %1658 = vadd.xlane.f32.xlu1 %v1657_v19 }
 0xd7b   :  { %v1656_v20 = vmul.f32 %v5594_v16, %v5594_v16 }
 0xd7c   :  { %1821 = vmatpush1.bf16.msra.mxu1 %v4941_v37 }
 0xd7d   :  { %v1660_v22 = vsel %vm147_vm0, %v1656_v20, 0.0  ;;  %4688 = vmatprep.subr.bf16.mxu1 %v5164_v8 }
 0xd7e   :  { %1661 = vadd.xlane.f32.xlu0 %v1660_v22 }
 0xe03   :  { %v1659_v40 = vpop.xlane.xlu1 %1658 }
 0xe04   :  { %v1663_v41 = vmul.f32 0.015625, %v1659_v40 }
 0xe06   :  { %v1665_v6 = vadd.f32 1e-05, %v1663_v41 }
 0xe07   :  { %v1662_v30 = vpop.xlane.xlu0 %1661 }
 0xe08   :  { %5048 = vrsqrt.f32 %v1665_v6  ;;  %v1664_v42 = vmul.f32 0.015625, %v1662_v30  ;;  %v5719_v30 = vld [vmem:[%s6235_s3 + $0x30] sm:$0xff] }
 0xe0a   :  { %v1666_v10 = vadd.f32 1e-05, %v1664_v42  ;;  %v5726_v42 = vld [vmem:[%s6235_s3 + $0x28] sm:$0xff] }
 0xe0c   :  { %5050 = vrsqrt.f32 %v1666_v10  ;;  %v5733_v10 = vld [vmem:[%s6235_s3 + $0x20] sm:$0xff] }
 0xe15   :  { %v5049_v5 = vpop.eup %5048 }
 0xe16   :  { %v1669_v43 = vmul.f32 %v5049_v5, %v5587_v4  ;;  %v5740_v5 = vld [vmem:[%s6235_s3 + $0x18] sm:$0xff] }
 0xe18   :  { %v1677_v47 = vmul.f32 %v4143_v45, %v1669_v43  ;;  %v5747_v43 = vld [vmem:[%s6235_s3 + $0x10] sm:$0xff] }
 0xe19   :  { %v5051_v44 = vpop.eup %5050 }
 0xe1a   :  { %v1670_v46 = vmul.f32 %v5051_v44, %v5594_v16  ;;  %v5754_v44 = vld [vmem:[%s6235_s3 + $0x8] sm:$0xff] }
 0xe1c   :  { %v1678_v48 = vmul.f32 %v4143_v45, %v1670_v46  ;;  %v5761_v45 = vld [vmem:[%s6235_s3] sm:$0xff] }
 0xe1e   :  { %v1679_v49 = vpack.c.bf16 %v1678_v48, %v1677_v47 }
 0xe20   :  { %4152 = vmatmul.mubr.msk.bf16.vlgmr.msra.gmra.mxu0 %vm147_vm0, %v1679_v49  ;;  %4161 = vmatmul.mubr.msk.bf16.vlgmr.msra.gmra.mxu1 %vm147_vm0, %v1679_v49 }
 0xe21   :  { %1959 = vmatpush1.bf16.msra.mxu0 %v4944_v17  ;;  %4696 = vmatprep.mubr.msk.bf16.mxu1 %vm5165_vm1, %v5164_v8 }
 0xe22   :  { %1960 = vmatprep.subr.bf16.mxu0 %v5169_v39 }
 0xe25   :  { %1961 = vmatpush1.bf16.msra.mxu0 %v4945_v51 }
 0xe26   :  { %1962 = vmatprep.subr.bf16.mxu0 %v5169_v39 }
 0xe29   :  { %1963 = vmatpush1.bf16.msra.mxu0 %v4946_v52 }
 0xe2a   :  { %1964 = vmatprep.subr.bf16.mxu0 %v5169_v39 }
 0xe2d   :  { %1965 = vmatpush1.bf16.msra.mxu0 %v4947_v53 }
 0xe2e   :  { %1966 = vmatprep.subr.bf16.mxu0 %v5169_v39 }
 0xe31   :  { %1967 = vmatpush1.bf16.msra.mxu0 %v4948_v50 }
 0xe32   :  { %1968 = vmatprep.subr.bf16.mxu0 %v5169_v39 }
 0xe35   :  { %1969 = vmatpush1.bf16.msra.mxu0 %v4949_v54 }
 0xe36   :  { %1970 = vmatprep.subr.bf16.mxu0 %v5169_v39 }
 0xe39   :  { %1971 = vmatpush1.bf16.msra.mxu0 %v4950_v55  ;;  %v4958_v55 = vld [vmem:[%s6237_s5 + $0x28] sm:$0xff]  }
 0xe3a   :  { %1972 = vmatprep.subr.bf16.mxu0 %v5169_v39 }
 0xe3d   :  { %1973 = vmatpush1.bf16.msra.mxu0 %v4951_v56  ;;  %v4959_v56 = vld [vmem:[%s6237_s5 + $0x20] sm:$0xff]  }
 0xe3e   :  { %1982 = vmatprep.subr.bf16.mxu0 %v5169_v39 }
 0xe41   :  { %1983 = vmatpush2.bf16.msra.mxu0 %v4952_v57 }
 0xe42   :  { %1984 = vmatprep.subr.bf16.mxu0 %v5169_v39 }
 0xe45   :  { %1985 = vmatpush2.bf16.msra.mxu0 %v4953_v58 }
 0xe46   :  { %1986 = vmatprep.subr.bf16.mxu0 %v5169_v39 }
 0xe49   :  { %1987 = vmatpush2.bf16.msra.mxu0 %v4954_v13 }
 0xe4a   :  { %1988 = vmatprep.subr.bf16.mxu0 %v5169_v39 }
 0xe4d   :  { %1989 = vmatpush2.bf16.msra.mxu0 %v4955_v59 }
 0xe4e   :  { %4724 = vmatprep.subr.mxu0 %v5711_v60 }
 0xee0   :  { %v1757_v61 = vpop.f32.mrf.mxu0  ;;  %v1840_v25 = vpop.f32.mrf.mxu1 }
 0xee1   :  { %v4162_v62 = vmul.f32 -1.442695, %v1757_v61 }
 0xee2   :  { %v1759_v63 = vpop.f32.mrf.mxu0  ;;  %v1842_v26 = vpop.f32.mrf.mxu1 }
 0xee3   :  { %5052 = vpow2.f32 %v4162_v62  ;;  %v4163_v0 = vmul.f32 -1.442695, %v1759_v63 }
 0xee4   :  { %v1761_v1 = vpop.f32.mrf.mxu0  ;;  %v1844_v31 = vpop.f32.mrf.mxu1 }
 0xee5   :  { %5054 = vpow2.f32 %v4163_v0  ;;  %v4164_v2 = vmul.f32 -1.442695, %v1761_v1 }
 0xee6   :  { %v1763_v3 = vpop.f32.mrf.mxu0  ;;  %v1846_v36 = vpop.f32.mrf.mxu1 }
 0xee7   :  { %5056 = vpow2.f32 %v4164_v2  ;;  %v4165_v7 = vmul.f32 -1.442695, %v1763_v3  ;;  %v4253_v2 = vld [vmem:[%s6236_s4 + $0x1] ss:$0 sm:$0xff] }
 0xee9   :  { %5058 = vpow2.f32 %v4165_v7 }
 0xef0   :  { %v5053_v9 = vpop.eup %5052 }
 0xef1   :  { %v1861_v14 = vadd.f32 1.0, %v5053_v9 }
 0xef2   :  { %v5055_v12 = vpop.eup %5054 }
 0xef3   :  { %v1862_v15 = vadd.f32 1.0, %v5055_v12  ;;  %v4960_v12 = vld [vmem:[%s6238_s6 + $0x38] sm:$0xff]  }
 0xef4   :  { %v5057_v19 = vpop.eup %5056 }
 0xef5   :  { %5060 = vrcp.f32 %v1862_v15  ;;  %v1863_v20 = vadd.f32 1.0, %v5057_v19  ;;  %v4961_v15 = vld [vmem:[%s6238_s6 + $0x30] sm:$0xff]   ;;  %v4962_v19 = vld [vmem:[%s6238_s6 + $0x28] sm:$0xff]  }
 0xef6   :  { %v5059_v22 = vpop.eup %5058  ;;  %5062 = vrcp.f32 %v1861_v14 }
 0xef7   :  { %5064 = vrcp.f32 %v1863_v20  ;;  %v1864_v23 = vadd.f32 1.0, %v5059_v22  ;;  %v4963_v20 = vld [vmem:[%s6238_s6 + $0x20] sm:$0xff]   ;;  %v4964_v22 = vld [vmem:[%s6239_s7 + $0x38] sm:$0xff]  }
 0xef9   :  { %5066 = vrcp.f32 %v1864_v23  ;;  %v4965_v23 = vld [vmem:[%s6239_s7 + $0x30] sm:$0xff]  }
 0xf02   :  { %v5061_v27 = vpop.eup %5060 }
 0xf03   :  { %v5063_v28 = vpop.eup %5062  ;;  %v1874_v32 = vmul.f32 %v5061_v27, %v1759_v63 }
 0xf04   :  { %v5065_v29 = vpop.eup %5064  ;;  %v1873_v34 = vmul.f32 %v5063_v28, %v1757_v61 }
 0xf05   :  { %v1875_v11 = vmul.f32 %v5065_v29, %v1761_v1  ;;  %v1878_v37 = vmul.f32 %v1874_v32, %v1842_v26  ;;  %v4967_v26 = vld [vmem:[%s6239_s7 + $0x20] sm:$0xff]  }
 0xf06   :  { %v5067_v33 = vpop.eup %5066  ;;  %v1877_v40 = vmul.f32 %v1873_v34, %v1840_v25  ;;  %v4966_v25 = vld [vmem:[%s6239_s7 + $0x28] sm:$0xff]  }
 0xf07   :  { %v1876_v18 = vmul.f32 %v5067_v33, %v1763_v3  ;;  %v1879_v35 = vmul.f32 %v1875_v11, %v1844_v31 }
 0xf09   :  { %v1880_v38 = vmul.f32 %v1876_v18, %v1846_v36  ;;  %v1881_v6 = vpack.c.bf16 %v1879_v35, %v1877_v40  ;;  %v5138_v40 = vld [vmem:[%s6233_s1 + $0x8] sm:$0xff] }
 0xf0b   :  { %v1882_v41 = vpack.c.bf16 %v1880_v38, %v1878_v37 }
 0xf0d   :  { %4178 = vmatprep.mubr.msk.bf16.mxu0 %vm147_vm0, %v1882_v41 }
 0xf0e   :  { %1991 = vmatmul.mubr.bf16.vlgmr.msra.gmra.mxu0 %v1881_v6  ;;  %v5139_v6 = vld [vmem:[%s6234_s2 + $0x8] sm:$0xff] }
 0xf0f   :  { %4725 = vmatpush3.msra.mxu0 %v5711_v60 }
 0xf10   :  { %4726 = vmatprep.subr.mxu0 %v5719_v30 }
 0xf11   :  { %4727 = vmatpush3.msra.mxu0 %v5719_v30 }
 0xf12   :  { %4728 = vmatprep.subr.mxu0 %v5726_v42 }
 0xf13   :  { %4729 = vmatpush3.msra.mxu0 %v5726_v42 }
 0xf14   :  { %4730 = vmatprep.subr.mxu0 %v5733_v10 }
 0xf15   :  { %4731 = vmatpush3.msra.mxu0 %v5733_v10 }
 0xf16   :  { %4732 = vmatprep.subr.mxu0 %v5740_v5 }
 0xf17   :  { %4733 = vmatpush3.msra.mxu0 %v5740_v5 }
 0xf18   :  { %4734 = vmatprep.subr.mxu0 %v5747_v43 }
 0xf19   :  { %4735 = vmatpush3.msra.mxu0 %v5747_v43 }
 0xf1a   :  { %4736 = vmatprep.subr.mxu0 %v5754_v44 }
 0xf1b   :  { %4737 = vmatpush3.msra.mxu0 %v5754_v44 }
 0xf1c   :  { %4738 = vmatprep.subr.mxu0 %v5761_v45 }
 0xf1d   :  { %4739 = vmatpush3.msra.mxu0 %v5761_v45 }
 0xf1e   :  { %4762 = vmatprep.subr.bf16.mxu0 %v5164_v8 }
 0xfce   :  { %v1992_v46 = vpop.f32.mrf.mxu0 }
 0xfcf   :  { %v5767_v47 = vadd.f32 %v1992_v46, %v5587_v4  ;;  %v4956_v4 = vld [vmem:[%s6237_s5 + $0x38] sm:$0xff]  }
 0xfd0   :  { %v1994_v48 = vpop.f32.mrf.mxu0  ;;  %4689 = vmatpush3.bf16.msra.mxu1 %v4956_v4 }
 0xfd1   :  { %v2084_v17 = vmul.f32 %v5767_v47, %v5767_v47  ;;  %4690 = vmatprep.subr.bf16.mxu1 %v5164_v8 }
 0xfd2   :  { %v1995_v49 = vpop.f32.mrf.mxu0 }
 0xfd3   :  { %v5772_v51 = vadd.f32 %v1995_v49, %v5594_v16  ;;  %v2086_v52 = vsel %vm147_vm0, %v2084_v17, 0.0  ;;  %v4957_v16 = vld [vmem:[%s6237_s5 + $0x30] sm:$0xff]  }
 0xfd4   :  { %2087 = vadd.xlane.f32.xlu0 %v2086_v52  ;;  %v1997_v53 = vpop.f32.mrf.mxu0  ;;  %4691 = vmatpush3.bf16.msra.mxu1 %v4957_v16 }
 0xfd5   :  { %v2085_v50 = vmul.f32 %v5772_v51, %v5772_v51  ;;  %4692 = vmatprep.subr.bf16.mxu1 %v5164_v8 }
 0xfd7   :  { %v2089_v54 = vsel %vm147_vm0, %v2085_v50, 0.0 }
 0xfd8   :  { %2090 = vadd.xlane.f32.xlu1 %v2089_v54  ;;  %4693 = vmatpush3.bf16.msra.mxu1 %v4958_v55 }
 0xfd9   :  { %4694 = vmatprep.subr.bf16.mxu1 %v5164_v8 }
 0xfdc   :  { %4695 = vmatpush3.bf16.msra.mxu1 %v4959_v56 }
 0xfdd   :  { %4700 = vmatprep.subr.bf16.mxu1 %v5164_v8 }
0x105d   :  { %v2088_v57 = vpop.xlane.xlu0 %2087 }
0x105e   :  { %v2092_v58 = vmul.f32 0.015625, %v2088_v57 }
0x1060   :  { %v2094_v13 = vadd.f32 1e-05, %v2092_v58 }
0x1061   :  { %v2091_v59 = vpop.xlane.xlu1 %2090 }
0x1062   :  { %5068 = vrsqrt.f32 %v2094_v13  ;;  %v2093_v61 = vmul.f32 0.015625, %v2091_v59 }
0x1064   :  { %v2095_v62 = vadd.f32 1e-05, %v2093_v61 }
0x1066   :  { %5070 = vrsqrt.f32 %v2095_v62 }
0x106f   :  { %v5069_v63 = vpop.eup %5068 }
0x1070   :  { %v2098_v0 = vmul.f32 %v5069_v63, %v5767_v47 }
0x1072   :  { %v2106_v7 = vmul.f32 %v4253_v2, %v2098_v0 }
0x1073   :  { %v5071_v1 = vpop.eup %5070 }
0x1074   :  { %v2099_v3 = vmul.f32 %v5071_v1, %v5772_v51 }
0x1076   :  { %v2107_v9 = vmul.f32 %v4253_v2, %v2099_v3 }
0x1078   :  { %v2108_v14 = vpack.c.bf16 %v2107_v9, %v2106_v7 }
0x107a   :  { %4697 = vmatmul.mubr.msk.bf16.vlgmr.msra.gmra.mxu1 %vm147_vm0, %v2108_v14 }
0x107b   :  { %4701 = vmatpush3.bf16.msra.mxu1 %v4960_v12  ;;  %4708 = vmatprep.mubr.msk.bf16.mxu1 %vm5165_vm1, %v5164_v8 }
0x107c   :  { %4702 = vmatprep.subr.bf16.mxu1 %v5164_v8 }
0x107f   :  { %4703 = vmatpush3.bf16.msra.mxu1 %v4961_v15 }
0x1080   :  { %4704 = vmatprep.subr.bf16.mxu1 %v5164_v8 }
0x1083   :  { %4705 = vmatpush3.bf16.msra.mxu1 %v4962_v19 }
0x1084   :  { %4706 = vmatprep.subr.bf16.mxu1 %v5164_v8 }
0x1087   :  { %4707 = vmatpush3.bf16.msra.mxu1 %v4963_v20 }
0x1088   :  { %4712 = vmatprep.subr.bf16.mxu1 %v5164_v8 }
0x108a   :  { %4709 = vmatmul.mubr.msk.bf16.vlgmr.msra.gmra.mxu1 %vm147_vm0, %v2108_v14 }
0x108b   :  { %4713 = vmatpush3.bf16.msra.mxu1 %v4964_v22  ;;  %4720 = vmatprep.mubr.msk.bf16.mxu1 %vm5165_vm1, %v5164_v8 }
0x108c   :  { %4714 = vmatprep.subr.bf16.mxu1 %v5164_v8 }
0x108f   :  { %4715 = vmatpush3.bf16.msra.mxu1 %v4965_v23 }
0x1090   :  { %4716 = vmatprep.subr.bf16.mxu1 %v5164_v8 }
0x1093   :  { %4717 = vmatpush3.bf16.msra.mxu1 %v4966_v25 }
0x1094   :  { %4718 = vmatprep.subr.bf16.mxu1 %v5164_v8 }
0x1097   :  { %4719 = vmatpush3.bf16.msra.mxu1 %v4967_v26 }
0x1098   :  { %4743 = vmatprep.subr.mxu1 %v5711_v60 }
0x109a   :  { %4721 = vmatmul.mubr.msk.bf16.vlgmr.msra.gmra.mxu1 %vm147_vm0, %v2108_v14 }
0x109b   :  { %4744 = vmatpush3.msra.mxu1 %v5711_v60 }
0x109c   :  { %4745 = vmatprep.subr.mxu1 %v5719_v30 }
0x109d   :  { %4746 = vmatpush3.msra.mxu1 %v5719_v30 }
0x109e   :  { %4747 = vmatprep.subr.mxu1 %v5726_v42 }
0x109f   :  { %4748 = vmatpush3.msra.mxu1 %v5726_v42 }
0x10a0   :  { %4749 = vmatprep.subr.mxu1 %v5733_v10 }
0x10a1   :  { %4750 = vmatpush3.msra.mxu1 %v5733_v10  ;;  %v5140_v10 = vld [vmem:[%s6233_s1] sm:$0xff] }
0x10a2   :  { %4751 = vmatprep.subr.mxu1 %v5740_v5 }
0x10a3   :  { %4752 = vmatpush3.msra.mxu1 %v5740_v5 }
0x10a4   :  { %4753 = vmatprep.subr.mxu1 %v5747_v43 }
0x10a5   :  { %4754 = vmatpush3.msra.mxu1 %v5747_v43 }
0x10a6   :  { %4755 = vmatprep.subr.mxu1 %v5754_v44 }
0x10a7   :  { %4756 = vmatpush3.msra.mxu1 %v5754_v44  ;;  %v5141_v44 = vld [vmem:[%s6234_s2] sm:$0xff] }
0x10a8   :  { %4757 = vmatprep.subr.mxu1 %v5761_v45 }
0x10a9   :  { %4758 = vmatpush3.msra.mxu1 %v5761_v45 }
0x10aa   :  { %4768 = vmatprep.subr.bf16.mxu1 %v5164_v8 }
0x113a   :  { %v2170_v60 = vpop.f32.mrf.mxu1 }
0x113b   :  { %4740 = vmatprep.mubr.msk.f32.mxu0 %vm147_vm0, %v2170_v60  ;;  %v2307_v4 = vmul.f32 %v5140_v10, %v2170_v60 }
0x113c   :  { %v4698_v27 = vpop.f32.mrf.mxu1 }
0x113e   :  { %v2173_v28 = vpop.f32.mrf.mxu1 }
0x113f   :  { %4741 = vmatmul.mubr.msk.f32.vlgmr.msra.gmra.mxu0 %vm147_vm0, %v2173_v28  ;;  %v2308_v52 = vmul.f32 %v5138_v40, %v2173_v28 }
0x1140   :  { %v4699_v29 = vpop.f32.mrf.mxu1  ;;  %4764 = vmatprep.mubr.msk.bf16.mxu0 %vm5165_vm1, %v5164_v8 }
0x114a   :  { %v2235_v31 = vpop.f32.mrf.mxu1 }
0x114b   :  { %4759 = vmatprep.mubr.msk.f32.mxu1 %vm147_vm0, %v2235_v31  ;;  %v2394_v5 = vmul.f32 %v5140_v10, %v2235_v31 }
0x114c   :  { %v4710_v32 = vpop.f32.mrf.mxu1 }
0x114e   :  { %v2238_v11 = vpop.f32.mrf.mxu1 }
0x114f   :  { %4760 = vmatmul.mubr.msk.f32.vlgmr.msra.gmra.mxu1 %vm147_vm0, %v2238_v11  ;;  %v2395_v41 = vmul.f32 %v5138_v40, %v2238_v11 }
0x1150   :  { %v4711_v33 = vpop.f32.mrf.mxu1  ;;  %4770 = vmatprep.mubr.msk.bf16.mxu1 %vm5165_vm1, %v5164_v8 }
0x115a   :  { %v2300_v34 = vpop.f32.mrf.mxu1 }
0x115b   :  { %v5886_v58 = vpack.c.bf16 %v2300_v34, %v2300_v34 }
0x115c   :  { %v4722_v18 = vpop.f32.mrf.mxu1 }
0x115d   :  { %v2611_v62 = vsel %vm677_vm2, %v5886_v58, 0 }
0x115e   :  { %v2303_v35 = vpop.f32.mrf.mxu1 }
0x115f   :  { %v5883_v56 = vpack.c.bf16 %v2303_v35, %v2303_v35 }
0x1160   :  { %v4723_v36 = vpop.f32.mrf.mxu1 }
0x1161   :  { %v2657_v61 = vsel %vm677_vm2, %v5883_v56, 0 }
0x11ff   :  { %v4742_v37 = vpop.f32.mrf.mxu0 }
0x1200   :  { %v2391_v48 = vmul.f32 %v5139_v6, %v4742_v37 }
0x1201   :  { %v2381_v46 = vpop.f32.mrf.mxu0 }
0x1202   :  { %v2390_v53 = vmul.f32 %v5141_v44, %v2381_v46  ;;  %v2393_v16 = vadd.f32 %v2391_v48, %v2308_v52 }
0x1204   :  { %v2392_v57 = vadd.f32 %v2390_v53, %v2307_v4  ;;  %v5888_v13 = vpack.c.bf16 %v2393_v16, %v2393_v16 }
0x1206   :  { %v5890_v59 = vpack.c.bf16 %v2392_v57, %v2392_v57 }
0x120f   :  { %v4761_v38 = vpop.f32.mrf.mxu1 }
0x1210   :  { %v2478_v30 = vmul.f32 %v5139_v6, %v4761_v38 }
0x1211   :  { %v2468_v42 = vpop.f32.mrf.mxu1 }
0x1212   :  { %v2480_v43 = vadd.f32 %v2478_v30, %v2395_v41  ;;  %v2477_v45 = vmul.f32 %v5141_v44, %v2468_v42 }
0x1214   :  { %v5874_v17 = vpack.c.bf16 %v2480_v43, %v2480_v43  ;;  %v2479_v49 = vadd.f32 %v2477_v45, %v2394_v5 }
0x1216   :  { %v5876_v50 = vpack.c.bf16 %v2479_v49, %v2479_v49  ;;  %v2537_v54 = vsel %vm550_vm3, %v5874_v17, 0 }
0x1217   :  { %4769 = vmatpush3.bf16.xpose.msra.mxu1 %v2537_v54 }
0x1218   :  { %v2491_v55 = vsel %vm550_vm3, %v5876_v50, 0  ;;  %4780 = vmatprep.subr.bf16.mxu1 %v5164_v8 }
0x1219   :  { %4763 = vmatpush3.bf16.xpose.msra.mxu0 %v2491_v55 }
0x121a   :  { %4774 = vmatprep.subr.bf16.mxu0 %v5164_v8 }
0x121e   :  { %4771 = vmatmul.mubr.msk.bf16.vlgmr.msra.gmra.mxu1 %vm550_vm3, %v5888_v13 }
0x121f   :  { %4781 = vmatpush3.bf16.msra.mxu1 %v2657_v61  ;;  %4782 = vmatprep.mubr.msk.bf16.mxu1 %vm5165_vm1, %v5164_v8 }
0x1220   :  { %4765 = vmatmul.mubr.msk.bf16.vlgmr.msra.gmra.mxu0 %vm550_vm3, %v5890_v59  ;;  %4792 = vmatprep.subr.bf16.mxu1 %v5164_v8 }
0x1221   :  { %4775 = vmatpush3.bf16.msra.mxu0 %v2611_v62  ;;  %4776 = vmatprep.mubr.msk.bf16.mxu0 %vm5165_vm1, %v5164_v8 }
0x1222   :  { %4786 = vmatprep.subr.bf16.mxu0 %v5164_v8 }
0x12de   :  { %v2573_v63 = vpop.f32.mrf.mxu1 }
0x12df   :  { %v2580_v0 = vmul.f32 0.25, %v2573_v63 }
0x12e0   :  { %v2527_v1 = vpop.f32.mrf.mxu0  ;;  %v4772_v2 = vpop.f32.mrf.mxu1 }
0x12e1   :  { %v2579_v3 = vmul.f32 0.25, %v2527_v1  ;;  %v2582_v7 = vsel %vm5403_vm4, %v2580_v0, -1e+30 }
0x12e2   :  { %v4766_v9 = vpop.f32.mrf.mxu0  ;;  %v2576_v12 = vpop.f32.mrf.mxu1  ;;  %v2586_v14 = vsel %vm649_vm5, %v2582_v7, -inf }
0x12e3   :  { %2587 = vmax.xlane.f32.xlu1 %v2586_v14  ;;  %v2581_v15 = vsel %vm5403_vm4, %v2579_v3, -1e+30 }
0x12e4   :  { %v2530_v19 = vpop.f32.mrf.mxu0  ;;  %v4773_v20 = vpop.f32.mrf.mxu1  ;;  %v2583_v22 = vsel %vm649_vm5, %v2581_v15, -inf }
0x12e5   :  { %2584 = vmax.xlane.f32.xlu0 %v2583_v22 }
0x12e6   :  { %v4767_v23 = vpop.f32.mrf.mxu0 }
0x136c   :  { %v2588_v25 = vpop.xlane.xlu1 %2587 }
0x136d   :  { %v2590_v26 = vsub.f32 %v2582_v7, %v2588_v25 }
0x136e   :  { %v2585_v60 = vpop.xlane.xlu0 %2584 }
0x136f   :  { %v2593_v27 = vmul.f32 1.442695, %v2590_v26  ;;  %v2589_v28 = vsub.f32 %v2581_v15, %v2585_v60 }
0x1371   :  { %5072 = vpow2.f32 %v2593_v27  ;;  %v2591_v29 = vmul.f32 1.442695, %v2589_v28 }
0x1373   :  { %5074 = vpow2.f32 %v2591_v29 }
0x137e   :  { %v5073_v31 = vpop.eup %5072 }
0x137f   :  { %v2598_v32 = vsel %vm649_vm5, %v5073_v31, 0.0 }
0x1380   :  { %v5075_v11 = vpop.eup %5074  ;;  %2599 = vadd.xlane.f32.xlu1 %v2598_v32 }
0x1381   :  { %v2595_v33 = vsel %vm649_vm5, %v5075_v11, 0.0 }
0x1382   :  { %2596 = vadd.xlane.f32.xlu0 %v2595_v33 }
0x1391   :  { %2756 = vrot.lane.b32.xlu1 %v5874_v17, %s5166_s27 }
0x1395   :  { %2701 = vrot.lane.b32.xlu1 %v5890_v59, %s5166_s27 }
0x1398   :  { %2704 = vrot.lane.b32.xlu0 %v5876_v50, %s5166_s27 }
0x1399   :  { %2753 = vrot.lane.b32.xlu1 %v5888_v13, %s5166_s27 }
0x1409   :  { %v2600_v34 = vpop.xlane.xlu1 %2599 }
0x140a   :  { %5076 = vrcp.f32 %v2600_v34 }
0x140b   :  { %v2597_v18 = vpop.xlane.xlu0 %2596 }
0x140c   :  { %5078 = vrcp.f32 %v2597_v18 }
0x140d   :  { %v2757_v36 = vpop.permute.xlu1 %2756 }
0x140e   :  { %v2762_v30 = vsel %vm550_vm3, %v2757_v36, 0  ;;  %v4968_v36 = vld [vmem:[%s6240_s8 + $0x20] sm:$0xff]  }
0x140f   :  { %v2705_v6 = vpop.permute.xlu0 %2704 }
0x1410   :  { %v2710_v5 = vsel %vm550_vm3, %v2705_v6, 0 }
0x1411   :  { %v2702_v10 = vpop.permute.xlu1 %2701 }
0x1415   :  { %v2754_v43 = vpop.permute.xlu1 %2753 }
0x1417   :  { %v5077_v35 = vpop.eup %5076 }
0x1418   :  { %v2604_v37 = vmul.f32 %v5077_v35, %v5073_v31 }
0x1419   :  { %v5079_v38 = vpop.eup %5078 }
0x141a   :  { %v2606_v40 = vpack.c.bf16 %v2604_v37, %v2604_v37  ;;  %v2603_v41 = vmul.f32 %v5079_v38, %v5075_v11 }
0x141c   :  { %4783 = vmatmul.mubr.msk.bf16.vlgmr.msra.gmra.mxu1 %vm649_vm5, %v2606_v40  ;;  %v2605_v42 = vpack.c.bf16 %v2603_v41, %v2603_v41 }
0x141d   :  { %4793 = vmatpush3.bf16.xpose.msra.mxu1 %v2762_v30  ;;  %4794 = vmatprep.mubr.msk.bf16.mxu1 %vm5165_vm1, %v5164_v8 }
0x141e   :  { %4777 = vmatmul.mubr.msk.bf16.vlgmr.msra.gmra.mxu0 %vm649_vm5, %v2605_v42  ;;  %4804 = vmatprep.subr.bf16.mxu1 %v5164_v8 }
0x141f   :  { %4787 = vmatpush3.bf16.xpose.msra.mxu0 %v2710_v5  ;;  %4788 = vmatprep.mubr.msk.bf16.mxu0 %vm5165_vm1, %v5164_v8  ;;  %v4969_v5 = vld [vmem:[%s6240_s8 + $0x28] sm:$0xff]  }
0x1420   :  { %4798 = vmatprep.subr.bf16.mxu0 %v5164_v8 }
0x1424   :  { %4795 = vmatmul.mubr.msk.bf16.vlgmr.msra.gmra.mxu1 %vm550_vm3, %v2754_v43 }
0x1425   :  { %4806 = vmatprep.mubr.msk.bf16.mxu1 %vm5165_vm1, %v5164_v8 }
0x1426   :  { %4789 = vmatmul.mubr.msk.bf16.vlgmr.msra.gmra.mxu0 %vm550_vm3, %v2702_v10 }
0x1427   :  { %4800 = vmatprep.mubr.msk.bf16.mxu0 %vm5165_vm1, %v5164_v8 }
0x14dc   :  { %v5938_v44 = vpop.f32.mrf.mxu1 }
0x14de   :  { %v5940_v45 = vpop.f32.mrf.mxu0  ;;  %v4784_v46 = vpop.f32.mrf.mxu1 }
0x14df   :  { %v2699_v48 = vpack.c.bf16 %v5938_v44, %v5940_v45 }
0x14e0   :  { %v4778_v49 = vpop.f32.mrf.mxu0  ;;  %v2696_v52 = vpop.f32.mrf.mxu1 }
0x14e2   :  { %v2650_v53 = vpop.f32.mrf.mxu0  ;;  %v4785_v54 = vpop.f32.mrf.mxu1 }
0x14e4   :  { %v4779_v4 = vpop.f32.mrf.mxu0  ;;  %v2798_v16 = vpop.f32.mrf.mxu1 }
0x14e5   :  { %v2805_v55 = vmul.f32 0.25, %v2798_v16 }
0x14e6   :  { %v2746_v57 = vpop.f32.mrf.mxu0  ;;  %v4796_v61 = vpop.f32.mrf.mxu1 }
0x14e7   :  { %v2804_v62 = vmul.f32 0.25, %v2746_v57  ;;  %v2807_v63 = vsel %vm5403_vm4, %v2805_v55, -1e+30 }
0x14e8   :  { %v4790_v0 = vpop.f32.mrf.mxu0  ;;  %v2801_v1 = vpop.f32.mrf.mxu1  ;;  %v2811_v2 = vsel %vm649_vm5, %v2807_v63, -inf }
0x14e9   :  { %2812 = vmax.xlane.f32.xlu1 %v2811_v2  ;;  %v2806_v3 = vsel %vm5403_vm4, %v2804_v62, -1e+30 }
0x14ea   :  { %v2749_v7 = vpop.f32.mrf.mxu0  ;;  %v4797_v9 = vpop.f32.mrf.mxu1  ;;  %v2808_v12 = vsel %vm649_vm5, %v2806_v3, -inf }
0x14eb   :  { %2809 = vmax.xlane.f32.xlu0 %v2808_v12 }
0x14ec   :  { %v4791_v14 = vpop.f32.mrf.mxu0 }
0x14fa   :  { %2882 = vrot.lane.b32.xlu1 %v5883_v56, %s5166_s27 }
0x14fe   :  { %3033 = vrot.lane.b32.xlu1 %v5876_v50, %s5167_s28 }
0x1502   :  { %3083 = vrot.lane.b32.xlu1 %v5874_v17, %s5167_s28 }
0x1506   :  { %3081 = vrot.lane.b32.xlu1 %v5888_v13, %s5167_s28 }
0x1572   :  { %v2813_v15 = vpop.xlane.xlu1 %2812 }
0x1573   :  { %v2815_v19 = vsub.f32 %v2807_v63, %v2813_v15 }
0x1574   :  { %v2810_v20 = vpop.xlane.xlu0 %2809 }
0x1575   :  { %v2818_v22 = vmul.f32 1.442695, %v2815_v19  ;;  %v2814_v23 = vsub.f32 %v2806_v3, %v2810_v20 }
0x1576   :  { %v2883_v25 = vpop.permute.xlu1 %2882 }
0x1577   :  { %5080 = vpow2.f32 %v2818_v22  ;;  %v2816_v26 = vmul.f32 1.442695, %v2814_v23  ;;  %v2888_v60 = vsel %vm677_vm2, %v2883_v25, 0 }
0x1578   :  { %4805 = vmatpush3.bf16.msra.mxu1 %v2888_v60 }
0x1579   :  { %5082 = vpow2.f32 %v2816_v26  ;;  %4816 = vmatprep.subr.bf16.mxu1 %v5164_v8 }
0x157a   :  { %v3034_v40 = vpop.permute.xlu1 %3033 }
0x157b   :  { %v3039_v53 = vsel %vm550_vm3, %v3034_v40, 0 }
0x157e   :  { %v3084_v30 = vpop.permute.xlu1 %3083 }
0x157f   :  { %v3089_v42 = vsel %vm550_vm3, %v3084_v30, 0 }
0x1582   :  { %v3082_v10 = vpop.permute.xlu1 %3081 }
0x1584   :  { %v5081_v27 = vpop.eup %5080 }
0x1585   :  { %v2823_v28 = vsel %vm649_vm5, %v5081_v27, 0.0 }
0x1586   :  { %v5083_v29 = vpop.eup %5082  ;;  %2824 = vadd.xlane.f32.xlu0 %v2823_v28 }
0x1587   :  { %v2820_v31 = vsel %vm649_vm5, %v5083_v29, 0.0 }
0x158a   :  { %2821 = vadd.xlane.f32.xlu0 %v2820_v31 }
0x15a0   :  { %2833 = vrot.lane.b32.xlu0 %v5886_v58, %s5166_s27 }
0x15a4   :  { %3031 = vrot.lane.b32.xlu0 %v5890_v59, %s5167_s28 }
0x160f   :  { %v2825_v32 = vpop.xlane.xlu0 %2824 }
0x1610   :  { %5084 = vrcp.f32 %v2825_v32 }
0x1613   :  { %v2822_v11 = vpop.xlane.xlu0 %2821 }
0x1614   :  { %5086 = vrcp.f32 %v2822_v11 }
0x1617   :  { %v2834_v33 = vpop.permute.xlu0 %2833 }
0x1618   :  { %v2839_v34 = vsel %vm677_vm2, %v2834_v33, 0 }
0x1619   :  { %4799 = vmatpush3.bf16.msra.mxu0 %v2839_v34 }
0x161a   :  { %4810 = vmatprep.subr.bf16.mxu0 %v5164_v8 }
0x161b   :  { %v3032_v61 = vpop.permute.xlu0 %3031 }
0x161d   :  { %v5085_v18 = vpop.eup %5084 }
0x161e   :  { %v2829_v35 = vmul.f32 %v5085_v18, %v5081_v27 }
0x1620   :  { %v2831_v37 = vpack.c.bf16 %v2829_v35, %v2829_v35 }
0x1621   :  { %v5087_v38 = vpop.eup %5086 }
0x1622   :  { %4807 = vmatmul.mubr.msk.bf16.vlgmr.msra.gmra.mxu1 %vm649_vm5, %v2831_v37  ;;  %v2828_v41 = vmul.f32 %v5087_v38, %v5083_v29 }
0x1623   :  { %4817 = vmatpush3.bf16.msra.mxu1 %v4968_v36  ;;  %4818 = vmatprep.mubr.msk.bf16.mxu1 %vm5165_vm1, %v5164_v8 }
0x1624   :  { %v2830_v6 = vpack.c.bf16 %v2828_v41, %v2828_v41  ;;  %4828 = vmatprep.subr.bf16.mxu1 %v5164_v8 }
0x1626   :  { %4801 = vmatmul.mubr.msk.bf16.vlgmr.msra.gmra.mxu0 %vm649_vm5, %v2830_v6 }
0x1627   :  { %4812 = vmatprep.mubr.msk.bf16.mxu0 %vm5165_vm1, %v5164_v8  ;;  %4811 = vmatpush3.bf16.msra.mxu0 %v4969_v5 }
0x1628   :  { %4822 = vmatprep.subr.bf16.mxu0 %v5164_v8 }
0x162a   :  { %4819 = vmatmul.mubr.msk.bf16.vlgmr.msra.gmra.mxu1 %vm550_vm3, %v2699_v48 }
0x162b   :  { %4829 = vmatpush3.bf16.xpose.msra.mxu1 %v3089_v42  ;;  %4830 = vmatprep.mubr.msk.bf16.mxu1 %vm5165_vm1, %v5164_v8 }
0x162c   :  { %4840 = vmatprep.subr.bf16.mxu1 %v5164_v8 }
0x1632   :  { %4831 = vmatmul.mubr.msk.bf16.vlgmr.msra.gmra.mxu1 %vm550_vm3, %v3082_v10 }
0x1633   :  { %4842 = vmatprep.mubr.msk.bf16.mxu1 %vm5165_vm1, %v5164_v8 }
0x16e2   :  { %v2924_v43 = vpop.f32.mrf.mxu1 }
0x16e4   :  { %v4808_v44 = vpop.f32.mrf.mxu1 }
0x16e6   :  { %v2875_v45 = vpop.f32.mrf.mxu0  ;;  %v2927_v46 = vpop.f32.mrf.mxu1 }
0x16e7   :  { %v2930_v48 = vpack.c.bf16 %v2924_v43, %v2875_v45 }
0x16e8   :  { %v4802_v49 = vpop.f32.mrf.mxu0  ;;  %v4809_v52 = vpop.f32.mrf.mxu1 }
0x16e9   :  { %4813 = vmatmul.mubr.msk.bf16.vlgmr.msra.gmra.mxu0 %vm550_vm3, %v2930_v48  ;;  %v4970_v52 = vld [vmem:[%s6240_s8 + $0x30] sm:$0xff]  }
0x16ea   :  { %4823 = vmatpush3.bf16.xpose.msra.mxu0 %v3039_v53  ;;  %v2878_v54 = vpop.f32.mrf.mxu0  ;;  %v5995_v4 = vpop.f32.mrf.mxu1  ;;  %4824 = vmatprep.mubr.msk.bf16.mxu0 %vm5165_vm1, %v5164_v8 }
0x16eb   :  { %4834 = vmatprep.subr.bf16.mxu0 %v5164_v8 }
0x16ec   :  { %v4803_v16 = vpop.f32.mrf.mxu0  ;;  %v4820_v55 = vpop.f32.mrf.mxu1 }
0x16ee   :  { %v6000_v57 = vpop.f32.mrf.mxu1 }
0x16f0   :  { %v4821_v62 = vpop.f32.mrf.mxu1 }
0x16f1   :  { %4825 = vmatmul.mubr.msk.bf16.vlgmr.msra.gmra.mxu0 %vm550_vm3, %v3032_v61 }
0x16f2   :  { %v3125_v63 = vpop.f32.mrf.mxu1  ;;  %4836 = vmatprep.mubr.msk.bf16.mxu0 %vm5165_vm1, %v5164_v8 }
0x16f3   :  { %v3132_v0 = vmul.f32 0.25, %v3125_v63 }
0x16f4   :  { %v4832_v1 = vpop.f32.mrf.mxu1 }
0x16f5   :  { %v3134_v2 = vsel %vm5403_vm4, %v3132_v0, -1e+30 }
0x16f6   :  { %v3128_v3 = vpop.f32.mrf.mxu1  ;;  %v3138_v7 = vsel %vm649_vm5, %v3134_v2, -inf }
0x16f7   :  { %3139 = vmax.xlane.f32.xlu1 %v3138_v7 }
0x16f8   :  { %v4833_v9 = vpop.f32.mrf.mxu1 }
0x1708   :  { %3207 = vrot.lane.b32.xlu1 %v5883_v56, %s5167_s28 }
0x170c   :  { %3310 = vrot.lane.b32.xlu1 %v5876_v50, %s5168_s18 }
0x1710   :  { %3360 = vrot.lane.b32.xlu1 %v5874_v17, %s5168_s18 }
0x1714   :  { %3358 = vrot.lane.b32.xlu1 %v5888_v13, %s5168_s18 }
0x1780   :  { %v3140_v12 = vpop.xlane.xlu1 %3139 }
0x1781   :  { %v3142_v19 = vsub.f32 %v3134_v2, %v3140_v12 }
0x1783   :  { %v3145_v20 = vmul.f32 1.442695, %v3142_v19 }
0x1784   :  { %v3208_v14 = vpop.permute.xlu1 %3207 }
0x1785   :  { %v3213_v15 = vsel %vm677_vm2, %v3208_v14, 0  ;;  %5088 = vpow2.f32 %v3145_v20 }
0x1786   :  { %4841 = vmatpush3.bf16.msra.mxu1 %v3213_v15 }
0x1787   :  { %4852 = vmatprep.subr.bf16.mxu1 %v5164_v8 }
0x1788   :  { %v3311_v40 = vpop.permute.xlu1 %3310 }
0x1789   :  { %v3316_v6 = vsel %vm550_vm3, %v3311_v40, 0 }
0x178c   :  { %v3361_v0 = vpop.permute.xlu1 %3360 }
0x178d   :  { %v3366_v7 = vsel %vm550_vm3, %v3361_v0, 0 }
0x1790   :  { %v3359_v14 = vpop.permute.xlu1 %3358 }
0x1792   :  { %v5089_v29 = vpop.eup %5088 }
0x1793   :  { %v3150_v32 = vsel %vm649_vm5, %v5089_v29, 0.0 }
0x17a9   :  { %v6018_v22 = vpop.f32.mrf.mxu0 }
0x17ab   :  { %v4814_v23 = vpop.f32.mrf.mxu0 }
0x17ad   :  { %v6020_v50 = vpop.f32.mrf.mxu0 }
0x17af   :  { %v4815_v25 = vpop.f32.mrf.mxu0 }
0x17b1   :  { %v3075_v17 = vpop.f32.mrf.mxu0 }
0x17b2   :  { %v3131_v26 = vmul.f32 0.25, %v3075_v17  ;;  %v3025_v17 = vadd.f32 %v5995_v4, %v6018_v22 }
0x17b3   :  { %v4826_v60 = vpop.f32.mrf.mxu0 }
0x17b4   :  { %v3133_v13 = vsel %vm5403_vm4, %v3131_v26, -1e+30 }
0x17b5   :  { %v3078_v27 = vpop.f32.mrf.mxu0  ;;  %v3135_v28 = vsel %vm649_vm5, %v3133_v13, -inf }
0x17b6   :  { %3136 = vmax.xlane.f32.xlu0 %v3135_v28  ;;  %v3028_v27 = vadd.f32 %v6000_v57, %v6020_v50 }
0x17b7   :  { %v4827_v31 = vpop.f32.mrf.mxu0 }
0x17ba   :  { %3151 = vadd.xlane.f32.xlu0 %v3150_v32 }
0x183f   :  { %v3137_v11 = vpop.xlane.xlu0 %3136 }
0x1840   :  { %v3141_v33 = vsub.f32 %v3133_v13, %v3137_v11 }
0x1842   :  { %v3143_v34 = vmul.f32 1.442695, %v3141_v33 }
0x1843   :  { %v3152_v18 = vpop.xlane.xlu0 %3151 }
0x1844   :  { %5090 = vpow2.f32 %v3143_v34 }
0x1845   :  { %5092 = vrcp.f32 %v3152_v18 }
0x1851   :  { %v5091_v35 = vpop.eup %5090 }
0x1852   :  { %v5093_v36 = vpop.eup %5092  ;;  %v3147_v37 = vsel %vm649_vm5, %v5091_v35, 0.0 }
0x1853   :  { %3148 = vadd.xlane.f32.xlu0 %v3147_v37  ;;  %v3156_v38 = vmul.f32 %v5093_v36, %v5089_v29 }
0x1855   :  { %v3158_v41 = vpack.c.bf16 %v3156_v38, %v3156_v38 }
0x1857   :  { %4843 = vmatmul.mubr.msk.bf16.vlgmr.msra.gmra.mxu1 %vm649_vm5, %v3158_v41 }
0x1858   :  { %4853 = vmatpush3.bf16.xpose.msra.mxu1 %v3316_v6  ;;  %4854 = vmatprep.mubr.msk.bf16.mxu1 %vm5165_vm1, %v5164_v8 }
0x1859   :  { %4864 = vmatprep.subr.bf16.mxu1 %v5164_v8 }
0x1869   :  { %3159 = vrot.lane.b32.xlu0 %v5886_v58, %s5167_s28 }
0x186d   :  { %3308 = vrot.lane.b32.xlu0 %v5890_v59, %s5168_s18 }
0x18dc   :  { %v3149_v30 = vpop.xlane.xlu0 %3148 }
0x18dd   :  { %5094 = vrcp.f32 %v3149_v30 }
0x18e0   :  { %v3160_v42 = vpop.permute.xlu0 %3159 }
0x18e1   :  { %v3165_v10 = vsel %vm677_vm2, %v3160_v42, 0 }
0x18e2   :  { %4835 = vmatpush3.bf16.msra.mxu0 %v3165_v10 }
0x18e3   :  { %4846 = vmatprep.subr.bf16.mxu0 %v5164_v8 }
0x18e4   :  { %v3309_v5 = vpop.permute.xlu0 %3308 }
0x18e5   :  { %4855 = vmatmul.mubr.msk.bf16.vlgmr.msra.gmra.mxu1 %vm550_vm3, %v3309_v5 }
0x18e6   :  { %4866 = vmatprep.mubr.msk.bf16.mxu1 %vm5165_vm1, %v5164_v8 }
0x18ea   :  { %v5095_v43 = vpop.eup %5094 }
0x18eb   :  { %v3155_v44 = vmul.f32 %v5095_v43, %v5091_v35 }
0x18ed   :  { %v3157_v45 = vpack.c.bf16 %v3155_v44, %v3155_v44  ;;  %v4971_v44 = vld [vmem:[%s6240_s8 + $0x38] sm:$0xff]  }
0x18ef   :  { %4837 = vmatmul.mubr.msk.bf16.vlgmr.msra.gmra.mxu0 %vm649_vm5, %v3157_v45 }
0x18f0   :  { %4848 = vmatprep.mubr.msk.bf16.mxu0 %vm5165_vm1, %v5164_v8  ;;  %4847 = vmatpush3.bf16.msra.mxu0 %v4970_v52 }
0x18f1   :  { %4858 = vmatprep.subr.bf16.mxu0 %v5164_v8 }
0x1917   :  { %v3249_v59 = vpop.f32.mrf.mxu1 }
0x1919   :  { %v4844_v46 = vpop.f32.mrf.mxu1 }
0x191b   :  { %v3252_v48 = vpop.f32.mrf.mxu1 }
0x191d   :  { %v4845_v49 = vpop.f32.mrf.mxu1 }
0x19a5   :  { %v3352_v53 = vpop.f32.mrf.mxu1 }
0x19a6   :  { %v3408_v54 = vmul.f32 0.25, %v3352_v53 }
0x19a7   :  { %v4856_v16 = vpop.f32.mrf.mxu1 }
0x19a8   :  { %v3410_v55 = vsel %vm5403_vm4, %v3408_v54, -1e+30 }
0x19a9   :  { %v3355_v61 = vpop.f32.mrf.mxu1  ;;  %v3412_v62 = vsel %vm649_vm5, %v3410_v55, -inf }
0x19aa   :  { %3413 = vmax.xlane.f32.xlu0 %v3412_v62 }
0x19ab   :  { %v4857_v63 = vpop.f32.mrf.mxu1 }
0x19af   :  { %v3201_v1 = vpop.f32.mrf.mxu0 }
0x19b0   :  { %v3255_v2 = vpack.c.bf16 %v3249_v59, %v3201_v1 }
0x19b1   :  { %v4838_v3 = vpop.f32.mrf.mxu0 }
0x19b2   :  { %4849 = vmatmul.mubr.msk.bf16.vlgmr.msra.gmra.mxu0 %vm550_vm3, %v3255_v2 }
0x19b3   :  { %4859 = vmatpush3.bf16.xpose.msra.mxu0 %v3366_v7  ;;  %v3204_v9 = vpop.f32.mrf.mxu0  ;;  %4860 = vmatprep.mubr.msk.bf16.mxu0 %vm5165_vm1, %v5164_v8 }
0x19b4   :  { %4870 = vmatprep.subr.bf16.mxu0 %v5164_v8 }
0x19b5   :  { %v4839_v12 = vpop.f32.mrf.mxu0 }
0x19ba   :  { %4861 = vmatmul.mubr.msk.bf16.vlgmr.msra.gmra.mxu0 %vm550_vm3, %v3359_v14 }
0x19bb   :  { %4872 = vmatprep.mubr.msk.bf16.mxu0 %vm5165_vm1, %v5164_v8 }
0x1a33   :  { %v3414_v15 = vpop.xlane.xlu0 %3413 }
0x1a34   :  { %v3418_v19 = vsub.f32 %v3410_v55, %v3414_v15  ;;  %v4977_v15 = vld [vmem:[%s6244_s12 + $0x74] ss:$8 sps:$4 sm:$0xff]  }
0x1a36   :  { %v3420_v20 = vmul.f32 1.442695, %v3418_v19  ;;  %v4975_v19 = vld [vmem:[%s6244_s12 + $0x70] ss:$8 sps:$4 sm:$0xff]  }
0x1a38   :  { %5096 = vpow2.f32 %v3420_v20  ;;  %v4980_v20 = vld [vmem:[%s6242_s10 + $0x64] ss:$8 sps:$4 sm:$0xff]  }
0x1a45   :  { %v5097_v23 = vpop.eup %5096 }
0x1a46   :  { %v3424_v25 = vsel %vm649_vm5, %v5097_v23, 0.0 }
0x1a47   :  { %3425 = vadd.xlane.f32.xlu0 %v3424_v25  ;;  %v4978_v25 = vld [vmem:[%s6242_s10 + $0x60] ss:$8 sps:$4 sm:$0xff]  }
0x1a72   :  { %v3299_v26 = vpop.f32.mrf.mxu0 }
0x1a73   :  { %v3306_v60 = vadd.f32 %v3299_v26, %v3025_v17  ;;  %v4981_v17 = vld [vmem:[%s6244_s12 + $0x60] ss:$8 sps:$4 sm:$0xff]   ;;  %v4986_v26 = vld [vmem:[%s6242_s10 + $0x54] ss:$8 sps:$4 sm:$0xff]  }
0x1a74   :  { %v4850_v13 = vpop.f32.mrf.mxu0 }
0x1a75   :  { %v4984_v13 = vld [vmem:[%s6242_s10 + $0x50] ss:$8 sps:$4 sm:$0xff]  }
0x1a76   :  { %v3302_v28 = vpop.f32.mrf.mxu0 }
0x1a77   :  { %v3307_v29 = vadd.f32 %v3302_v28, %v3028_v27  ;;  %v4987_v27 = vld [vmem:[%s6244_s12 + $0x50] ss:$8 sps:$4 sm:$0xff]   ;;  %v4992_v28 = vld [vmem:[%s6242_s10 + $0x44] ss:$8 sps:$4 sm:$0xff]  }
0x1a78   :  { %v4851_v31 = vpop.f32.mrf.mxu0 }
0x1a79   :  { %v4993_v31 = vld [vmem:[%s6244_s12 + $0x40] ss:$8 sps:$4 sm:$0xff]  }
0x1a7a   :  { %v3402_v32 = vpop.f32.mrf.mxu0 }
0x1a7b   :  { %v3409_v11 = vmul.f32 0.25, %v3402_v32  ;;  %v4995_v32 = vld [vmem:[%s6244_s12 + $0x44] ss:$8 sps:$4 sm:$0xff]  }
0x1a7c   :  { %v4862_v33 = vpop.f32.mrf.mxu0 }
0x1a7d   :  { %v3411_v34 = vsel %vm5403_vm4, %v3409_v11, -1e+30 }
0x1a7e   :  { %v3405_v18 = vpop.f32.mrf.mxu0  ;;  %v3415_v35 = vsel %vm649_vm5, %v3411_v34, -inf }
0x1a7f   :  { %3416 = vmax.xlane.f32.xlu1 %v3415_v35 }
0x1a80   :  { %v4863_v4 = vpop.f32.mrf.mxu0 }
0x1a90   :  { %3484 = vrot.lane.b32.xlu1 %v5883_v56, %s5168_s18 }
0x1ad0   :  { %v3426_v40 = vpop.xlane.xlu0 %3425 }
0x1b08   :  { %v3417_v22 = vpop.xlane.xlu1 %3416 }
0x1b09   :  { %v3419_v36 = vsub.f32 %v3411_v34, %v3417_v22 }
0x1b0b   :  { %v3422_v57 = vmul.f32 1.442695, %v3419_v36 }
0x1b0c   :  { %v3485_v50 = vpop.permute.xlu1 %3484 }
0x1b0d   :  { %5098 = vpow2.f32 %v3422_v57  ;;  %v3490_v37 = vsel %vm677_vm2, %v3485_v50, 0  ;;  %v4297_v50 = vld [vmem:[%s6241_s9 + $0x1] ss:$0 sm:$0xff] }
0x1b0e   :  { %4871 = vmatpush3.bf16.msra.mxu0 %v3490_v37  ;;  %5100 = vrcp.f32 %v3426_v40  ;;  %v4996_v40 = vld [vmem:[%s6243_s11 + $0x98] sm:$0xff]  }
0x1b1a   :  { %v5099_v38 = vpop.eup %5098 }
0x1b1b   :  { %v3427_v24 = vsel %vm649_vm5, %v5099_v38, 0.0  ;;  %v5101_v41 = vpop.eup %5100 }
0x1b1c   :  { %3428 = vadd.xlane.f32.xlu0 %v3427_v24  ;;  %v3432_v56 = vmul.f32 %v5101_v41, %v5097_v23  ;;  %v4983_v23 = vld [vmem:[%s6244_s12 + $0x64] ss:$8 sps:$4 sm:$0xff]  }
0x1b1e   :  { %v3434_v10 = vpack.c.bf16 %v3432_v56, %v3432_v56  ;;  %v4998_v56 = vld [vmem:[%s6243_s11 + $0x88] sm:$0xff]  }
0x1b32   :  { %3436 = vrot.lane.b32.xlu0 %v5886_v58, %s5168_s18 }
0x1ba5   :  { %v3429_v6 = vpop.xlane.xlu0 %3428 }
0x1ba6   :  { %5102 = vrcp.f32 %v3429_v6  ;;  %v4997_v6 = vld [vmem:[%s6243_s11 + $0x90] sm:$0xff]  }
0x1ba9   :  { %v3437_v30 = vpop.permute.xlu0 %3436 }
0x1baa   :  { %v3442_v42 = vsel %vm677_vm2, %v3437_v30, 0  ;;  %v4999_v30 = vld [vmem:[%s6243_s11 + $0x80] sm:$0xff]  }
0x1bab   :  { %4865 = vmatpush3.bf16.msra.mxu1 %v3442_v42  ;;  %v5000_v42 = vld [vmem:[%s6243_s11 + $0x78] sm:$0xff]  }
0x1bac   :  { %4876 = vmatprep.subr.bf16.mxu1 %v5164_v8 }
0x1bae   :  { %4867 = vmatmul.mubr.msk.bf16.vlgmr.msra.gmra.mxu1 %vm649_vm5, %v3434_v10  ;;  %v5001_v10 = vld [vmem:[%s6243_s11 + $0x70] sm:$0xff]  }
0x1baf   :  { %4878 = vmatprep.mubr.msk.bf16.mxu1 %vm5165_vm1, %v5164_v8  ;;  %4877 = vmatpush3.bf16.msra.mxu1 %v4971_v44  ;;  %v5005_v44 = vld [vmem:[%s6243_s11 + $0xb0] sm:$0xff]  }
0x1bb0   :  { %3746 = vmatprep.subr.bf16.mxu1 %v4977_v15 }
0x1bb3   :  { %v5103_v5 = vpop.eup %5102 }
0x1bb4   :  { %v3433_v58 = vmul.f32 %v5103_v5, %v5099_v38  ;;  %v5002_v5 = vld [vmem:[%s6243_s11 + $0x68] sm:$0xff]  }
0x1bb6   :  { %v3435_v43 = vpack.c.bf16 %v3433_v58, %v3433_v58  ;;  %v5003_v58 = vld [vmem:[%s6243_s11 + $0x60] sm:$0xff]  }
0x1bb8   :  { %4873 = vmatmul.mubr.msk.bf16.vlgmr.msra.gmra.mxu0 %vm649_vm5, %v3435_v43  ;;  %v5004_v43 = vld [vmem:[%s6243_s11 + $0xb8] sm:$0xff]  }
0x1bb9   :  { %3687 = vmatprep.mubr.bf16.mxu0 %v5169_v39 }
0x1c6e   :  { %v3478_v45 = vpop.f32.mrf.mxu1 }
0x1c70   :  { %v4868_v59 = vpop.f32.mrf.mxu1 }
0x1c71   :  { %v5007_v59 = vld [vmem:[%s6243_s11 + $0xa0] sm:$0xff]  }
0x1c72   :  { %v3481_v46 = vpop.f32.mrf.mxu1 }
0x1c74   :  { %v4869_v48 = vpop.f32.mrf.mxu1 }
0x1c78   :  { %v3526_v49 = vpop.f32.mrf.mxu0 }
0x1c79   :  { %v3532_v52 = vpack.c.bf16 %v3526_v49, %v3478_v45  ;;  %v5006_v45 = vld [vmem:[%s6243_s11 + $0xa8] sm:$0xff]  }
0x1c7a   :  { %v4874_v53 = vpop.f32.mrf.mxu0 }
0x1c7b   :  { %4879 = vmatmul.mubr.msk.bf16.vlgmr.msra.gmra.mxu1 %vm550_vm3, %v3532_v52 }
0x1c7c   :  { %v3529_v54 = vpop.f32.mrf.mxu0  ;;  %3770 = vmatprep.mubr.bf16.mxu1 %v5169_v39  ;;  %3747 = vmatpush1.bf16.msra.mxu1 %v4975_v19 }
0x1c7d   :  { %3748 = vmatprep.subr.bf16.mxu1 %v4983_v23 }
0x1c7e   :  { %v4875_v16 = vpop.f32.mrf.mxu0 }
0x1c80   :  { %3749 = vmatpush1.bf16.msra.mxu1 %v4981_v17 }
0x1d3b   :  { %v3576_v55 = vpop.f32.mrf.mxu1 }
0x1d3c   :  { %v3583_v61 = vadd.f32 %v3576_v55, %v3306_v60  ;;  %v4989_v60 = vld [vmem:[%s6244_s12 + $0x54] ss:$8 sps:$4 sm:$0xff]  }
0x1d3d   :  { %v4880_v62 = vpop.f32.mrf.mxu1  ;;  %3750 = vmatprep.subr.bf16.mxu1 %v4989_v60 }
0x1d3e   :  { %v6086_v63 = vadd.f32 %v3583_v61, %v5767_v47  ;;  %v4974_v47 = vld [vmem:[%s6242_s10 + $0x74] ss:$8 sps:$4 sm:$0xff]   ;;  %3751 = vmatpush1.bf16.msra.mxu1 %v4987_v27 }
0x1d3f   :  { %v3579_v0 = vpop.f32.mrf.mxu1  ;;  %3663 = vmatprep.subr.bf16.mxu0 %v4974_v47  ;;  %3752 = vmatprep.subr.bf16.mxu1 %v4995_v32 }
0x1d40   :  { %v3584_v1 = vadd.f32 %v3579_v0, %v3307_v29  ;;  %v3587_v2 = vmul.f32 %v6086_v63, %v6086_v63  ;;  %v4990_v29 = vld [vmem:[%s6242_s10 + $0x40] ss:$8 sps:$4 sm:$0xff]  }
0x1d41   :  { %v4881_v3 = vpop.f32.mrf.mxu1 }
0x1d42   :  { %v6091_v7 = vadd.f32 %v3584_v1, %v5772_v51  ;;  %v3589_v9 = vsel %vm147_vm0, %v3587_v2, 0.0  ;;  %v4972_v51 = vld [vmem:[%s6242_s10 + $0x70] ss:$8 sps:$4 sm:$0xff]   ;;  %3753 = vmatpush1.bf16.msra.mxu1 %v4993_v31 }
0x1d43   :  { %3590 = vadd.xlane.f32.xlu1 %v3589_v9  ;;  %3664 = vmatpush1.bf16.msra.mxu0 %v4972_v51 }
0x1d44   :  { %v3588_v12 = vmul.f32 %v6091_v7, %v6091_v7  ;;  %3665 = vmatprep.subr.bf16.mxu0 %v4980_v20  ;;  %4882 = vmatprep.subr.bf16.mxu1 %v5164_v8 }
0x1d46   :  { %v3592_v14 = vsel %vm147_vm0, %v3588_v12, 0.0 }
0x1d47   :  { %3593 = vadd.xlane.f32.xlu0 %v3592_v14  ;;  %3666 = vmatpush1.bf16.msra.mxu0 %v4978_v25 }
0x1d48   :  { %3667 = vmatprep.subr.bf16.mxu0 %v4986_v26 }
0x1d4b   :  { %3668 = vmatpush1.bf16.msra.mxu0 %v4984_v13 }
0x1d4c   :  { %3669 = vmatprep.subr.bf16.mxu0 %v4992_v28 }
0x1d4f   :  { %3670 = vmatpush1.bf16.msra.mxu0 %v4990_v29 }
0x1d50   :  { %3890 = vmatprep.subr.bf16.mxu0 %v5169_v39 }
0x1dcc   :  { %v3591_v11 = vpop.xlane.xlu1 %3590 }
0x1dcd   :  { %v3595_v33 = vmul.f32 0.015625, %v3591_v11 }
0x1dcf   :  { %v3597_v34 = vadd.f32 1e-05, %v3595_v33 }
0x1dd0   :  { %v3594_v18 = vpop.xlane.xlu0 %3593 }
0x1dd1   :  { %5104 = vrsqrt.f32 %v3597_v34  ;;  %v3596_v35 = vmul.f32 0.015625, %v3594_v18 }
0x1dd3   :  { %v3598_v4 = vadd.f32 1e-05, %v3596_v35 }
0x1dd5   :  { %5106 = vrsqrt.f32 %v3598_v4 }
0x1dde   :  { %v5105_v22 = vpop.eup %5104 }
0x1ddf   :  { %v3601_v36 = vmul.f32 %v5105_v22, %v6086_v63 }
0x1de1   :  { %v3609_v38 = vmul.f32 %v4297_v50, %v3601_v36 }
0x1de2   :  { %v5107_v57 = vpop.eup %5106 }
0x1de3   :  { %v3602_v37 = vmul.f32 %v5107_v57, %v6091_v7 }
0x1de5   :  { %v3610_v24 = vmul.f32 %v4297_v50, %v3602_v37 }
0x1de7   :  { %v3611_v41 = vpack.c.bf16 %v3610_v24, %v3609_v38  ;;  %v5008_v38 = vld [vmem:[%s6246_s14 + $0x18] sm:$0xff]   ;;  %v5011_v24 = vld [vmem:[%s6246_s14] sm:$0xff]  }
0x1de9   :  { %4306 = vmatmul.mubr.msk.bf16.vlgmr.msra.gmra.mxu0 %vm147_vm0, %v3611_v41  ;;  %4315 = vmatmul.mubr.msk.bf16.vlgmr.msra.gmra.mxu1 %vm147_vm0, %v3611_v41 }
0x1dea   :  { %3891 = vmatpush1.bf16.msra.mxu0 %v4996_v40  ;;  %4890 = vmatprep.mubr.msk.bf16.mxu1 %vm5165_vm1, %v5164_v8 }
0x1deb   :  { %3892 = vmatprep.subr.bf16.mxu0 %v5169_v39  ;;  %4883 = vmatpush3.bf16.msra.mxu1 %v5008_v38 }
0x1dec   :  { %4884 = vmatprep.subr.bf16.mxu1 %v5164_v8 }
0x1dee   :  { %3893 = vmatpush1.bf16.msra.mxu0 %v4997_v6 }
0x1def   :  { %3894 = vmatprep.subr.bf16.mxu0 %v5169_v39 }
0x1df2   :  { %3895 = vmatpush1.bf16.msra.mxu0 %v4998_v56 }
0x1df3   :  { %3896 = vmatprep.subr.bf16.mxu0 %v5169_v39 }
0x1df6   :  { %3897 = vmatpush1.bf16.msra.mxu0 %v4999_v30 }
0x1df7   :  { %3898 = vmatprep.subr.bf16.mxu0 %v5169_v39 }
0x1dfa   :  { %3899 = vmatpush1.bf16.msra.mxu0 %v5000_v42 }
0x1dfb   :  { %3900 = vmatprep.subr.bf16.mxu0 %v5169_v39 }
0x1dfe   :  { %3901 = vmatpush1.bf16.msra.mxu0 %v5001_v10 }
0x1dff   :  { %3902 = vmatprep.subr.bf16.mxu0 %v5169_v39 }
0x1e02   :  { %3903 = vmatpush1.bf16.msra.mxu0 %v5002_v5 }
0x1e03   :  { %3904 = vmatprep.subr.bf16.mxu0 %v5169_v39 }
0x1e06   :  { %3905 = vmatpush1.bf16.msra.mxu0 %v5003_v58  ;;  %v4333_v58 = vld [vmem:[%s6245_s13] ss:$0 sm:$0xff]  ;;  %s5171_s13 = smov [#allocation2]  }
0x1e07   :  { %3914 = vmatprep.subr.bf16.mxu0 %v5169_v39 }
0x1e0a   :  { %3915 = vmatpush2.bf16.msra.mxu0 %v5004_v43 }
0x1e0b   :  { %3916 = vmatprep.subr.bf16.mxu0 %v5169_v39 }
0x1e0e   :  { %3917 = vmatpush2.bf16.msra.mxu0 %v5005_v44 }
0x1e0f   :  { %3918 = vmatprep.subr.bf16.mxu0 %v5169_v39 }
0x1e12   :  { %3919 = vmatpush2.bf16.msra.mxu0 %v5006_v45 }
0x1e13   :  { %3920 = vmatprep.subr.bf16.mxu0 %v5169_v39 }
0x1e16   :  { %3921 = vmatpush2.bf16.msra.mxu0 %v5007_v59 }
0x1ea9   :  { %v3689_v46 = vpop.f32.mrf.mxu0  ;;  %v3772_v12 = vpop.f32.mrf.mxu1 }
0x1eaa   :  { %v4316_v48 = vmul.f32 -1.442695, %v3689_v46 }
0x1eab   :  { %v3691_v49 = vpop.f32.mrf.mxu0  ;;  %v3774_v14 = vpop.f32.mrf.mxu1 }
0x1eac   :  { %5108 = vpow2.f32 %v4316_v48  ;;  %v4317_v52 = vmul.f32 -1.442695, %v3691_v49 }
0x1ead   :  { %v3693_v53 = vpop.f32.mrf.mxu0  ;;  %v3776_v19 = vpop.f32.mrf.mxu1 }
0x1eae   :  { %5110 = vpow2.f32 %v4317_v52  ;;  %v4318_v54 = vmul.f32 -1.442695, %v3693_v53 }
0x1eaf   :  { %v3695_v16 = vpop.f32.mrf.mxu0  ;;  %v3778_v13 = vpop.f32.mrf.mxu1 }
0x1eb0   :  { %5112 = vpow2.f32 %v4318_v54  ;;  %v4319_v55 = vmul.f32 -1.442695, %v3695_v16 }
0x1eb2   :  { %5114 = vpow2.f32 %v4319_v55 }
0x1eb9   :  { %v5109_v61 = vpop.eup %5108 }
0x1eba   :  { %v3793_v39 = vadd.f32 1.0, %v5109_v61  ;;  %v5170_v61 = vmov 1966171168  }
0x1ebb   :  { %v5111_v62 = vpop.eup %5110 }
0x1ebc   :  { %v3794_v0 = vadd.f32 1.0, %v5111_v62  ;;  %v4058_v62 = vunpack.c.l.s4 %v5170_v61 }
0x1ebd   :  { %v5113_v1 = vpop.eup %5112 }
0x1ebe   :  { %5116 = vrcp.f32 %v3794_v0  ;;  %v3795_v2 = vadd.f32 1.0, %v5113_v1 }
0x1ebf   :  { %v5115_v3 = vpop.eup %5114  ;;  %5118 = vrcp.f32 %v3793_v39  ;;  %v4059_v39 = vunpack.c.0.s8 %v4058_v62 }
0x1ec0   :  { %5120 = vrcp.f32 %v3795_v2  ;;  %v3796_v9 = vadd.f32 1.0, %v5115_v3 }
0x1ec1   :  { %v4062_v0 = vsub.s32 %v4059_v39, %v5400_v21 }
0x1ec2   :  { %5122 = vrcp.f32 %v3796_v9 }
0x1ecb   :  { %v5117_v47 = vpop.eup %5116 }
0x1ecc   :  { %v5119_v15 = vpop.eup %5118  ;;  %v3806_v20 = vmul.f32 %v5117_v47, %v3691_v49 }
0x1ecd   :  { %v5121_v51 = vpop.eup %5120  ;;  %v3805_v17 = vmul.f32 %v5119_v15, %v3689_v46 }
0x1ece   :  { %v3807_v23 = vmul.f32 %v5121_v51, %v3693_v53  ;;  %v3810_v27 = vmul.f32 %v3806_v20, %v3774_v14 }
0x1ecf   :  { %v5123_v25 = vpop.eup %5122  ;;  %v3809_v29 = vmul.f32 %v3805_v17, %v3772_v12 }
0x1ed0   :  { %v3808_v26 = vmul.f32 %v5123_v25, %v3695_v16  ;;  %v3811_v60 = vmul.f32 %v3807_v23, %v3776_v19 }
0x1ed2   :  { %v3812_v28 = vmul.f32 %v3808_v26, %v3778_v13  ;;  %v3813_v32 = vpack.c.bf16 %v3811_v60, %v3809_v29 }
0x1ed4   :  { %v3814_v31 = vpack.c.bf16 %v3812_v28, %v3810_v27 }
0x1ed6   :  { %4332 = vmatprep.mubr.msk.bf16.mxu0 %vm147_vm0, %v3814_v31 }
0x1ed7   :  { %3923 = vmatmul.mubr.bf16.vlgmr.msra.gmra.mxu0 %v3813_v32 }
0x1f97   :  { %v3924_v11 = vpop.f32.mrf.mxu0 }
0x1f98   :  { %v3931_v33 = vadd.f32 %v3924_v11, %v6086_v63  ;;  %v5009_v63 = vld [vmem:[%s6246_s14 + $0x10] sm:$0xff]  }
0x1f99   :  { %v3926_v34 = vpop.f32.mrf.mxu0  ;;  %4885 = vmatpush3.bf16.msra.mxu1 %v5009_v63 }
0x1f9a   :  { %v3934_v18 = vmul.f32 %v3931_v33, %v3931_v33  ;;  %4886 = vmatprep.subr.bf16.mxu1 %v5164_v8 }
0x1f9b   :  { %v3927_v35 = vpop.f32.mrf.mxu0 }
0x1f9c   :  { %v3932_v4 = vadd.f32 %v3927_v35, %v6091_v7  ;;  %v3942_v22 = vsel %vm3941_vm6, %v3934_v18, 0.0  ;;  %v5010_v7 = vld [vmem:[%s6246_s14 + $0x8] sm:$0xff]   ;;  %s4088_s14 = sshll.u32 %s5171_s13, 4  ;;  %s4089_s14 = int_to_ptr.vmem [resolvable:$true] %s4088_s14 }
0x1f9d   :  { %3943 = vadd.xlane.f32.xlu1 %v3942_v22  ;;  %v3929_v36 = vpop.f32.mrf.mxu0  ;;  %4887 = vmatpush3.bf16.msra.mxu1 %v5010_v7  ;;  %s5142_s21 = scalar_lea.vmem %s4089_s14, 32  ;;  %p5147_p1 = scmp.lt.s32.totalorder %s4089_s14, %s4089_s14 }
0x1f9e   :  { %v3935_v57 = vmul.f32 %v3932_v4, %v3932_v4  ;;  %4888 = vmatprep.subr.bf16.mxu1 %v5164_v8  ;;  %p5143_p0 = scmp.ne.s32.totalorder %s4089_s14, %s5142_s21  ;;  %p5148_p2 = scmp.lt.s32.totalorder %s5142_s21, %s5142_s21 }
0x1fa0   :  { %v3938_v50 = vrot.slane %v3935_v57, 7  ;;  %p5149_p3 = por %p5148_p2, %p5147_p1 }
0x1fa1   :  { %4889 = vmatpush3.bf16.msra.mxu1 %v5011_v24 }
0x1fa2   :  { %v3946_v37 = vsel %vm3945_vm7, %v3938_v50, 0.0  ;;  %p5150_p4 = pnand %p5149_p3, %p5143_p0 }
0x1fa3   :  { %3947 = vadd.xlane.f32.xlu0 %v3946_v37 }
0x2026   :  { %v3944_v40 = vpop.xlane.xlu1 %3943 }
0x2027   :  { %v3949_v41 = vmul.f32 0.015625, %v3944_v40 }
0x2029   :  { %v3951_v6 = vadd.f32 1e-05, %v3949_v41 }
0x202b   :  { %5124 = vrsqrt.f32 %v3951_v6 }
0x202c   :  { %v3948_v56 = vpop.xlane.xlu0 %3947 }
0x202d   :  { %v3950_v30 = vmul.f32 0.015625, %v3948_v56 }
0x202f   :  { %v3952_v42 = vadd.f32 1e-05, %v3950_v30 }
0x2031   :  { %5126 = vrsqrt.f32 %v3952_v42 }
0x2038   :  { %v5125_v10 = vpop.eup %5124 }
0x2039   :  { %v3960_v5 = vmul.f32 %v5125_v10, %v3931_v33 }
0x203b   :  { %v3968_v8 = vmul.f32 %v4333_v58, %v3960_v5 }
0x203d   :  { %v3970_v45 = vpack.c.bf16 %v3968_v8, %v3968_v8 }
0x203e   :  { %v5127_v43 = vpop.eup %5126 }
0x203f   :  { %v3957_v44 = vrot.slane %v5127_v43, 1  ;;  %v3982_v48 = vunpack.c.l.b16 %v3970_v45 }
0x2041   :  { %v3961_v59 = vmul.f32 %v3957_v44, %v3932_v4  ;;  %v3984_v53 = vrot.slane %v3982_v48, 7 }
0x2043   :  { %v3969_v46 = vmul.f32 %v4333_v58, %v3961_v59 }
0x2045   :  { %v3971_v49 = vpack.c.bf16 %v3969_v46, %v3969_v46 }
0x2047   :  { %v3983_v52 = vunpack.c.l.b16 %v3971_v49 }
0x2049   :  { %v3985_v54 = vrot.slane %v3983_v52, 6 }
0x204b   :  { %v3987_v16 = vsel %vm3986_vm8, %v3985_v54, %v3984_v53 }
0x204c   :  { %v3988_v55 = vpack.c.b16 %v3987_v16, %v3987_v16 }
0x204e   :  { %4891 = vmatmul.mubr.msk.bf16.vlgmr.msra.gmra.mxu1 %vm147_vm0, %v3988_v55 }
0x210e   :  { %v4050_v1 = vpop.f32.mrf.mxu1 }
0x210f   :  { %v4063_v2 = vrot.slane %v4050_v1, %v4062_v0 }
0x2110   :  { %v4892_v3 = vpop.f32.mrf.mxu1 }
0x2111   :  { %v4064_v9 = vcombine.high %v4063_v2, %v4063_v2  ;;  %v4071_v12 = vrot.slane %v4063_v2, %v4062_v0 }
0x2112   :  { %v4053_v14 = vpop.f32.mrf.mxu1 }
0x2113   :  { %v4078_v47 = vrot.slane %v4064_v9, %v4062_v0  ;;  %4081 = vst.msk [vmem:[#allocation2] sm:$0x1] %vm3945_vm7, %v4071_v12 }
0x2114   :  { %v4893_v15 = vpop.f32.mrf.mxu1 }
0x2115   :  { %4082 = vst.msk [vmem:[#allocation2 + $0x1] sm:$0x1] %vm3945_vm7, %v4078_v47 }
0x2116   :  { %5153 = shalt.err (!%p5150_p4)
}
0x2117   :  { %s5172_s4 = smov 16   ;;  %s5173_s22 = smov 1  }
0x2118   :  { %4094 = dma.vmem_to_hbm [thread:$0]  %s4089_s14, 32, %s6247_s15, [#allocation3], %s5172_s4, %s5172_s4, %s5173_s22  }
0x2119   :  { %5162 = dma.done.wait [#allocation3], 32  }
0x211a   :  { %5163 = vsyncadd [#allocation3], 4294967264 }
0x211b   :  { %4098 = vsyncpa [#allocation3], 1 }

</bundles_post_ra>
